<compile_context>
chip_gen: v7x
topology: tpu7x:2x2x1
jax: 0.10.0
libtpu: 0.0.40
codegen_flags: <defaults>
</compile_context>

<pallas_src>
import numpy as np
import jax
import jax.numpy as jnp
from jax import lax
from jax.experimental import pallas as pl
from jax.experimental.pallas import tpu as pltpu


# ----------------------------------------------------------------------------
# Haar DWT matrices (only used by the pure-JAX reference; mirrors DWT_2D).
# ----------------------------------------------------------------------------
def _haar_dwt_matrices(input_height, input_width):
    a = 0.7071067811865476
    band_low = [a, a]            # pywt haar rec_lo
    band_high = [a, -a]          # pywt haar rec_hi
    band_length = 2
    band_length_half = 1
    L1 = max(input_height, input_width)
    L = L1 // 2
    matrix_h = np.zeros((L, L1 + band_length - 2), dtype=np.float64)
    matrix_g = np.zeros((L1 - L, L1 + band_length - 2), dtype=np.float64)
    end = None if band_length_half == 1 else -band_length_half + 1
    index = 0
    for i in range(L):
        for j in range(band_length):
            matrix_h[i, index + j] = band_low[j]
        index += 2
    matrix_h_0 = matrix_h[0:input_height // 2, 0:input_height + band_length - 2]
    matrix_h_1 = matrix_h[0:input_width // 2, 0:input_width + band_length - 2]
    index = 0
    for i in range(L1 - L):
        for j in range(band_length):
            matrix_g[i, index + j] = band_high[j]
        index += 2
    matrix_g_0 = matrix_g[0:input_height - input_height // 2,
                          0:input_height + band_length - 2]
    matrix_g_1 = matrix_g[0:input_width - input_width // 2,
                          0:input_width + band_length - 2]
    matrix_h_0 = matrix_h_0[:, band_length_half - 1:end]
    matrix_h_1 = np.transpose(matrix_h_1[:, band_length_half - 1:end])
    matrix_g_0 = matrix_g_0[:, band_length_half - 1:end]
    matrix_g_1 = np.transpose(matrix_g_1[:, band_length_half - 1:end])
    return (jnp.asarray(matrix_h_0, jnp.float32),   # low_0  (Hu//2, Hu)
            jnp.asarray(matrix_h_1, jnp.float32),   # low_1  (Wu, Wu//2)
            jnp.asarray(matrix_g_0, jnp.float32),   # high_0 (Hu//2, Hu)
            jnp.asarray(matrix_g_1, jnp.float32))   # high_1 (Wu, Wu//2)


# ----------------------------------------------------------------------------
# Tiling / VMEM budgeting (generation-aware).
# ----------------------------------------------------------------------------
def _vmem_capacity_bytes():
    try:
        return int(pltpu.get_tpu_info().vmem_capacity_bytes)
    except Exception:
        return 64 * 1024 * 1024   # conservative (v7x per-TC) fallback


def _choose_row_tile(B, C, H, W, itemsize):
    """Pick the output-row tile `ti` (tiles the H axis of (B,C,H,W))."""
    cap = _vmem_capacity_bytes()
    budget = min(cap // 3, 48 * 1024 * 1024)

    def rup(v, m):
        return ((v + m - 1) // m) * m

    def step_bytes(ti):
        # Padded VMEM footprint of the double-buffered blocks for one step.
        xr_blk = H * rup(ti, 8) * rup(C, 128) * itemsize     # (1, H, ti, C)
        xo_blk = C * rup(ti, 8) * rup(W, 128) * itemsize     # (1, C, ti, W)
        return 2 * (xr_blk + 2 * xo_blk)

    cands = sorted({t for t in range(8, H, 8) if H % t == 0} | {H})
    fitting = [t for t in cands if step_bytes(t) <= budget]
    ti = max(fitting) if fitting else min(cands)

    # v7x has 2 TensorCores: keep >= 2 parallel grid steps when possible.
    if B * (H // ti) < 2:
        smaller = [t for t in cands if H // t >= 2]
        small_fit = [t for t in smaller if step_bytes(t) <= budget]
        if small_fit:
            ti = max(small_fit)
        elif smaller:
            ti = max(smaller)

    vmem_limit = int(max(32 * 1024 * 1024,
                         min(2 * step_bytes(ti) + (4 << 20), (cap * 9) // 10)))
    return ti, vmem_limit


# ----------------------------------------------------------------------------
# Pallas kernel.
#   xr_ref : (1, H, ti, C)  block of x.reshape(B,H,W,C)[b, :, i0:i0+ti, :]
#            -> rows of its [:, ii, :] slice are the permuted channel vectors
#   x_ref  : (1, C, ti, W)  block of x[b, :, i0:i0+ti, :] (native layout)
#   w1_ref : (C//2, C)      2 * conv1.weight[:, :C]  (collapsed DWT branch)
#   b1_ref : (C//2, 1)      conv1.bias
#   w2_ref : (C, C//2)      conv2.weight
#   b2_ref : (C, 1)         conv2.bias
#   o_ref  : (1, C, ti, W)
# ----------------------------------------------------------------------------
def _make_kernel(ti):
    unrolled = ti <= 32   # fully static indices for small tiles

    def kernel(xr_ref, x_ref, w1_ref, b1_ref, w2_ref, b2_ref, o_ref):
        w1 = w1_ref[...]
        b1 = b1_ref[...]
        w2 = w2_ref[...]
        b2 = b2_ref[...]

        def row(ii):
            # xcol[j, c] = x.reshape(B,H,W,C)[b, j, i0+ii, c] = xperm[b, c, i0+ii, j]
            xcol = xr_ref[0, :, ii, :].astype(jnp.float32)           # (H, C)
            # conv1 (collapsed wavelet branch) + ReLU   -> (C//2, H)
            h1 = lax.dot_general(w1, xcol, (((1,), (1,)), ((), ())),
                                 preferred_element_type=jnp.float32) + b1
            h1 = jnp.maximum(h1, 0.0)
            # conv2 + sigmoid: g[c, j] = att[b, c, i0+ii, j]          -> (C, W)
            g = jax.nn.sigmoid(
                jnp.dot(w2, h1, preferred_element_type=jnp.float32) + b2)
            # out[b, c, i0+ii, :] = x[b, c, i0+ii, :] * att[b, c, i0+ii, :]
            o_ref[0, :, ii, :] = (x_ref[0, :, ii, :] * g).astype(o_ref.dtype)

        if unrolled:
            for ii in range(ti):
                row(ii)
        else:
            def body(ii, carry):
                row(ii)
                return carry
            lax.fori_loop(0, ti, body, 0)

    return kernel


def waveletattspace_forward(x, w1, b1, w2, b2):
    """Pallas forward of Waveletattspace.

    x : (B, C, H, W) float;  w1: (C//2, 2C);  b1: (C//2,);  w2: (C, C//2);  b2: (C,)
    """
    B, C, H, W = x.shape
    assert H == W, "Waveletattspace requires square spatial dims (expand_as)"
    assert C >= 2 and w1.shape == (C // 2, 2 * C) and w2.shape == (C, C // 2)

    # Free (bitcast) view -- no extra HBM pass, unlike an XLA transpose.
    xr = x.reshape(B, H, W, C)

    # Collapsed wavelet branch: nearest-2x upsample + Haar DWT => LL = 2*input,
    # LH = HL = HH = 0, so conv1 only sees 2*x on its first C input channels.
    w1_eff = (2.0 * w1[:, :C]).astype(jnp.float32)
    b1_col = b1.reshape(C // 2, 1).astype(jnp.float32)
    w2_f = w2.astype(jnp.float32)
    b2_col = b2.reshape(C, 1).astype(jnp.float32)

    ti, vmem_limit = _choose_row_tile(B, C, H, W, x.dtype.itemsize)
    grid = (B, H // ti)

    out = pl.pallas_call(
        _make_kernel(ti),
        out_shape=jax.ShapeDtypeStruct((B, C, H, W), x.dtype),
        grid_spec=pltpu.PrefetchScalarGridSpec(
            num_scalar_prefetch=0,
            grid=grid,
            in_specs=[
                # permuted-channel-vector view: x_r[b, :, i0:i0+ti, :]
                pl.BlockSpec((1, H, ti, C), lambda b, i: (b, 0, i, 0)),
                # native view for the gating multiply: x[b, :, i0:i0+ti, :]
                pl.BlockSpec((1, C, ti, W), lambda b, i: (b, 0, i, 0)),
                pl.BlockSpec((C // 2, C), lambda b, i: (0, 0)),
                pl.BlockSpec((C // 2, 1), lambda b, i: (0, 0)),
                pl.BlockSpec((C, C // 2), lambda b, i: (0, 0)),
                pl.BlockSpec((C, 1), lambda b, i: (0, 0)),
            ],
            out_specs=pl.BlockSpec((1, C, ti, W), lambda b, i: (b, 0, i, 0)),
        ),
        compiler_params=pltpu.CompilerParams(
            dimension_semantics=("parallel", "parallel"),
            vmem_limit_bytes=vmem_limit),
    )(xr, x, w1_eff, b1_col, w2_f, b2_col)
    return out


# ----------------------------------------------------------------------------
# Full-fidelity pure-JAX reference (real upsample + Haar DWT + concat + convs),
# mirroring the PyTorch forward, to validate the algebraic collapse + kernel.
# ----------------------------------------------------------------------------
def reference_forward(x, w1, b1, w2, b2):
    B, C, H, W = x.shape
    xr = x.reshape(B, H, W, C)
    xperm = jnp.transpose(xr, (0, 3, 2, 1))                     # (B, C, W, H)
    xup = jnp.repeat(jnp.repeat(xperm, 2, axis=2), 2, axis=3)   # (B, C, 2W, 2H)
    lo0, lo1, hi0, hi1 = _haar_dwt_matrices(2 * W, 2 * H)
    hp = jax.lax.Precision.HIGHEST
    L = jnp.einsum('ij,bcjk->bcik', lo0, xup, precision=hp)
    Hm = jnp.einsum('ij,bcjk->bcik', hi0, xup, precision=hp)
    LL = jnp.einsum('bcik,kj->bcij', L, lo1, precision=hp)
    LH = jnp.einsum('bcik,kj->bcij', L, hi1, precision=hp)
    HL = jnp.einsum('bcik,kj->bcij', Hm, lo1, precision=hp)
    HH = jnp.einsum('bcik,kj->bcij', Hm, hi1, precision=hp)
    y = jnp.concatenate([LL, LH + HL + HH], axis=1)             # (B, 2C, W, H)
    h1 = jnp.maximum(
        jnp.einsum('oc,bcwh->bowh', w1, y, precision=hp)
        + b1[None, :, None, None], 0.0)
    att = jax.nn.sigmoid(
        jnp.einsum('oc,bcwh->bowh', w2, h1, precision=hp)
        + b2[None, :, None, None])                              # (B, C, W, H)
    return x * att                                              # H == W


if __name__ == "__main__":
    def _run_case(key, B, C, H, W):
        kx, k1, kb1, k2, kb2 = jax.random.split(key, 5)
        x = jax.random.normal(kx, (B, C, H, W), dtype=jnp.float32)
        # fc weights: Conv2d(2C, C//2, 1) and Conv2d(C//2, C, 1), with biases.
        w1 = jax.random.normal(k1, (C // 2, 2 * C), dtype=jnp.float32) * 0.3
        b1 = jax.random.normal(kb1, (C // 2,), dtype=jnp.float32) * 0.1
        w2 = jax.random.normal(k2, (C, C // 2), dtype=jnp.float32) * 0.3
        b2 = jax.random.normal(kb2, (C,), dtype=jnp.float32) * 0.1

        y = jax.block_until_ready(waveletattspace_forward(x, w1, b1, w2, b2))
        y_ref = jax.block_until_ready(reference_forward(x, w1, b1, w2, b2))

        assert y.shape == (B, C, H, W)
        assert jnp.allclose(y, y_ref, atol=1e-3, rtol=1e-3), \
            f"mismatch vs reference for shape {(B, C, H, W)}"

    root = jax.random.PRNGKey(0)
    k0, k1 = jax.random.split(root)
    _run_case(k0, 2, 4, 16, 16)    # primary small test (single i-tile per image)
    _run_case(k1, 1, 6, 32, 32)    # multi-tile path (exercises i index_map + TC split)
    print("KERNEL_OK")
</pallas_src>

<mosaic_0001>
module attributes {stable_mosaic.version = 11 : i64} {
  func.func @kernel(%arg0: i32, %arg1: i32, %arg2: memref<1x16x16x4xf32, #tpu.memory_space<vmem>>, %arg3: memref<1x4x16x16xf32, #tpu.memory_space<vmem>>, %arg4: memref<2x4xf32, #tpu.memory_space<vmem>>, %arg5: memref<2x1xf32, #tpu.memory_space<vmem>>, %arg6: memref<4x2xf32, #tpu.memory_space<vmem>>, %arg7: memref<4x1xf32, #tpu.memory_space<vmem>>, %arg8: memref<1x4x16x16xf32, #tpu.memory_space<vmem>>) attributes {dimension_semantics = [#tpu.dimension_semantics<parallel>, #tpu.dimension_semantics<parallel>], iteration_bounds = array<i64: 2, 1>, scalar_prefetch = 0 : i64, scratch_operands = 0 : i64, tpu.core_type = #tpu.core_type<tc>, window_params = [{transform_indices = @transform_0, window_bounds = array<i64: 1, 16, 16, 4>}, {transform_indices = @transform_1, window_bounds = array<i64: 1, 4, 16, 16>}, {pipeline_mode = #tpu.pipeline_mode<synchronous>, transform_indices = @transform_2, window_bounds = array<i64: 2, 4>}, {pipeline_mode = #tpu.pipeline_mode<synchronous>, transform_indices = @transform_3, window_bounds = array<i64: 2, 1>}, {pipeline_mode = #tpu.pipeline_mode<synchronous>, transform_indices = @transform_4, window_bounds = array<i64: 4, 2>}, {pipeline_mode = #tpu.pipeline_mode<synchronous>, transform_indices = @transform_5, window_bounds = array<i64: 4, 1>}, {transform_indices = @transform_6, window_bounds = array<i64: 1, 4, 16, 16>}]} {
    %c0 = arith.constant 0 : index
    %c0_0 = arith.constant 0 : index
    %0 = vector.load %arg4[%c0, %c0_0] : memref<2x4xf32, #tpu.memory_space<vmem>>, vector<2x4xf32>
    %c0_1 = arith.constant 0 : index
    %c0_2 = arith.constant 0 : index
    %1 = vector.load %arg5[%c0_1, %c0_2] : memref<2x1xf32, #tpu.memory_space<vmem>>, vector<2x1xf32>
    %c0_3 = arith.constant 0 : index
    %c0_4 = arith.constant 0 : index
    %2 = vector.load %arg6[%c0_3, %c0_4] : memref<4x2xf32, #tpu.memory_space<vmem>>, vector<4x2xf32>
    %c0_5 = arith.constant 0 : index
    %c0_6 = arith.constant 0 : index
    %3 = vector.load %arg7[%c0_5, %c0_6] : memref<4x1xf32, #tpu.memory_space<vmem>>, vector<4x1xf32>
    %c0_7 = arith.constant 0 : index
    %c0_8 = arith.constant 0 : index
    %c0_9 = arith.constant 0 : index
    %c0_10 = arith.constant 0 : index
    %4 = vector.load %arg2[%c0_7, %c0_8, %c0_9, %c0_10] : memref<1x16x16x4xf32, #tpu.memory_space<vmem>>, vector<1x16x1x4xf32>
    %5 = vector.shape_cast %4 : vector<1x16x1x4xf32> to vector<16x4xf32>
    %cst = arith.constant dense<0.000000e+00> : vector<2x16xf32>
    %6 = tpu.matmul %0, %5, %cst {dimension_numbers = #tpu.dot_dimension_numbers<[1], [1], [0], [0], [0, 0, 1, 0], [], []>} : vector<2x4xf32>, vector<16x4xf32>, vector<2x16xf32> -> vector<2x16xf32>
    %7 = vector.broadcast %1 : vector<2x1xf32> to vector<2x16xf32>
    %8 = arith.addf %6, %7 : vector<2x16xf32>
    %cst_11 = arith.constant 0.000000e+00 : f32
    %9 = vector.broadcast %cst_11 : f32 to vector<2x16xf32>
    %10 = arith.maximumf %8, %9 : vector<2x16xf32>
    %cst_12 = arith.constant dense<0.000000e+00> : vector<4x16xf32>
    %11 = tpu.matmul %2, %10, %cst_12 {dimension_numbers = #tpu.dot_dimension_numbers<[1], [0], [0], [1], [0, 0, 1, 1], [], []>} : vector<4x2xf32>, vector<2x16xf32>, vector<4x16xf32> -> vector<4x16xf32>
    %12 = vector.broadcast %3 : vector<4x1xf32> to vector<4x16xf32>
    %13 = arith.addf %11, %12 : vector<4x16xf32>
    %14 = arith.negf %13 : vector<4x16xf32>
    %15 = math.exp %14 : vector<4x16xf32>
    %cst_13 = arith.constant 1.000000e+00 : f32
    %16 = vector.broadcast %cst_13 : f32 to vector<4x16xf32>
    %17 = arith.addf %16, %15 : vector<4x16xf32>
    %18 = arith.divf %16, %17 : vector<4x16xf32>
    %c0_14 = arith.constant 0 : index
    %c0_15 = arith.constant 0 : index
    %c0_16 = arith.constant 0 : index
    %c0_17 = arith.constant 0 : index
    %19 = vector.load %arg3[%c0_14, %c0_15, %c0_16, %c0_17] : memref<1x4x16x16xf32, #tpu.memory_space<vmem>>, vector<1x4x1x16xf32>
    %20 = vector.shape_cast %19 : vector<1x4x1x16xf32> to vector<4x16xf32>
    %21 = arith.mulf %20, %18 : vector<4x16xf32>
    %c0_18 = arith.constant 0 : index
    %c0_19 = arith.constant 0 : index
    %c0_20 = arith.constant 0 : index
    %c0_21 = arith.constant 0 : index
    %22 = vector.load %arg8[%c0_18, %c0_19, %c0_20, %c0_21] : memref<1x4x16x16xf32, #tpu.memory_space<vmem>>, vector<1x4x1x16xf32>
    %23 = vector.shape_cast %22 : vector<1x4x1x16xf32> to vector<4x16xf32>
    %24 = vector.shape_cast %21 : vector<4x16xf32> to vector<1x4x1x16xf32>
    tpu.vector_store %arg8[%c0_18, %c0_19, %c0_20, %c0_21], %24 {strides = array<i32>} : memref<1x4x16x16xf32, #tpu.memory_space<vmem>>, vector<1x4x1x16xf32>,
    %c0_22 = arith.constant 0 : index
    %c0_23 = arith.constant 0 : index
    %c1 = arith.constant 1 : index
    %c0_24 = arith.constant 0 : index
    %25 = vector.load %arg2[%c0_22, %c0_23, %c1, %c0_24] : memref<1x16x16x4xf32, #tpu.memory_space<vmem>>, vector<1x16x1x4xf32>
    %26 = vector.shape_cast %25 : vector<1x16x1x4xf32> to vector<16x4xf32>
    %cst_25 = arith.constant dense<0.000000e+00> : vector<2x16xf32>
    %27 = tpu.matmul %0, %26, %cst_25 {dimension_numbers = #tpu.dot_dimension_numbers<[1], [1], [0], [0], [0, 0, 1, 0], [], []>} : vector<2x4xf32>, vector<16x4xf32>, vector<2x16xf32> -> vector<2x16xf32>
    %28 = vector.broadcast %1 : vector<2x1xf32> to vector<2x16xf32>
    %29 = arith.addf %27, %28 : vector<2x16xf32>
    %cst_26 = arith.constant 0.000000e+00 : f32
    %30 = vector.broadcast %cst_26 : f32 to vector<2x16xf32>
    %31 = arith.maximumf %29, %30 : vector<2x16xf32>
    %cst_27 = arith.constant dense<0.000000e+00> : vector<4x16xf32>
    %32 = tpu.matmul %2, %31, %cst_27 {dimension_numbers = #tpu.dot_dimension_numbers<[1], [0], [0], [1], [0, 0, 1, 1], [], []>} : vector<4x2xf32>, vector<2x16xf32>, vector<4x16xf32> -> vector<4x16xf32>
    %33 = vector.broadcast %3 : vector<4x1xf32> to vector<4x16xf32>
    %34 = arith.addf %32, %33 : vector<4x16xf32>
    %35 = arith.negf %34 : vector<4x16xf32>
    %36 = math.exp %35 : vector<4x16xf32>
    %cst_28 = arith.constant 1.000000e+00 : f32
    %37 = vector.broadcast %cst_28 : f32 to vector<4x16xf32>
    %38 = arith.addf %37, %36 : vector<4x16xf32>
    %39 = arith.divf %37, %38 : vector<4x16xf32>
    %c0_29 = arith.constant 0 : index
    %c0_30 = arith.constant 0 : index
    %c1_31 = arith.constant 1 : index
    %c0_32 = arith.constant 0 : index
    %40 = vector.load %arg3[%c0_29, %c0_30, %c1_31, %c0_32] : memref<1x4x16x16xf32, #tpu.memory_space<vmem>>, vector<1x4x1x16xf32>
    %41 = vector.shape_cast %40 : vector<1x4x1x16xf32> to vector<4x16xf32>
    %42 = arith.mulf %41, %39 : vector<4x16xf32>
    %c0_33 = arith.constant 0 : index
    %c0_34 = arith.constant 0 : index
    %c1_35 = arith.constant 1 : index
    %c0_36 = arith.constant 0 : index
    %43 = vector.load %arg8[%c0_33, %c0_34, %c1_35, %c0_36] : memref<1x4x16x16xf32, #tpu.memory_space<vmem>>, vector<1x4x1x16xf32>
    %44 = vector.shape_cast %43 : vector<1x4x1x16xf32> to vector<4x16xf32>
    %45 = vector.shape_cast %42 : vector<4x16xf32> to vector<1x4x1x16xf32>
    tpu.vector_store %arg8[%c0_33, %c0_34, %c1_35, %c0_36], %45 {strides = array<i32>} : memref<1x4x16x16xf32, #tpu.memory_space<vmem>>, vector<1x4x1x16xf32>,
    %c0_37 = arith.constant 0 : index
    %c0_38 = arith.constant 0 : index
    %c2 = arith.constant 2 : index
    %c0_39 = arith.constant 0 : index
    %46 = vector.load %arg2[%c0_37, %c0_38, %c2, %c0_39] : memref<1x16x16x4xf32, #tpu.memory_space<vmem>>, vector<1x16x1x4xf32>
    %47 = vector.shape_cast %46 : vector<1x16x1x4xf32> to vector<16x4xf32>
    %cst_40 = arith.constant dense<0.000000e+00> : vector<2x16xf32>
    %48 = tpu.matmul %0, %47, %cst_40 {dimension_numbers = #tpu.dot_dimension_numbers<[1], [1], [0], [0], [0, 0, 1, 0], [], []>} : vector<2x4xf32>, vector<16x4xf32>, vector<2x16xf32> -> vector<2x16xf32>
    %49 = vector.broadcast %1 : vector<2x1xf32> to vector<2x16xf32>
    %50 = arith.addf %48, %49 : vector<2x16xf32>
    %cst_41 = arith.constant 0.000000e+00 : f32
    %51 = vector.broadcast %cst_41 : f32 to vector<2x16xf32>
    %52 = arith.maximumf %50, %51 : vector<2x16xf32>
    %cst_42 = arith.constant dense<0.000000e+00> : vector<4x16xf32>
    %53 = tpu.matmul %2, %52, %cst_42 {dimension_numbers = #tpu.dot_dimension_numbers<[1], [0], [0], [1], [0, 0, 1, 1], [], []>} : vector<4x2xf32>, vector<2x16xf32>, vector<4x16xf32> -> vector<4x16xf32>
    %54 = vector.broadcast %3 : vector<4x1xf32> to vector<4x16xf32>
    %55 = arith.addf %53, %54 : vector<4x16xf32>
    %56 = arith.negf %55 : vector<4x16xf32>
    %57 = math.exp %56 : vector<4x16xf32>
    %cst_43 = arith.constant 1.000000e+00 : f32
    %58 = vector.broadcast %cst_43 : f32 to vector<4x16xf32>
    %59 = arith.addf %58, %57 : vector<4x16xf32>
    %60 = arith.divf %58, %59 : vector<4x16xf32>
    %c0_44 = arith.constant 0 : index
    %c0_45 = arith.constant 0 : index
    %c2_46 = arith.constant 2 : index
    %c0_47 = arith.constant 0 : index
    %61 = vector.load %arg3[%c0_44, %c0_45, %c2_46, %c0_47] : memref<1x4x16x16xf32, #tpu.memory_space<vmem>>, vector<1x4x1x16xf32>
    %62 = vector.shape_cast %61 : vector<1x4x1x16xf32> to vector<4x16xf32>
    %63 = arith.mulf %62, %60 : vector<4x16xf32>
    %c0_48 = arith.constant 0 : index
    %c0_49 = arith.constant 0 : index
    %c2_50 = arith.constant 2 : index
    %c0_51 = arith.constant 0 : index
    %64 = vector.load %arg8[%c0_48, %c0_49, %c2_50, %c0_51] : memref<1x4x16x16xf32, #tpu.memory_space<vmem>>, vector<1x4x1x16xf32>
    %65 = vector.shape_cast %64 : vector<1x4x1x16xf32> to vector<4x16xf32>
    %66 = vector.shape_cast %63 : vector<4x16xf32> to vector<1x4x1x16xf32>
    tpu.vector_store %arg8[%c0_48, %c0_49, %c2_50, %c0_51], %66 {strides = array<i32>} : memref<1x4x16x16xf32, #tpu.memory_space<vmem>>, vector<1x4x1x16xf32>,
    %c0_52 = arith.constant 0 : index
    %c0_53 = arith.constant 0 : index
    %c3 = arith.constant 3 : index
    %c0_54 = arith.constant 0 : index
    %67 = vector.load %arg2[%c0_52, %c0_53, %c3, %c0_54] : memref<1x16x16x4xf32, #tpu.memory_space<vmem>>, vector<1x16x1x4xf32>
    %68 = vector.shape_cast %67 : vector<1x16x1x4xf32> to vector<16x4xf32>
    %cst_55 = arith.constant dense<0.000000e+00> : vector<2x16xf32>
    %69 = tpu.matmul %0, %68, %cst_55 {dimension_numbers = #tpu.dot_dimension_numbers<[1], [1], [0], [0], [0, 0, 1, 0], [], []>} : vector<2x4xf32>, vector<16x4xf32>, vector<2x16xf32> -> vector<2x16xf32>
    %70 = vector.broadcast %1 : vector<2x1xf32> to vector<2x16xf32>
    %71 = arith.addf %69, %70 : vector<2x16xf32>
    %cst_56 = arith.constant 0.000000e+00 : f32
    %72 = vector.broadcast %cst_56 : f32 to vector<2x16xf32>
    %73 = arith.maximumf %71, %72 : vector<2x16xf32>
    %cst_57 = arith.constant dense<0.000000e+00> : vector<4x16xf32>
    %74 = tpu.matmul %2, %73, %cst_57 {dimension_numbers = #tpu.dot_dimension_numbers<[1], [0], [0], [1], [0, 0, 1, 1], [], []>} : vector<4x2xf32>, vector<2x16xf32>, vector<4x16xf32> -> vector<4x16xf32>
    %75 = vector.broadcast %3 : vector<4x1xf32> to vector<4x16xf32>
    %76 = arith.addf %74, %75 : vector<4x16xf32>
    %77 = arith.negf %76 : vector<4x16xf32>
    %78 = math.exp %77 : vector<4x16xf32>
    %cst_58 = arith.constant 1.000000e+00 : f32
    %79 = vector.broadcast %cst_58 : f32 to vector<4x16xf32>
    %80 = arith.addf %79, %78 : vector<4x16xf32>
    %81 = arith.divf %79, %80 : vector<4x16xf32>
    %c0_59 = arith.constant 0 : index
    %c0_60 = arith.constant 0 : index
    %c3_61 = arith.constant 3 : index
    %c0_62 = arith.constant 0 : index
    %82 = vector.load %arg3[%c0_59, %c0_60, %c3_61, %c0_62] : memref<1x4x16x16xf32, #tpu.memory_space<vmem>>, vector<1x4x1x16xf32>
    %83 = vector.shape_cast %82 : vector<1x4x1x16xf32> to vector<4x16xf32>
    %84 = arith.mulf %83, %81 : vector<4x16xf32>
    %c0_63 = arith.constant 0 : index
    %c0_64 = arith.constant 0 : index
    %c3_65 = arith.constant 3 : index
    %c0_66 = arith.constant 0 : index
    %85 = vector.load %arg8[%c0_63, %c0_64, %c3_65, %c0_66] : memref<1x4x16x16xf32, #tpu.memory_space<vmem>>, vector<1x4x1x16xf32>
    %86 = vector.shape_cast %85 : vector<1x4x1x16xf32> to vector<4x16xf32>
    %87 = vector.shape_cast %84 : vector<4x16xf32> to vector<1x4x1x16xf32>
    tpu.vector_store %arg8[%c0_63, %c0_64, %c3_65, %c0_66], %87 {strides = array<i32>} : memref<1x4x16x16xf32, #tpu.memory_space<vmem>>, vector<1x4x1x16xf32>,
    %c0_67 = arith.constant 0 : index
    %c0_68 = arith.constant 0 : index
    %c4 = arith.constant 4 : index
    %c0_69 = arith.constant 0 : index
    %88 = vector.load %arg2[%c0_67, %c0_68, %c4, %c0_69] : memref<1x16x16x4xf32, #tpu.memory_space<vmem>>, vector<1x16x1x4xf32>
    %89 = vector.shape_cast %88 : vector<1x16x1x4xf32> to vector<16x4xf32>
    %cst_70 = arith.constant dense<0.000000e+00> : vector<2x16xf32>
    %90 = tpu.matmul %0, %89, %cst_70 {dimension_numbers = #tpu.dot_dimension_numbers<[1], [1], [0], [0], [0, 0, 1, 0], [], []>} : vector<2x4xf32>, vector<16x4xf32>, vector<2x16xf32> -> vector<2x16xf32>
    %91 = vector.broadcast %1 : vector<2x1xf32> to vector<2x16xf32>
    %92 = arith.addf %90, %91 : vector<2x16xf32>
    %cst_71 = arith.constant 0.000000e+00 : f32
    %93 = vector.broadcast %cst_71 : f32 to vector<2x16xf32>
    %94 = arith.maximumf %92, %93 : vector<2x16xf32>
    %cst_72 = arith.constant dense<0.000000e+00> : vector<4x16xf32>
    %95 = tpu.matmul %2, %94, %cst_72 {dimension_numbers = #tpu.dot_dimension_numbers<[1], [0], [0], [1], [0, 0, 1, 1], [], []>} : vector<4x2xf32>, vector<2x16xf32>, vector<4x16xf32> -> vector<4x16xf32>
    %96 = vector.broadcast %3 : vector<4x1xf32> to vector<4x16xf32>
    %97 = arith.addf %95, %96 : vector<4x16xf32>
    %98 = arith.negf %97 : vector<4x16xf32>
    %99 = math.exp %98 : vector<4x16xf32>
    %cst_73 = arith.constant 1.000000e+00 : f32
    %100 = vector.broadcast %cst_73 : f32 to vector<4x16xf32>
    %101 = arith.addf %100, %99 : vector<4x16xf32>
    %102 = arith.divf %100, %101 : vector<4x16xf32>
    %c0_74 = arith.constant 0 : index
    %c0_75 = arith.constant 0 : index
    %c4_76 = arith.constant 4 : index
    %c0_77 = arith.constant 0 : index
    %103 = vector.load %arg3[%c0_74, %c0_75, %c4_76, %c0_77] : memref<1x4x16x16xf32, #tpu.memory_space<vmem>>, vector<1x4x1x16xf32>
    %104 = vector.shape_cast %103 : vector<1x4x1x16xf32> to vector<4x16xf32>
    %105 = arith.mulf %104, %102 : vector<4x16xf32>
    %c0_78 = arith.constant 0 : index
    %c0_79 = arith.constant 0 : index
    %c4_80 = arith.constant 4 : index
    %c0_81 = arith.constant 0 : index
    %106 = vector.load %arg8[%c0_78, %c0_79, %c4_80, %c0_81] : memref<1x4x16x16xf32, #tpu.memory_space<vmem>>, vector<1x4x1x16xf32>
    %107 = vector.shape_cast %106 : vector<1x4x1x16xf32> to vector<4x16xf32>
    %108 = vector.shape_cast %105 : vector<4x16xf32> to vector<1x4x1x16xf32>
    tpu.vector_store %arg8[%c0_78, %c0_79, %c4_80, %c0_81], %108 {strides = array<i32>} : memref<1x4x16x16xf32, #tpu.memory_space<vmem>>, vector<1x4x1x16xf32>,
    %c0_82 = arith.constant 0 : index
    %c0_83 = arith.constant 0 : index
    %c5 = arith.constant 5 : index
    %c0_84 = arith.constant 0 : index
    %109 = vector.load %arg2[%c0_82, %c0_83, %c5, %c0_84] : memref<1x16x16x4xf32, #tpu.memory_space<vmem>>, vector<1x16x1x4xf32>
    %110 = vector.shape_cast %109 : vector<1x16x1x4xf32> to vector<16x4xf32>
    %cst_85 = arith.constant dense<0.000000e+00> : vector<2x16xf32>
    %111 = tpu.matmul %0, %110, %cst_85 {dimension_numbers = #tpu.dot_dimension_numbers<[1], [1], [0], [0], [0, 0, 1, 0], [], []>} : vector<2x4xf32>, vector<16x4xf32>, vector<2x16xf32> -> vector<2x16xf32>
    %112 = vector.broadcast %1 : vector<2x1xf32> to vector<2x16xf32>
    %113 = arith.addf %111, %112 : vector<2x16xf32>
    %cst_86 = arith.constant 0.000000e+00 : f32
    %114 = vector.broadcast %cst_86 : f32 to vector<2x16xf32>
    %115 = arith.maximumf %113, %114 : vector<2x16xf32>
    %cst_87 = arith.constant dense<0.000000e+00> : vector<4x16xf32>
    %116 = tpu.matmul %2, %115, %cst_87 {dimension_numbers = #tpu.dot_dimension_numbers<[1], [0], [0], [1], [0, 0, 1, 1], [], []>} : vector<4x2xf32>, vector<2x16xf32>, vector<4x16xf32> -> vector<4x16xf32>
    %117 = vector.broadcast %3 : vector<4x1xf32> to vector<4x16xf32>
    %118 = arith.addf %116, %117 : vector<4x16xf32>
    %119 = arith.negf %118 : vector<4x16xf32>
    %120 = math.exp %119 : vector<4x16xf32>
    %cst_88 = arith.constant 1.000000e+00 : f32
    %121 = vector.broadcast %cst_88 : f32 to vector<4x16xf32>
    %122 = arith.addf %121, %120 : vector<4x16xf32>
    %123 = arith.divf %121, %122 : vector<4x16xf32>
    %c0_89 = arith.constant 0 : index
    %c0_90 = arith.constant 0 : index
    %c5_91 = arith.constant 5 : index
    %c0_92 = arith.constant 0 : index
    %124 = vector.load %arg3[%c0_89, %c0_90, %c5_91, %c0_92] : memref<1x4x16x16xf32, #tpu.memory_space<vmem>>, vector<1x4x1x16xf32>
    %125 = vector.shape_cast %124 : vector<1x4x1x16xf32> to vector<4x16xf32>
    %126 = arith.mulf %125, %123 : vector<4x16xf32>
    %c0_93 = arith.constant 0 : index
    %c0_94 = arith.constant 0 : index
    %c5_95 = arith.constant 5 : index
    %c0_96 = arith.constant 0 : index
    %127 = vector.load %arg8[%c0_93, %c0_94, %c5_95, %c0_96] : memref<1x4x16x16xf32, #tpu.memory_space<vmem>>, vector<1x4x1x16xf32>
    %128 = vector.shape_cast %127 : vector<1x4x1x16xf32> to vector<4x16xf32>
    %129 = vector.shape_cast %126 : vector<4x16xf32> to vector<1x4x1x16xf32>
    tpu.vector_store %arg8[%c0_93, %c0_94, %c5_95, %c0_96], %129 {strides = array<i32>} : memref<1x4x16x16xf32, #tpu.memory_space<vmem>>, vector<1x4x1x16xf32>,
    %c0_97 = arith.constant 0 : index
    %c0_98 = arith.constant 0 : index
    %c6 = arith.constant 6 : index
    %c0_99 = arith.constant 0 : index
    %130 = vector.load %arg2[%c0_97, %c0_98, %c6, %c0_99] : memref<1x16x16x4xf32, #tpu.memory_space<vmem>>, vector<1x16x1x4xf32>
    %131 = vector.shape_cast %130 : vector<1x16x1x4xf32> to vector<16x4xf32>
    %cst_100 = arith.constant dense<0.000000e+00> : vector<2x16xf32>
    %132 = tpu.matmul %0, %131, %cst_100 {dimension_numbers = #tpu.dot_dimension_numbers<[1], [1], [0], [0], [0, 0, 1, 0], [], []>} : vector<2x4xf32>, vector<16x4xf32>, vector<2x16xf32> -> vector<2x16xf32>
    %133 = vector.broadcast %1 : vector<2x1xf32> to vector<2x16xf32>
    %134 = arith.addf %132, %133 : vector<2x16xf32>
    %cst_101 = arith.constant 0.000000e+00 : f32
    %135 = vector.broadcast %cst_101 : f32 to vector<2x16xf32>
    %136 = arith.maximumf %134, %135 : vector<2x16xf32>
    %cst_102 = arith.constant dense<0.000000e+00> : vector<4x16xf32>
    %137 = tpu.matmul %2, %136, %cst_102 {dimension_numbers = #tpu.dot_dimension_numbers<[1], [0], [0], [1], [0, 0, 1, 1], [], []>} : vector<4x2xf32>, vector<2x16xf32>, vector<4x16xf32> -> vector<4x16xf32>
    %138 = vector.broadcast %3 : vector<4x1xf32> to vector<4x16xf32>
    %139 = arith.addf %137, %138 : vector<4x16xf32>
    %140 = arith.negf %139 : vector<4x16xf32>
    %141 = math.exp %140 : vector<4x16xf32>
    %cst_103 = arith.constant 1.000000e+00 : f32
    %142 = vector.broadcast %cst_103 : f32 to vector<4x16xf32>
    %143 = arith.addf %142, %141 : vector<4x16xf32>
    %144 = arith.divf %142, %143 : vector<4x16xf32>
    %c0_104 = arith.constant 0 : index
    %c0_105 = arith.constant 0 : index
    %c6_106 = arith.constant 6 : index
    %c0_107 = arith.constant 0 : index
    %145 = vector.load %arg3[%c0_104, %c0_105, %c6_106, %c0_107] : memref<1x4x16x16xf32, #tpu.memory_space<vmem>>, vector<1x4x1x16xf32>
    %146 = vector.shape_cast %145 : vector<1x4x1x16xf32> to vector<4x16xf32>
    %147 = arith.mulf %146, %144 : vector<4x16xf32>
    %c0_108 = arith.constant 0 : index
    %c0_109 = arith.constant 0 : index
    %c6_110 = arith.constant 6 : index
    %c0_111 = arith.constant 0 : index
    %148 = vector.load %arg8[%c0_108, %c0_109, %c6_110, %c0_111] : memref<1x4x16x16xf32, #tpu.memory_space<vmem>>, vector<1x4x1x16xf32>
    %149 = vector.shape_cast %148 : vector<1x4x1x16xf32> to vector<4x16xf32>
    %150 = vector.shape_cast %147 : vector<4x16xf32> to vector<1x4x1x16xf32>
    tpu.vector_store %arg8[%c0_108, %c0_109, %c6_110, %c0_111], %150 {strides = array<i32>} : memref<1x4x16x16xf32, #tpu.memory_space<vmem>>, vector<1x4x1x16xf32>,
    %c0_112 = arith.constant 0 : index
    %c0_113 = arith.constant 0 : index
    %c7 = arith.constant 7 : index
    %c0_114 = arith.constant 0 : index
    %151 = vector.load %arg2[%c0_112, %c0_113, %c7, %c0_114] : memref<1x16x16x4xf32, #tpu.memory_space<vmem>>, vector<1x16x1x4xf32>
    %152 = vector.shape_cast %151 : vector<1x16x1x4xf32> to vector<16x4xf32>
    %cst_115 = arith.constant dense<0.000000e+00> : vector<2x16xf32>
    %153 = tpu.matmul %0, %152, %cst_115 {dimension_numbers = #tpu.dot_dimension_numbers<[1], [1], [0], [0], [0, 0, 1, 0], [], []>} : vector<2x4xf32>, vector<16x4xf32>, vector<2x16xf32> -> vector<2x16xf32>
    %154 = vector.broadcast %1 : vector<2x1xf32> to vector<2x16xf32>
    %155 = arith.addf %153, %154 : vector<2x16xf32>
    %cst_116 = arith.constant 0.000000e+00 : f32
    %156 = vector.broadcast %cst_116 : f32 to vector<2x16xf32>
    %157 = arith.maximumf %155, %156 : vector<2x16xf32>
    %cst_117 = arith.constant dense<0.000000e+00> : vector<4x16xf32>
    %158 = tpu.matmul %2, %157, %cst_117 {dimension_numbers = #tpu.dot_dimension_numbers<[1], [0], [0], [1], [0, 0, 1, 1], [], []>} : vector<4x2xf32>, vector<2x16xf32>, vector<4x16xf32> -> vector<4x16xf32>
    %159 = vector.broadcast %3 : vector<4x1xf32> to vector<4x16xf32>
    %160 = arith.addf %158, %159 : vector<4x16xf32>
    %161 = arith.negf %160 : vector<4x16xf32>
    %162 = math.exp %161 : vector<4x16xf32>
    %cst_118 = arith.constant 1.000000e+00 : f32
    %163 = vector.broadcast %cst_118 : f32 to vector<4x16xf32>
    %164 = arith.addf %163, %162 : vector<4x16xf32>
    %165 = arith.divf %163, %164 : vector<4x16xf32>
    %c0_119 = arith.constant 0 : index
    %c0_120 = arith.constant 0 : index
    %c7_121 = arith.constant 7 : index
    %c0_122 = arith.constant 0 : index
    %166 = vector.load %arg3[%c0_119, %c0_120, %c7_121, %c0_122] : memref<1x4x16x16xf32, #tpu.memory_space<vmem>>, vector<1x4x1x16xf32>
    %167 = vector.shape_cast %166 : vector<1x4x1x16xf32> to vector<4x16xf32>
    %168 = arith.mulf %167, %165 : vector<4x16xf32>
    %c0_123 = arith.constant 0 : index
    %c0_124 = arith.constant 0 : index
    %c7_125 = arith.constant 7 : index
    %c0_126 = arith.constant 0 : index
    %169 = vector.load %arg8[%c0_123, %c0_124, %c7_125, %c0_126] : memref<1x4x16x16xf32, #tpu.memory_space<vmem>>, vector<1x4x1x16xf32>
    %170 = vector.shape_cast %169 : vector<1x4x1x16xf32> to vector<4x16xf32>
    %171 = vector.shape_cast %168 : vector<4x16xf32> to vector<1x4x1x16xf32>
    tpu.vector_store %arg8[%c0_123, %c0_124, %c7_125, %c0_126], %171 {strides = array<i32>} : memref<1x4x16x16xf32, #tpu.memory_space<vmem>>, vector<1x4x1x16xf32>,
    %c0_127 = arith.constant 0 : index
    %c0_128 = arith.constant 0 : index
    %c8 = arith.constant 8 : index
    %c0_129 = arith.constant 0 : index
    %172 = vector.load %arg2[%c0_127, %c0_128, %c8, %c0_129] : memref<1x16x16x4xf32, #tpu.memory_space<vmem>>, vector<1x16x1x4xf32>
    %173 = vector.shape_cast %172 : vector<1x16x1x4xf32> to vector<16x4xf32>
    %cst_130 = arith.constant dense<0.000000e+00> : vector<2x16xf32>
    %174 = tpu.matmul %0, %173, %cst_130 {dimension_numbers = #tpu.dot_dimension_numbers<[1], [1], [0], [0], [0, 0, 1, 0], [], []>} : vector<2x4xf32>, vector<16x4xf32>, vector<2x16xf32> -> vector<2x16xf32>
    %175 = vector.broadcast %1 : vector<2x1xf32> to vector<2x16xf32>
    %176 = arith.addf %174, %175 : vector<2x16xf32>
    %cst_131 = arith.constant 0.000000e+00 : f32
    %177 = vector.broadcast %cst_131 : f32 to vector<2x16xf32>
    %178 = arith.maximumf %176, %177 : vector<2x16xf32>
    %cst_132 = arith.constant dense<0.000000e+00> : vector<4x16xf32>
    %179 = tpu.matmul %2, %178, %cst_132 {dimension_numbers = #tpu.dot_dimension_numbers<[1], [0], [0], [1], [0, 0, 1, 1], [], []>} : vector<4x2xf32>, vector<2x16xf32>, vector<4x16xf32> -> vector<4x16xf32>
    %180 = vector.broadcast %3 : vector<4x1xf32> to vector<4x16xf32>
    %181 = arith.addf %179, %180 : vector<4x16xf32>
    %182 = arith.negf %181 : vector<4x16xf32>
    %183 = math.exp %182 : vector<4x16xf32>
    %cst_133 = arith.constant 1.000000e+00 : f32
    %184 = vector.broadcast %cst_133 : f32 to vector<4x16xf32>
    %185 = arith.addf %184, %183 : vector<4x16xf32>
    %186 = arith.divf %184, %185 : vector<4x16xf32>
    %c0_134 = arith.constant 0 : index
    %c0_135 = arith.constant 0 : index
    %c8_136 = arith.constant 8 : index
    %c0_137 = arith.constant 0 : index
    %187 = vector.load %arg3[%c0_134, %c0_135, %c8_136, %c0_137] : memref<1x4x16x16xf32, #tpu.memory_space<vmem>>, vector<1x4x1x16xf32>
    %188 = vector.shape_cast %187 : vector<1x4x1x16xf32> to vector<4x16xf32>
    %189 = arith.mulf %188, %186 : vector<4x16xf32>
    %c0_138 = arith.constant 0 : index
    %c0_139 = arith.constant 0 : index
    %c8_140 = arith.constant 8 : index
    %c0_141 = arith.constant 0 : index
    %190 = vector.load %arg8[%c0_138, %c0_139, %c8_140, %c0_141] : memref<1x4x16x16xf32, #tpu.memory_space<vmem>>, vector<1x4x1x16xf32>
    %191 = vector.shape_cast %190 : vector<1x4x1x16xf32> to vector<4x16xf32>
    %192 = vector.shape_cast %189 : vector<4x16xf32> to vector<1x4x1x16xf32>
    tpu.vector_store %arg8[%c0_138, %c0_139, %c8_140, %c0_141], %192 {strides = array<i32>} : memref<1x4x16x16xf32, #tpu.memory_space<vmem>>, vector<1x4x1x16xf32>,
    %c0_142 = arith.constant 0 : index
    %c0_143 = arith.constant 0 : index
    %c9 = arith.constant 9 : index
    %c0_144 = arith.constant 0 : index
    %193 = vector.load %arg2[%c0_142, %c0_143, %c9, %c0_144] : memref<1x16x16x4xf32, #tpu.memory_space<vmem>>, vector<1x16x1x4xf32>
    %194 = vector.shape_cast %193 : vector<1x16x1x4xf32> to vector<16x4xf32>
    %cst_145 = arith.constant dense<0.000000e+00> : vector<2x16xf32>
    %195 = tpu.matmul %0, %194, %cst_145 {dimension_numbers = #tpu.dot_dimension_numbers<[1], [1], [0], [0], [0, 0, 1, 0], [], []>} : vector<2x4xf32>, vector<16x4xf32>, vector<2x16xf32> -> vector<2x16xf32>
    %196 = vector.broadcast %1 : vector<2x1xf32> to vector<2x16xf32>
    %197 = arith.addf %195, %196 : vector<2x16xf32>
    %cst_146 = arith.constant 0.000000e+00 : f32
    %198 = vector.broadcast %cst_146 : f32 to vector<2x16xf32>
    %199 = arith.maximumf %197, %198 : vector<2x16xf32>
    %cst_147 = arith.constant dense<0.000000e+00> : vector<4x16xf32>
    %200 = tpu.matmul %2, %199, %cst_147 {dimension_numbers = #tpu.dot_dimension_numbers<[1], [0], [0], [1], [0, 0, 1, 1], [], []>} : vector<4x2xf32>, vector<2x16xf32>, vector<4x16xf32> -> vector<4x16xf32>
    %201 = vector.broadcast %3 : vector<4x1xf32> to vector<4x16xf32>
    %202 = arith.addf %200, %201 : vector<4x16xf32>
    %203 = arith.negf %202 : vector<4x16xf32>
    %204 = math.exp %203 : vector<4x16xf32>
    %cst_148 = arith.constant 1.000000e+00 : f32
    %205 = vector.broadcast %cst_148 : f32 to vector<4x16xf32>
    %206 = arith.addf %205, %204 : vector<4x16xf32>
    %207 = arith.divf %205, %206 : vector<4x16xf32>
    %c0_149 = arith.constant 0 : index
    %c0_150 = arith.constant 0 : index
    %c9_151 = arith.constant 9 : index
    %c0_152 = arith.constant 0 : index
    %208 = vector.load %arg3[%c0_149, %c0_150, %c9_151, %c0_152] : memref<1x4x16x16xf32, #tpu.memory_space<vmem>>, vector<1x4x1x16xf32>
    %209 = vector.shape_cast %208 : vector<1x4x1x16xf32> to vector<4x16xf32>
    %210 = arith.mulf %209, %207 : vector<4x16xf32>
    %c0_153 = arith.constant 0 : index
    %c0_154 = arith.constant 0 : index
    %c9_155 = arith.constant 9 : index
    %c0_156 = arith.constant 0 : index
    %211 = vector.load %arg8[%c0_153, %c0_154, %c9_155, %c0_156] : memref<1x4x16x16xf32, #tpu.memory_space<vmem>>, vector<1x4x1x16xf32>
    %212 = vector.shape_cast %211 : vector<1x4x1x16xf32> to vector<4x16xf32>
    %213 = vector.shape_cast %210 : vector<4x16xf32> to vector<1x4x1x16xf32>
    tpu.vector_store %arg8[%c0_153, %c0_154, %c9_155, %c0_156], %213 {strides = array<i32>} : memref<1x4x16x16xf32, #tpu.memory_space<vmem>>, vector<1x4x1x16xf32>,
    %c0_157 = arith.constant 0 : index
    %c0_158 = arith.constant 0 : index
    %c10 = arith.constant 10 : index
    %c0_159 = arith.constant 0 : index
    %214 = vector.load %arg2[%c0_157, %c0_158, %c10, %c0_159] : memref<1x16x16x4xf32, #tpu.memory_space<vmem>>, vector<1x16x1x4xf32>
    %215 = vector.shape_cast %214 : vector<1x16x1x4xf32> to vector<16x4xf32>
    %cst_160 = arith.constant dense<0.000000e+00> : vector<2x16xf32>
    %216 = tpu.matmul %0, %215, %cst_160 {dimension_numbers = #tpu.dot_dimension_numbers<[1], [1], [0], [0], [0, 0, 1, 0], [], []>} : vector<2x4xf32>, vector<16x4xf32>, vector<2x16xf32> -> vector<2x16xf32>
    %217 = vector.broadcast %1 : vector<2x1xf32> to vector<2x16xf32>
    %218 = arith.addf %216, %217 : vector<2x16xf32>
    %cst_161 = arith.constant 0.000000e+00 : f32
    %219 = vector.broadcast %cst_161 : f32 to vector<2x16xf32>
    %220 = arith.maximumf %218, %219 : vector<2x16xf32>
    %cst_162 = arith.constant dense<0.000000e+00> : vector<4x16xf32>
    %221 = tpu.matmul %2, %220, %cst_162 {dimension_numbers = #tpu.dot_dimension_numbers<[1], [0], [0], [1], [0, 0, 1, 1], [], []>} : vector<4x2xf32>, vector<2x16xf32>, vector<4x16xf32> -> vector<4x16xf32>
    %222 = vector.broadcast %3 : vector<4x1xf32> to vector<4x16xf32>
    %223 = arith.addf %221, %222 : vector<4x16xf32>
    %224 = arith.negf %223 : vector<4x16xf32>
    %225 = math.exp %224 : vector<4x16xf32>
    %cst_163 = arith.constant 1.000000e+00 : f32
    %226 = vector.broadcast %cst_163 : f32 to vector<4x16xf32>
    %227 = arith.addf %226, %225 : vector<4x16xf32>
    %228 = arith.divf %226, %227 : vector<4x16xf32>
    %c0_164 = arith.constant 0 : index
    %c0_165 = arith.constant 0 : index
    %c10_166 = arith.constant 10 : index
    %c0_167 = arith.constant 0 : index
    %229 = vector.load %arg3[%c0_164, %c0_165, %c10_166, %c0_167] : memref<1x4x16x16xf32, #tpu.memory_space<vmem>>, vector<1x4x1x16xf32>
    %230 = vector.shape_cast %229 : vector<1x4x1x16xf32> to vector<4x16xf32>
    %231 = arith.mulf %230, %228 : vector<4x16xf32>
    %c0_168 = arith.constant 0 : index
    %c0_169 = arith.constant 0 : index
    %c10_170 = arith.constant 10 : index
    %c0_171 = arith.constant 0 : index
    %232 = vector.load %arg8[%c0_168, %c0_169, %c10_170, %c0_171] : memref<1x4x16x16xf32, #tpu.memory_space<vmem>>, vector<1x4x1x16xf32>
    %233 = vector.shape_cast %232 : vector<1x4x1x16xf32> to vector<4x16xf32>
    %234 = vector.shape_cast %231 : vector<4x16xf32> to vector<1x4x1x16xf32>
    tpu.vector_store %arg8[%c0_168, %c0_169, %c10_170, %c0_171], %234 {strides = array<i32>} : memref<1x4x16x16xf32, #tpu.memory_space<vmem>>, vector<1x4x1x16xf32>,
    %c0_172 = arith.constant 0 : index
    %c0_173 = arith.constant 0 : index
    %c11 = arith.constant 11 : index
    %c0_174 = arith.constant 0 : index
    %235 = vector.load %arg2[%c0_172, %c0_173, %c11, %c0_174] : memref<1x16x16x4xf32, #tpu.memory_space<vmem>>, vector<1x16x1x4xf32>
    %236 = vector.shape_cast %235 : vector<1x16x1x4xf32> to vector<16x4xf32>
    %cst_175 = arith.constant dense<0.000000e+00> : vector<2x16xf32>
    %237 = tpu.matmul %0, %236, %cst_175 {dimension_numbers = #tpu.dot_dimension_numbers<[1], [1], [0], [0], [0, 0, 1, 0], [], []>} : vector<2x4xf32>, vector<16x4xf32>, vector<2x16xf32> -> vector<2x16xf32>
    %238 = vector.broadcast %1 : vector<2x1xf32> to vector<2x16xf32>
    %239 = arith.addf %237, %238 : vector<2x16xf32>
    %cst_176 = arith.constant 0.000000e+00 : f32
    %240 = vector.broadcast %cst_176 : f32 to vector<2x16xf32>
    %241 = arith.maximumf %239, %240 : vector<2x16xf32>
    %cst_177 = arith.constant dense<0.000000e+00> : vector<4x16xf32>
    %242 = tpu.matmul %2, %241, %cst_177 {dimension_numbers = #tpu.dot_dimension_numbers<[1], [0], [0], [1], [0, 0, 1, 1], [], []>} : vector<4x2xf32>, vector<2x16xf32>, vector<4x16xf32> -> vector<4x16xf32>
    %243 = vector.broadcast %3 : vector<4x1xf32> to vector<4x16xf32>
    %244 = arith.addf %242, %243 : vector<4x16xf32>
    %245 = arith.negf %244 : vector<4x16xf32>
    %246 = math.exp %245 : vector<4x16xf32>
    %cst_178 = arith.constant 1.000000e+00 : f32
    %247 = vector.broadcast %cst_178 : f32 to vector<4x16xf32>
    %248 = arith.addf %247, %246 : vector<4x16xf32>
    %249 = arith.divf %247, %248 : vector<4x16xf32>
    %c0_179 = arith.constant 0 : index
    %c0_180 = arith.constant 0 : index
    %c11_181 = arith.constant 11 : index
    %c0_182 = arith.constant 0 : index
    %250 = vector.load %arg3[%c0_179, %c0_180, %c11_181, %c0_182] : memref<1x4x16x16xf32, #tpu.memory_space<vmem>>, vector<1x4x1x16xf32>
    %251 = vector.shape_cast %250 : vector<1x4x1x16xf32> to vector<4x16xf32>
    %252 = arith.mulf %251, %249 : vector<4x16xf32>
    %c0_183 = arith.constant 0 : index
    %c0_184 = arith.constant 0 : index
    %c11_185 = arith.constant 11 : index
    %c0_186 = arith.constant 0 : index
    %253 = vector.load %arg8[%c0_183, %c0_184, %c11_185, %c0_186] : memref<1x4x16x16xf32, #tpu.memory_space<vmem>>, vector<1x4x1x16xf32>
    %254 = vector.shape_cast %253 : vector<1x4x1x16xf32> to vector<4x16xf32>
    %255 = vector.shape_cast %252 : vector<4x16xf32> to vector<1x4x1x16xf32>
    tpu.vector_store %arg8[%c0_183, %c0_184, %c11_185, %c0_186], %255 {strides = array<i32>} : memref<1x4x16x16xf32, #tpu.memory_space<vmem>>, vector<1x4x1x16xf32>,
    %c0_187 = arith.constant 0 : index
    %c0_188 = arith.constant 0 : index
    %c12 = arith.constant 12 : index
    %c0_189 = arith.constant 0 : index
    %256 = vector.load %arg2[%c0_187, %c0_188, %c12, %c0_189] : memref<1x16x16x4xf32, #tpu.memory_space<vmem>>, vector<1x16x1x4xf32>
    %257 = vector.shape_cast %256 : vector<1x16x1x4xf32> to vector<16x4xf32>
    %cst_190 = arith.constant dense<0.000000e+00> : vector<2x16xf32>
    %258 = tpu.matmul %0, %257, %cst_190 {dimension_numbers = #tpu.dot_dimension_numbers<[1], [1], [0], [0], [0, 0, 1, 0], [], []>} : vector<2x4xf32>, vector<16x4xf32>, vector<2x16xf32> -> vector<2x16xf32>
    %259 = vector.broadcast %1 : vector<2x1xf32> to vector<2x16xf32>
    %260 = arith.addf %258, %259 : vector<2x16xf32>
    %cst_191 = arith.constant 0.000000e+00 : f32
    %261 = vector.broadcast %cst_191 : f32 to vector<2x16xf32>
    %262 = arith.maximumf %260, %261 : vector<2x16xf32>
    %cst_192 = arith.constant dense<0.000000e+00> : vector<4x16xf32>
    %263 = tpu.matmul %2, %262, %cst_192 {dimension_numbers = #tpu.dot_dimension_numbers<[1], [0], [0], [1], [0, 0, 1, 1], [], []>} : vector<4x2xf32>, vector<2x16xf32>, vector<4x16xf32> -> vector<4x16xf32>
    %264 = vector.broadcast %3 : vector<4x1xf32> to vector<4x16xf32>
    %265 = arith.addf %263, %264 : vector<4x16xf32>
    %266 = arith.negf %265 : vector<4x16xf32>
    %267 = math.exp %266 : vector<4x16xf32>
    %cst_193 = arith.constant 1.000000e+00 : f32
    %268 = vector.broadcast %cst_193 : f32 to vector<4x16xf32>
    %269 = arith.addf %268, %267 : vector<4x16xf32>
    %270 = arith.divf %268, %269 : vector<4x16xf32>
    %c0_194 = arith.constant 0 : index
    %c0_195 = arith.constant 0 : index
    %c12_196 = arith.constant 12 : index
    %c0_197 = arith.constant 0 : index
    %271 = vector.load %arg3[%c0_194, %c0_195, %c12_196, %c0_197] : memref<1x4x16x16xf32, #tpu.memory_space<vmem>>, vector<1x4x1x16xf32>
    %272 = vector.shape_cast %271 : vector<1x4x1x16xf32> to vector<4x16xf32>
    %273 = arith.mulf %272, %270 : vector<4x16xf32>
    %c0_198 = arith.constant 0 : index
    %c0_199 = arith.constant 0 : index
    %c12_200 = arith.constant 12 : index
    %c0_201 = arith.constant 0 : index
    %274 = vector.load %arg8[%c0_198, %c0_199, %c12_200, %c0_201] : memref<1x4x16x16xf32, #tpu.memory_space<vmem>>, vector<1x4x1x16xf32>
    %275 = vector.shape_cast %274 : vector<1x4x1x16xf32> to vector<4x16xf32>
    %276 = vector.shape_cast %273 : vector<4x16xf32> to vector<1x4x1x16xf32>
    tpu.vector_store %arg8[%c0_198, %c0_199, %c12_200, %c0_201], %276 {strides = array<i32>} : memref<1x4x16x16xf32, #tpu.memory_space<vmem>>, vector<1x4x1x16xf32>,
    %c0_202 = arith.constant 0 : index
    %c0_203 = arith.constant 0 : index
    %c13 = arith.constant 13 : index
    %c0_204 = arith.constant 0 : index
    %277 = vector.load %arg2[%c0_202, %c0_203, %c13, %c0_204] : memref<1x16x16x4xf32, #tpu.memory_space<vmem>>, vector<1x16x1x4xf32>
    %278 = vector.shape_cast %277 : vector<1x16x1x4xf32> to vector<16x4xf32>
    %cst_205 = arith.constant dense<0.000000e+00> : vector<2x16xf32>
    %279 = tpu.matmul %0, %278, %cst_205 {dimension_numbers = #tpu.dot_dimension_numbers<[1], [1], [0], [0], [0, 0, 1, 0], [], []>} : vector<2x4xf32>, vector<16x4xf32>, vector<2x16xf32> -> vector<2x16xf32>
    %280 = vector.broadcast %1 : vector<2x1xf32> to vector<2x16xf32>
    %281 = arith.addf %279, %280 : vector<2x16xf32>
    %cst_206 = arith.constant 0.000000e+00 : f32
    %282 = vector.broadcast %cst_206 : f32 to vector<2x16xf32>
    %283 = arith.maximumf %281, %282 : vector<2x16xf32>
    %cst_207 = arith.constant dense<0.000000e+00> : vector<4x16xf32>
    %284 = tpu.matmul %2, %283, %cst_207 {dimension_numbers = #tpu.dot_dimension_numbers<[1], [0], [0], [1], [0, 0, 1, 1], [], []>} : vector<4x2xf32>, vector<2x16xf32>, vector<4x16xf32> -> vector<4x16xf32>
    %285 = vector.broadcast %3 : vector<4x1xf32> to vector<4x16xf32>
    %286 = arith.addf %284, %285 : vector<4x16xf32>
    %287 = arith.negf %286 : vector<4x16xf32>
    %288 = math.exp %287 : vector<4x16xf32>
    %cst_208 = arith.constant 1.000000e+00 : f32
    %289 = vector.broadcast %cst_208 : f32 to vector<4x16xf32>
    %290 = arith.addf %289, %288 : vector<4x16xf32>
    %291 = arith.divf %289, %290 : vector<4x16xf32>
    %c0_209 = arith.constant 0 : index
    %c0_210 = arith.constant 0 : index
    %c13_211 = arith.constant 13 : index
    %c0_212 = arith.constant 0 : index
    %292 = vector.load %arg3[%c0_209, %c0_210, %c13_211, %c0_212] : memref<1x4x16x16xf32, #tpu.memory_space<vmem>>, vector<1x4x1x16xf32>
    %293 = vector.shape_cast %292 : vector<1x4x1x16xf32> to vector<4x16xf32>
    %294 = arith.mulf %293, %291 : vector<4x16xf32>
    %c0_213 = arith.constant 0 : index
    %c0_214 = arith.constant 0 : index
    %c13_215 = arith.constant 13 : index
    %c0_216 = arith.constant 0 : index
    %295 = vector.load %arg8[%c0_213, %c0_214, %c13_215, %c0_216] : memref<1x4x16x16xf32, #tpu.memory_space<vmem>>, vector<1x4x1x16xf32>
    %296 = vector.shape_cast %295 : vector<1x4x1x16xf32> to vector<4x16xf32>
    %297 = vector.shape_cast %294 : vector<4x16xf32> to vector<1x4x1x16xf32>
    tpu.vector_store %arg8[%c0_213, %c0_214, %c13_215, %c0_216], %297 {strides = array<i32>} : memref<1x4x16x16xf32, #tpu.memory_space<vmem>>, vector<1x4x1x16xf32>,
    %c0_217 = arith.constant 0 : index
    %c0_218 = arith.constant 0 : index
    %c14 = arith.constant 14 : index
    %c0_219 = arith.constant 0 : index
    %298 = vector.load %arg2[%c0_217, %c0_218, %c14, %c0_219] : memref<1x16x16x4xf32, #tpu.memory_space<vmem>>, vector<1x16x1x4xf32>
    %299 = vector.shape_cast %298 : vector<1x16x1x4xf32> to vector<16x4xf32>
    %cst_220 = arith.constant dense<0.000000e+00> : vector<2x16xf32>
    %300 = tpu.matmul %0, %299, %cst_220 {dimension_numbers = #tpu.dot_dimension_numbers<[1], [1], [0], [0], [0, 0, 1, 0], [], []>} : vector<2x4xf32>, vector<16x4xf32>, vector<2x16xf32> -> vector<2x16xf32>
    %301 = vector.broadcast %1 : vector<2x1xf32> to vector<2x16xf32>
    %302 = arith.addf %300, %301 : vector<2x16xf32>
    %cst_221 = arith.constant 0.000000e+00 : f32
    %303 = vector.broadcast %cst_221 : f32 to vector<2x16xf32>
    %304 = arith.maximumf %302, %303 : vector<2x16xf32>
    %cst_222 = arith.constant dense<0.000000e+00> : vector<4x16xf32>
    %305 = tpu.matmul %2, %304, %cst_222 {dimension_numbers = #tpu.dot_dimension_numbers<[1], [0], [0], [1], [0, 0, 1, 1], [], []>} : vector<4x2xf32>, vector<2x16xf32>, vector<4x16xf32> -> vector<4x16xf32>
    %306 = vector.broadcast %3 : vector<4x1xf32> to vector<4x16xf32>
    %307 = arith.addf %305, %306 : vector<4x16xf32>
    %308 = arith.negf %307 : vector<4x16xf32>
    %309 = math.exp %308 : vector<4x16xf32>
    %cst_223 = arith.constant 1.000000e+00 : f32
    %310 = vector.broadcast %cst_223 : f32 to vector<4x16xf32>
    %311 = arith.addf %310, %309 : vector<4x16xf32>
    %312 = arith.divf %310, %311 : vector<4x16xf32>
    %c0_224 = arith.constant 0 : index
    %c0_225 = arith.constant 0 : index
    %c14_226 = arith.constant 14 : index
    %c0_227 = arith.constant 0 : index
    %313 = vector.load %arg3[%c0_224, %c0_225, %c14_226, %c0_227] : memref<1x4x16x16xf32, #tpu.memory_space<vmem>>, vector<1x4x1x16xf32>
    %314 = vector.shape_cast %313 : vector<1x4x1x16xf32> to vector<4x16xf32>
    %315 = arith.mulf %314, %312 : vector<4x16xf32>
    %c0_228 = arith.constant 0 : index
    %c0_229 = arith.constant 0 : index
    %c14_230 = arith.constant 14 : index
    %c0_231 = arith.constant 0 : index
    %316 = vector.load %arg8[%c0_228, %c0_229, %c14_230, %c0_231] : memref<1x4x16x16xf32, #tpu.memory_space<vmem>>, vector<1x4x1x16xf32>
    %317 = vector.shape_cast %316 : vector<1x4x1x16xf32> to vector<4x16xf32>
    %318 = vector.shape_cast %315 : vector<4x16xf32> to vector<1x4x1x16xf32>
    tpu.vector_store %arg8[%c0_228, %c0_229, %c14_230, %c0_231], %318 {strides = array<i32>} : memref<1x4x16x16xf32, #tpu.memory_space<vmem>>, vector<1x4x1x16xf32>,
    %c0_232 = arith.constant 0 : index
    %c0_233 = arith.constant 0 : index
    %c15 = arith.constant 15 : index
    %c0_234 = arith.constant 0 : index
    %319 = vector.load %arg2[%c0_232, %c0_233, %c15, %c0_234] : memref<1x16x16x4xf32, #tpu.memory_space<vmem>>, vector<1x16x1x4xf32>
    %320 = vector.shape_cast %319 : vector<1x16x1x4xf32> to vector<16x4xf32>
    %cst_235 = arith.constant dense<0.000000e+00> : vector<2x16xf32>
    %321 = tpu.matmul %0, %320, %cst_235 {dimension_numbers = #tpu.dot_dimension_numbers<[1], [1], [0], [0], [0, 0, 1, 0], [], []>} : vector<2x4xf32>, vector<16x4xf32>, vector<2x16xf32> -> vector<2x16xf32>
    %322 = vector.broadcast %1 : vector<2x1xf32> to vector<2x16xf32>
    %323 = arith.addf %321, %322 : vector<2x16xf32>
    %cst_236 = arith.constant 0.000000e+00 : f32
    %324 = vector.broadcast %cst_236 : f32 to vector<2x16xf32>
    %325 = arith.maximumf %323, %324 : vector<2x16xf32>
    %cst_237 = arith.constant dense<0.000000e+00> : vector<4x16xf32>
    %326 = tpu.matmul %2, %325, %cst_237 {dimension_numbers = #tpu.dot_dimension_numbers<[1], [0], [0], [1], [0, 0, 1, 1], [], []>} : vector<4x2xf32>, vector<2x16xf32>, vector<4x16xf32> -> vector<4x16xf32>
    %327 = vector.broadcast %3 : vector<4x1xf32> to vector<4x16xf32>
    %328 = arith.addf %326, %327 : vector<4x16xf32>
    %329 = arith.negf %328 : vector<4x16xf32>
    %330 = math.exp %329 : vector<4x16xf32>
    %cst_238 = arith.constant 1.000000e+00 : f32
    %331 = vector.broadcast %cst_238 : f32 to vector<4x16xf32>
    %332 = arith.addf %331, %330 : vector<4x16xf32>
    %333 = arith.divf %331, %332 : vector<4x16xf32>
    %c0_239 = arith.constant 0 : index
    %c0_240 = arith.constant 0 : index
    %c15_241 = arith.constant 15 : index
    %c0_242 = arith.constant 0 : index
    %334 = vector.load %arg3[%c0_239, %c0_240, %c15_241, %c0_242] : memref<1x4x16x16xf32, #tpu.memory_space<vmem>>, vector<1x4x1x16xf32>
    %335 = vector.shape_cast %334 : vector<1x4x1x16xf32> to vector<4x16xf32>
    %336 = arith.mulf %335, %333 : vector<4x16xf32>
    %c0_243 = arith.constant 0 : index
    %c0_244 = arith.constant 0 : index
    %c15_245 = arith.constant 15 : index
    %c0_246 = arith.constant 0 : index
    %337 = vector.load %arg8[%c0_243, %c0_244, %c15_245, %c0_246] : memref<1x4x16x16xf32, #tpu.memory_space<vmem>>, vector<1x4x1x16xf32>
    %338 = vector.shape_cast %337 : vector<1x4x1x16xf32> to vector<4x16xf32>
    %339 = vector.shape_cast %336 : vector<4x16xf32> to vector<1x4x1x16xf32>
    tpu.vector_store %arg8[%c0_243, %c0_244, %c15_245, %c0_246], %339 {strides = array<i32>} : memref<1x4x16x16xf32, #tpu.memory_space<vmem>>, vector<1x4x1x16xf32>,
    return
  }
  func.func @transform_0(%arg0: i32, %arg1: i32) -> (i32, i32, i32, i32) {
    %c0_i32 = arith.constant 0 : i32
    %c0_i32_0 = arith.constant 0 : i32
    %c0_i32_1 = arith.constant 0 : i32
    return %arg0, %c0_i32, %arg1, %c0_i32_0 : i32, i32, i32, i32
  }
  func.func @transform_1(%arg0: i32, %arg1: i32) -> (i32, i32, i32, i32) {
    %c0_i32 = arith.constant 0 : i32
    %c0_i32_0 = arith.constant 0 : i32
    %c0_i32_1 = arith.constant 0 : i32
    return %arg0, %c0_i32, %arg1, %c0_i32_0 : i32, i32, i32, i32
  }
  func.func @transform_2(%arg0: i32, %arg1: i32) -> (i32, i32) {
    %c0_i32 = arith.constant 0 : i32
    %c0_i32_0 = arith.constant 0 : i32
    %c0_i32_1 = arith.constant 0 : i32
    return %c0_i32, %c0_i32_0 : i32, i32
  }
  func.func @transform_3(%arg0: i32, %arg1: i32) -> (i32, i32) {
    %c0_i32 = arith.constant 0 : i32
    %c0_i32_0 = arith.constant 0 : i32
    %c0_i32_1 = arith.constant 0 : i32
    return %c0_i32, %c0_i32_0 : i32, i32
  }
  func.func @transform_4(%arg0: i32, %arg1: i32) -> (i32, i32) {
    %c0_i32 = arith.constant 0 : i32
    %c0_i32_0 = arith.constant 0 : i32
    %c0_i32_1 = arith.constant 0 : i32
    return %c0_i32, %c0_i32_0 : i32, i32
  }
  func.func @transform_5(%arg0: i32, %arg1: i32) -> (i32, i32) {
    %c0_i32 = arith.constant 0 : i32
    %c0_i32_0 = arith.constant 0 : i32
    %c0_i32_1 = arith.constant 0 : i32
    return %c0_i32, %c0_i32_0 : i32, i32
  }
  func.func @transform_6(%arg0: i32, %arg1: i32) -> (i32, i32, i32, i32) {
    %c0_i32 = arith.constant 0 : i32
    %c0_i32_0 = arith.constant 0 : i32
    %c0_i32_1 = arith.constant 0 : i32
    return %arg0, %c0_i32, %arg1, %c0_i32_0 : i32, i32, i32, i32
  }
}

</mosaic_0001>

<bundles_post_ra>
// kernel: tpu_custom_call.1
= control target key start
LH: loop header
LB: loop body
LE: loop exit
PB: predicated region body
PF: predicated region fallthrough
CT: control target
= control target key end

     0   :  { %11 = vsyncpa [#allocation3], 0  ;;  %s5994_s0 = inlined_call_operand.vmem [shape: f32[2,16,16,4], index: 0, kind: input, shape index: {}]   ;;  %s5995_s1 = inlined_call_operand.vmem [shape: f32[2,4,16,16], index: 1, kind: input, shape index: {}]   ;;  %s5996_s2 = inlined_call_operand.vmem [shape: f32[2,4], index: 2, kind: input, shape index: {}]   ;;  %s5997_s3 = inlined_call_operand.vmem [shape: f32[2,1], index: 3, kind: input, shape index: {}]   ;;  %s5998_s4 = inlined_call_operand.vmem [shape: f32[4,2], index: 4, kind: input, shape index: {}]   ;;  %s5999_s5 = inlined_call_operand.vmem [shape: f32[4,1], index: 5, kind: input, shape index: {}]   ;;  %s6000_s6 = inlined_call_operand.hbm [shape: f32[2,4,16,16], index: 6, kind: output, shape index: {}]  }
   0x1   :  { %13 = vsyncpa [#allocation3 + $0x1], 0  ;;  %s4907_s21 = smov 0   ;;  %s4909_s22 = smov 0  }
   0x2   :  { %s4911_s23 = smov 0   ;;  %s4913_s24 = smov 0  }
   0x3   :  { %s4915_s25 = smov 0   ;;  %s4917_s26 = smov 0  }
   0x4 LB: > { %s4205_s27 = sadd.s32 4294967295, %s4863_s26   ;;  %s4206_s28 = sadd.s32 4294967294, %s4863_s26   ;;  %s4863_s26 = sphi %s4917_s26, %s19_s26   ;;  %s4859_s25 = sphi %s4915_s25, %s6009_s25   ;;  %s4855_s24 = sphi %s4913_s24, %s6008_s24   ;;  %s4851_s23 = sphi %s4911_s23, %s6007_s23   ;;  %s4847_s22 = sphi %s4909_s22, %s6006_s22   ;;  %s4843_s21 = sphi %s4907_s21, %s6005_s21  }
   0x5   : > { %s31_s29 = sadd.s32 1, %s4859_s25  ;;  %s180_s30 = sadd.s32 1, %s4851_s23 }
   0x6   : > { %p33_p0 = scmp.ge.s32.totalorder %s31_s29, 2  ;;  %p190_p1 = scmp.ne.s32.totalorder %s4851_s23, %s4847_s22 }
   0x7   : > { %p191_p2 = scmp.eq.s32.totalorder %s4205_s27, 1  ;;  %p196_p3 = scmp.ne.s32.totalorder %s4847_s22, %s4843_s21 }
   0x8   : > { %s6011_s29 = smov (%p33_p0, %s31_s29), 0  ;;  %p197_p5 = scmp.eq.s32.totalorder %s4206_s28, 1 }
   0x9   : > { %p4947_p4 = por %p191_p2, %p190_p1  ;;  %s175_s8 = ssub.s32 %s4859_s25, %s6011_s29 }
   0xa   : > { %p4209_p6 = scmp.ge.s32.totalorder %s4863_s26, 1  ;;  %p178_p7 = scmp.eq.s32.totalorder %s175_s8, 0 }
   0xb   : > { %p4954_p8 = por %p197_p5, %p196_p3  ;;  %p253_p9 = scmp.lt.s32.totalorder %s4863_s26, 3 }
   0xc   : > { %s4960_s10 = scalar_select %p178_p7, %s4851_s23, %s180_s30  }
   0xd   : > { %p254_p10 = pnand %p4209_p6, %p253_p9 }
   0xe   : > { %p297_p11 = scmp.lt.s32.totalorder (!%p254_p10), %s4855_s24, 1  ;;  %v4865_v0 = vmov (!%p254_p10), 0.0|0.0   ;;  %vm4866_vm0 = vmmov (!%p254_p10), 0   ;;  %v4867_v1 = vmov (!%p254_p10), 0.0   ;;  %v4868_v2 = vmov (!%p254_p10), 0   ;;  %s293_s12 = sand.u32 (!%p254_p10), 1, %s4847_s22  }
   0xf   : > { %257 = sbr.rel (%p254_p10) target bundleno = 3754 (0xeaa), region = 44  ;;  %4591 = vmatprep.subr.bf16.mxu0 (!%p254_p10), %v4865_v0  ;;  %4403 = vmatprep.mubr.msk.f32.mxu0 (!%p254_p10), %vm4866_vm0, %v4867_v1  ;;  %v318_v3 = vld [vmem:[%s5997_s3] sm:$0x3] (!%p254_p10)  ;;  %vm359_vm1 = vcmask (!%p254_p10), 1041409   ;;  %vm362_vm2 = vcmask (!%p254_p10), 1042434   ;;  %vm365_vm3 = vcmask (!%p254_p10), 1043459  }
  0x10   : > { %4716 = vset.pattern.permute.xlu0 (!%p254_p10), %v4868_v2  ;;  %4406 = vmatprep.subr.mxu1 (!%p254_p10), %v4867_v1  ;;  %v320_v4 = vld [vmem:[%s5999_s5] sm:$0xf] (!%p254_p10)  ;;  %vm368_vm4 = vcmask (!%p254_p10), 1044484   ;;  %vm371_vm5 = vcmask (!%p254_p10), 1045509   ;;  %vm374_vm6 = vcmask (!%p254_p10), 1046534   ;;  %vm377_vm7 = vcmask (!%p254_p10), 1047559  }
  0x11   : > { %339 = vperm.xlu0 (!%p254_p10), %4716, %v318_v3   ;;  %4408 = vmatprep.mubr.msk.f32.mxu1 (!%p254_p10), %vm4866_vm0, %v4867_v1  ;;  %vm393_vm8 = vcmask (!%p254_p10), 31744   ;;  %v5026_v51 = vld [vmem:[%s5996_s2] sm:$0x3] (!%p254_p10)  ;;  %vm481_vm10 = vcmask (!%p254_p10), 1041408   ;;  %vm477_vm11 = vcmask (!%p254_p10), 15360   ;;  %vm577_vm12 = vcmask (!%p254_p10), 122880  }
  0x12   : > { %vm5016_vm9 = vmpackc.low (!%p254_p10), %vm393_vm8, %vm393_vm8  ;;  %s4318_s13 = sshll.u32 (!%p254_p10), %s4855_s24, 10  ;;  %s4869_s20 = smov (!%p254_p10), [#allocation2]  }
  0x13   : > { %s5934_s19 = scalar_lea.hbm (!%p254_p10), %s6000_s6, %s4318_s13  ;;  %s4789_s27 = sshll.u32 (!%p254_p10), %s4869_s20, 4  ;;  %s4790_s27 = int_to_ptr.vmem [resolvable:$false] %s4789_s27 }
  0x14   : > { %s4791_s28 = scalar_lea.vmem (!%p254_p10), %s4790_s27, 2048 }
  0x15   : > { %474 = vperm.xlu0 (!%p254_p10), %4716, %v320_v4  }
  0x16   : > { %s4965_s11 = scalar_select %p297_p11, %s4855_s24, 1 }
  0x17   : > { %s5948_s24 = scalar_lea.sflag [#allocation3], %s293_s12 }
  0x18   : > { %s4316_s14 = sshll.u32 %s4965_s11, 8  ;;  %s4317_s8 = sshll.u32 %s4965_s11, 6 }
  0x19   : > { %s4977_s17 = scalar_lea.vmem %s5994_s0, %s4316_s14  ;;  %s5164_s15 = scalar_lea.vmem %s5995_s1, %s4317_s8 }
  0x1a   : > { %v322_v5 = vld [vmem:[%s4977_s17 + $0x10] sm:$0x1]  ;;  %v323_v6 = vld [vmem:[%s4977_s17 + $0x20] sm:$0x1]  ;;  %v583_v52 = vld [vmem:[%s4977_s17 + $0x11] sm:$0x1] }
  0x1b   : > { %v321_v7 = vld [vmem:[%s4977_s17] sm:$0x1]  ;;  %v324_v8 = vld [vmem:[%s4977_s17 + $0x30] sm:$0x1]  ;;  %v358_v19 = vrot.slane %v322_v5, 7  ;;  %v361_v20 = vrot.slane %v323_v6, 6 }
  0x1c   : > { %v325_v9 = vld [vmem:[%s4977_s17 + $0x40] sm:$0x1]  ;;  %v326_v10 = vld [vmem:[%s4977_s17 + $0x50] sm:$0x1]  ;;  %v364_v21 = vrot.slane %v324_v8, 5  ;;  %v614_v56 = vrot.slane %v583_v52, 7 }
  0x1d   : > { %v327_v11 = vld [vmem:[%s4977_s17 + $0x60] sm:$0x1]  ;;  %v330_v13 = vld [vmem:[%s4977_s17 + $0x90] sm:$0x1]  ;;  %v367_v23 = vrot.slane %v325_v9, 4  ;;  %v370_v24 = vrot.slane %v326_v10, 3  ;;  %v360_v27 = vsel %vm359_vm1, %v358_v19, %v321_v7 }
  0x1e   : > { %v329_v12 = vld [vmem:[%s4977_s17 + $0x80] sm:$0x1]  ;;  %v328_v14 = vld [vmem:[%s4977_s17 + $0x70] sm:$0x1]  ;;  %v379_v25 = vrot.slane %v330_v13, 7  ;;  %v363_v31 = vsel %vm362_vm2, %v361_v20, %v360_v27  ;;  %v373_v32 = vrot.slane %v327_v11, 2 }
  0x1f   : > { %v331_v15 = vld [vmem:[%s4977_s17 + $0xa0] sm:$0x1]  ;;  %v332_v16 = vld [vmem:[%s4977_s17 + $0xb0] sm:$0x1]  ;;  %v366_v35 = vsel %vm365_vm3, %v364_v21, %v363_v31  ;;  %v376_v36 = vrot.slane %v328_v14, 1  ;;  %s4210_s11 = sshll.u32 %s293_s12, 6 }
  0x20   : > { %v333_v17 = vld [vmem:[%s4977_s17 + $0xc0] sm:$0x1]  ;;  %v334_v18 = vld [vmem:[%s4977_s17 + $0xd0] sm:$0x1]  ;;  %v381_v28 = vrot.slane %v331_v15, 6  ;;  %v383_v29 = vrot.slane %v332_v16, 5  ;;  %v380_v33 = vsel %vm359_vm1, %v379_v25, %v329_v12  ;;  %v369_v39 = vsel %vm368_vm4, %v367_v23, %v366_v35 }
  0x21   : > { %v335_v22 = vld [vmem:[%s4977_s17 + $0xe0] sm:$0x1]  ;;  %v336_v26 = vld [vmem:[%s4977_s17 + $0xf0] sm:$0x1]  ;;  %v385_v30 = vrot.slane %v333_v17, 4  ;;  %v387_v34 = vrot.slane %v334_v18, 3  ;;  %v372_v42 = vsel %vm371_vm5, %v370_v24, %v369_v39 }
  0x22   : > { %v382_v37 = vsel %vm362_vm2, %v381_v28, %v380_v33  ;;  %v389_v38 = vrot.slane %v335_v22, 2  ;;  %v391_v41 = vrot.slane %v336_v26, 1  ;;  %v375_v44 = vsel %vm374_vm6, %v373_v32, %v372_v42  ;;  %v591_v53 = vld [vmem:[%s4977_s17 + $0x91] sm:$0x1]  ;;  %v584_v54 = vld [vmem:[%s4977_s17 + $0x21] sm:$0x1] }
  0x23   : > { %v384_v40 = vsel %vm365_vm3, %v383_v29, %v382_v37  ;;  %v378_v46 = vsel %vm377_vm7, %v376_v36, %v375_v44  ;;  %v592_v55 = vld [vmem:[%s4977_s17 + $0xa1] sm:$0x1]  ;;  %v628_v57 = vrot.slane %v591_v53, 7  ;;  %v585_v60 = vld [vmem:[%s4977_s17 + $0x31] sm:$0x1]  ;;  %v616_v62 = vrot.slane %v584_v54, 6 }
  0x24   : > { %v386_v43 = vsel %vm368_vm4, %v385_v30, %v384_v40  ;;  %v582_v58 = vld [vmem:[%s4977_s17 + $0x1] sm:$0x1]  ;;  %v593_v61 = vld [vmem:[%s4977_s17 + $0xb1] sm:$0x1]  ;;  %v630_v63 = vrot.slane %v592_v55, 6  ;;  %v618_v8 = vrot.slane %v585_v60, 5 }
  0x25   : > { %v388_v45 = vsel %vm371_vm5, %v387_v34, %v386_v43  ;;  %v590_v59 = vld [vmem:[%s4977_s17 + $0x81] sm:$0x1]  ;;  %v615_v2 = vsel %vm359_vm1, %v614_v56, %v582_v58  ;;  %v817_v4 = vld [vmem:[%s4977_s17 + $0x12] sm:$0x1]  ;;  %v632_v9 = vrot.slane %v593_v61, 5  ;;  %s5180_s16 = scalar_lea.vmem [#allocation2], %s4210_s11 }
  0x26   : > { %v390_v47 = vsel %vm374_vm6, %v389_v38, %v388_v45  ;;  %v629_v3 = vsel %vm359_vm1, %v628_v57, %v590_v59  ;;  %v825_v5 = vld [vmem:[%s4977_s17 + $0x92] sm:$0x1]  ;;  %v586_v6 = vld [vmem:[%s4977_s17 + $0x41] sm:$0x1]  ;;  %v587_v10 = vld [vmem:[%s4977_s17 + $0x51] sm:$0x1]  ;;  %v617_v12 = vsel %vm362_vm2, %v616_v62, %v615_v2 }
  0x27   : > { %v392_v48 = vsel %vm377_vm7, %v391_v41, %v390_v47  ;;  %v594_v7 = vld [vmem:[%s4977_s17 + $0xc1] sm:$0x1]  ;;  %v595_v11 = vld [vmem:[%s4977_s17 + $0xd1] sm:$0x1]  ;;  %v631_v13 = vsel %vm362_vm2, %v630_v63, %v629_v3  ;;  %v818_v14 = vld [vmem:[%s4977_s17 + $0x22] sm:$0x1]  ;;  %v619_v22 = vsel %vm365_vm3, %v618_v8, %v617_v12 }
  0x28   : > { %v4592_v50 = vpack.c.bf16 %v392_v48, %v378_v46  ;;  %v826_v15 = vld [vmem:[%s4977_s17 + $0xa2] sm:$0x1]  ;;  %v848_v16 = vrot.slane %v817_v4, 7  ;;  %v862_v17 = vrot.slane %v825_v5, 7  ;;  %v620_v18 = vrot.slane %v586_v6, 4  ;;  %s4108_s14 = sshll.u32 %s5180_s16, 4  ;;  %s5936_s14 = int_to_ptr.vmem [resolvable:$true] %s4108_s14 }
  0x29   : > { %v634_v19 = vrot.slane %v594_v7, 4  ;;  %v816_v20 = vld [vmem:[%s4977_s17 + $0x2] sm:$0x1]  ;;  %v633_v23 = vsel %vm365_vm3, %v632_v9, %v631_v13  ;;  %v819_v24 = vld [vmem:[%s4977_s17 + $0x32] sm:$0x1]  ;;  %v850_v26 = vrot.slane %v818_v14, 6  ;;  %p4792_p1 = scmp.lt.s32.totalorder %s5936_s14, %s4790_s27 }
  0x2a   : > { %4594 = vmatpush3.bf16.xpose.msk.msra.mxu0 %vm5016_vm9, %v4592_v50  ;;  %v824_v21 = vld [vmem:[%s4977_s17 + $0x82] sm:$0x1]  ;;  %v827_v25 = vld [vmem:[%s4977_s17 + $0xb2] sm:$0x1]  ;;  %v864_v27 = vrot.slane %v826_v15, 6  ;;  %v622_v30 = vrot.slane %v587_v10, 3  ;;  %v849_v32 = vsel %vm359_vm1, %v848_v16, %v816_v20  ;;  %v621_v35 = vsel %vm368_vm4, %v620_v18, %v619_v22 }
  0x2b   : > { %4418 = vmatprep.subr.mxu0 %v4867_v1  ;;  %v588_v28 = vld [vmem:[%s4977_s17 + $0x61] sm:$0x1]  ;;  %v636_v31 = vrot.slane %v595_v11, 3  ;;  %v863_v33 = vsel %vm359_vm1, %v862_v17, %v824_v21  ;;  %v589_v34 = vld [vmem:[%s4977_s17 + $0x71] sm:$0x1]  ;;  %v635_v36 = vsel %vm368_vm4, %v634_v19, %v633_v23  ;;  %v852_v39 = vrot.slane %v819_v24, 5 }
  0x2c   : > { %v596_v29 = vld [vmem:[%s4977_s17 + $0xe1] sm:$0x1]  ;;  %v820_v37 = vld [vmem:[%s4977_s17 + $0x42] sm:$0x1]  ;;  %v866_v40 = vrot.slane %v827_v25, 5  ;;  %v624_v42 = vrot.slane %v588_v28, 2  ;;  %v851_v44 = vsel %vm362_vm2, %v850_v26, %v849_v32  ;;  %v865_v45 = vsel %vm362_vm2, %v864_v27, %v863_v33 }
  0x2d   : > { %v828_v38 = vld [vmem:[%s4977_s17 + $0xc2] sm:$0x1]  ;;  %v597_v41 = vld [vmem:[%s4977_s17 + $0xf1] sm:$0x1]  ;;  %v638_v43 = vrot.slane %v596_v29, 2  ;;  %v623_v46 = vsel %vm371_vm5, %v622_v30, %v621_v35  ;;  %v637_v47 = vsel %vm371_vm5, %v636_v31, %v635_v36  ;;  %v626_v53 = vrot.slane %v589_v34, 1 }
  0x2e   : > { %v821_v48 = vld [vmem:[%s4977_s17 + $0x52] sm:$0x1]  ;;  %v854_v55 = vrot.slane %v820_v37, 4  ;;  %v868_v56 = vrot.slane %v828_v38, 4  ;;  %v640_v59 = vrot.slane %v597_v41, 1  ;;  %v853_v60 = vsel %vm365_vm3, %v852_v39, %v851_v44 }
  0x2f   : > { %v829_v54 = vld [vmem:[%s4977_s17 + $0xd2] sm:$0x1]  ;;  %v867_v61 = vsel %vm365_vm3, %v866_v40, %v865_v45  ;;  %v5082_v62 = vld [vmem:[%s5998_s4] sm:$0xf]  ;;  %v625_v63 = vsel %vm374_vm6, %v624_v42, %v623_v46  ;;  %v639_v2 = vsel %vm374_vm6, %v638_v43, %v637_v47  ;;  %v856_v6 = vrot.slane %v821_v48, 3 }
  0x30   : > { %v822_v3 = vld [vmem:[%s4977_s17 + $0x62] sm:$0x1]  ;;  %v870_v7 = vrot.slane %v829_v54, 3  ;;  %v855_v8 = vsel %vm368_vm4, %v854_v55, %v853_v60  ;;  %v869_v9 = vsel %vm368_vm4, %v868_v56, %v867_v61  ;;  %v627_v10 = vsel %vm377_vm7, %v626_v53, %v625_v63  ;;  %v823_v12 = vld [vmem:[%s4977_s17 + $0x72] sm:$0x1] }
  0x31   : > { %4404 = vmatmul.mubr.msk.f32.vlgmr.msra.gmra.mrb[0].mxu0 %vm393_vm8, %v5026_v51  ;;  %v830_v5 = vld [vmem:[%s4977_s17 + $0xe2] sm:$0x1]  ;;  %v641_v11 = vsel %vm377_vm7, %v640_v59, %v639_v2  ;;  %v831_v13 = vld [vmem:[%s4977_s17 + $0xf2] sm:$0x1]  ;;  %v858_v14 = vrot.slane %v822_v3, 2  ;;  %v857_v16 = vsel %vm371_vm5, %v856_v6, %v855_v8  ;;  %v860_v19 = vrot.slane %v823_v12, 1 }
  0x32   : > { %4420 = vmatprep.mubr.msk.f32.mxu0 %vm4866_vm0, %v4867_v1  ;;  %v872_v15 = vrot.slane %v830_v5, 2  ;;  %v871_v17 = vsel %vm371_vm5, %v870_v7, %v869_v9  ;;  %v4596_v18 = vpack.c.bf16 %v641_v11, %v627_v10  ;;  %v874_v20 = vrot.slane %v831_v13, 1  ;;  %v1051_v28 = vld [vmem:[%s4977_s17 + $0x13] sm:$0x1]  ;;  %v1052_v32 = vld [vmem:[%s4977_s17 + $0x23] sm:$0x1] }
  0x33   : > { %v859_v21 = vsel %vm374_vm6, %v858_v14, %v857_v16  ;;  %v1059_v29 = vld [vmem:[%s4977_s17 + $0x93] sm:$0x1]  ;;  %v1060_v34 = vld [vmem:[%s4977_s17 + $0xa3] sm:$0x1]  ;;  %v1082_v35 = vrot.slane %v1051_v28, 7  ;;  %v1084_v41 = vrot.slane %v1052_v32, 6 }
  0x34   : > { %v873_v22 = vsel %vm374_vm6, %v872_v15, %v871_v17  ;;  %v861_v23 = vsel %vm377_vm7, %v860_v19, %v859_v21  ;;  %v1096_v36 = vrot.slane %v1059_v29, 7  ;;  %v1050_v37 = vld [vmem:[%s4977_s17 + $0x3] sm:$0x1]  ;;  %v1053_v39 = vld [vmem:[%s4977_s17 + $0x33] sm:$0x1]  ;;  %v1098_v42 = vrot.slane %v1060_v34, 6 }
  0x35   : > { %v875_v24 = vsel %vm377_vm7, %v874_v20, %v873_v22  ;;  %v1058_v38 = vld [vmem:[%s4977_s17 + $0x83] sm:$0x1]  ;;  %v1061_v40 = vld [vmem:[%s4977_s17 + $0xb3] sm:$0x1]  ;;  %v1083_v43 = vsel %vm359_vm1, %v1082_v35, %v1050_v37  ;;  %v1086_v47 = vrot.slane %v1053_v39, 5 }
  0x36   : > { %v4600_v25 = vpack.c.bf16 %v875_v24, %v861_v23  ;;  %v1097_v44 = vsel %vm359_vm1, %v1096_v36, %v1058_v38  ;;  %v1054_v45 = vld [vmem:[%s4977_s17 + $0x43] sm:$0x1]  ;;  %v1100_v48 = vrot.slane %v1061_v40, 5  ;;  %v1055_v54 = vld [vmem:[%s4977_s17 + $0x53] sm:$0x1] }
  0x37   : > { %v1062_v46 = vld [vmem:[%s4977_s17 + $0xc3] sm:$0x1]  ;;  %v1099_v53 = vsel %vm362_vm2, %v1098_v42, %v1097_v44  ;;  %v1063_v55 = vld [vmem:[%s4977_s17 + $0xd3] sm:$0x1]  ;;  %v1088_v56 = vrot.slane %v1054_v45, 4  ;;  %v1090_v5 = vrot.slane %v1055_v54, 3 }
  0x38   : > { %v1101_v60 = vsel %vm365_vm3, %v1100_v48, %v1099_v53  ;;  %v1056_v3 = vld [vmem:[%s4977_s17 + $0x63] sm:$0x1]  ;;  %v1104_v6 = vrot.slane %v1063_v55, 3  ;;  %v1057_v11 = vld [vmem:[%s4977_s17 + $0x73] sm:$0x1] }
  0x39   : > { %v1065_v12 = vld [vmem:[%s4977_s17 + $0xf3] sm:$0x1]  ;;  %v1092_v13 = vrot.slane %v1056_v3, 2  ;;  %v561_v28 = vld [vmem:[%s5164_s15] sm:$0x1] }
  0x3a   : > { %v1108_v19 = vrot.slane %v1065_v12, 1  ;;  %v562_v29 = vld [vmem:[%s5164_s15 + $0x10] sm:$0x1]  ;;  %v1285_v42 = vld [vmem:[%s4977_s17 + $0x14] sm:$0x1] }
  0x3b   : > { %v564_v32 = vld [vmem:[%s5164_s15 + $0x30] sm:$0x1]  ;;  %v1294_v48 = vld [vmem:[%s4977_s17 + $0xa4] sm:$0x1]  ;;  %v1297_v12 = vld [vmem:[%s4977_s17 + $0xd4] sm:$0x1] }
  0x3c   : > { %v1284_v54 = vld [vmem:[%s4977_s17 + $0x4] sm:$0x1] }
  0x3d   : > { %v1292_v55 = vld [vmem:[%s4977_s17 + $0x84] sm:$0x1] }
  0x90   : > { %v5073_v50 = vpop.permute.xlu0 %339 }
  0x94   : > { %v5120_v26 = vpop.permute.xlu0 %474 }
 0x104   : > { %v467_v52 = vpop.f32.mrb[0].mxu0 }
 0x105   : > { %v468_v57 = vadd.f32 %v467_v52, %v5073_v50  ;;  %v4405_v58 = vpop.f32.mrb[1].mxu0  ;;  %v1085_v52 = vsel %vm362_vm2, %v1084_v41, %v1083_v43  ;;  %v1293_v43 = vld [vmem:[%s4977_s17 + $0x94] sm:$0x1] }
 0x106   : > { %v1087_v59 = vsel %vm365_vm3, %v1086_v47, %v1085_v52  ;;  %v1316_v52 = vrot.slane %v1285_v42, 7  ;;  %v1330_v53 = vrot.slane %v1293_v43, 7 }
 0x107   : > { %v471_v4 = vmax.f32 %v468_v57, 0.0  ;;  %v1102_v57 = vrot.slane %v1062_v46, 4  ;;  %v1089_v9 = vsel %vm368_vm4, %v1088_v56, %v1087_v59  ;;  %v1286_v46 = vld [vmem:[%s4977_s17 + $0x24] sm:$0x1]  ;;  %v1287_v56 = vld [vmem:[%s4977_s17 + $0x34] sm:$0x1] }
 0x108   : > { %v1091_v15 = vsel %vm371_vm5, %v1090_v5, %v1089_v9  ;;  %v1332_v59 = vrot.slane %v1294_v48, 6  ;;  %v1296_v5 = vld [vmem:[%s4977_s17 + $0xc4] sm:$0x1]  ;;  %v799_v48 = vld [vmem:[%s5164_s15 + $0x31] sm:$0x1] }
 0x109   : > { %4407 = vmatpush3.msk.msra.mxu1 %vm481_vm10, %v471_v4  ;;  %v1064_v4 = vld [vmem:[%s4977_s17 + $0xe3] sm:$0x1]  ;;  %v1103_v10 = vsel %vm368_vm4, %v1102_v57, %v1101_v60  ;;  %v1093_v22 = vsel %vm374_vm6, %v1092_v13, %v1091_v15  ;;  %v1295_v57 = vld [vmem:[%s4977_s17 + $0xb4] sm:$0x1]  ;;  %v1317_v60 = vsel %vm359_vm1, %v1316_v52, %v1284_v54 }
 0x10a   : > { %4409 = vmatmul.mubr.msk.f32.vlgmr.msra.gmra.mrb[0].mxu1 %vm477_vm11, %v5082_v62  ;;  %4595 = vmatprep.subr.bf16.mxu1 %v4865_v0  ;;  %v1106_v14 = vrot.slane %v1064_v4, 2  ;;  %v1105_v16 = vsel %vm371_vm5, %v1104_v6, %v1103_v10  ;;  %v1320_v6 = vrot.slane %v1287_v56, 5 }
 0x10b   : > { %4415 = vmatprep.mubr.msk.f32.mxu1 %vm4866_vm0, %v4867_v1 }
 0x10c   : > { %v1107_v23 = vsel %vm374_vm6, %v1106_v14, %v1105_v16  ;;  %v1336_v14 = vrot.slane %v1296_v5, 4 }
 0x110   : > { %4598 = vmatpush3.bf16.xpose.msk.msra.mxu1 %vm5016_vm9, %v4596_v18  ;;  %v1094_v18 = vrot.slane %v1057_v11, 1  ;;  %v1289_v11 = vld [vmem:[%s4977_s17 + $0x54] sm:$0x1] }
 0x111   : > { %4599 = vmatprep.subr.bf16.mxu1 %v4865_v0 }
 0x117   : > { %4416 = vmatmul.mubr.msk.f32.vlgmr.msra.gmra.mrb[2].mxu1 %vm393_vm8, %v5026_v51 }
 0x118   : > { %4602 = vmatpush3.bf16.xpose.msk.msra.mxu1 %vm5016_vm9, %v4600_v25  ;;  %4427 = vmatprep.mubr.msk.f32.mxu1 %vm4866_vm0, %v4867_v1  ;;  %v1095_v25 = vsel %vm377_vm7, %v1094_v18, %v1093_v22  ;;  %v1290_v18 = vld [vmem:[%s4977_s17 + $0x64] sm:$0x1] }
 0x119   : > { %4442 = vmatprep.subr.mxu1 %v4867_v1 }
 0x11f   : > { %4428 = vmatmul.mubr.msk.f32.vlgmr.msra.gmra.mrb[4].mxu1 %vm393_vm8, %v5026_v51 }
 0x120   : > { %4444 = vmatprep.mubr.msk.f32.mxu1 %vm4866_vm0, %v4867_v1 }
 0x1dd   : > { %v551_v27 = vpop.f32.mrb[0].mxu1 }
 0x1de   : > { %v552_v30 = vadd.f32 %v551_v27, %v5120_v26  ;;  %v4410_v31 = vpop.f32.mrb[1].mxu1  ;;  %v1109_v27 = vsel %vm377_vm7, %v1108_v19, %v1107_v23  ;;  %v1298_v19 = vld [vmem:[%s4977_s17 + $0xe4] sm:$0x1] }
 0x1df   : > { %v563_v31 = vld [vmem:[%s5164_s15 + $0x20] sm:$0x1] }
 0x1e0   : > { %v4220_v33 = vmul.f32 -1.442695, %v552_v30 }
 0x1e2   : > { %4717 = vpow2.f32 %v4220_v33  ;;  %v4604_v33 = vpack.c.bf16 %v1109_v27, %v1095_v25  ;;  %v1291_v25 = vld [vmem:[%s4977_s17 + $0x74] sm:$0x1] }
 0x1e3   : > { %v1299_v27 = vld [vmem:[%s4977_s17 + $0xf4] sm:$0x1] }
 0x1ea   : > { %v712_v58 = vpop.f32.mrb[2].mxu1 }
 0x1eb   : > { %v713_v61 = vadd.f32 %v712_v58, %v5073_v50  ;;  %v4417_v63 = vpop.f32.mrb[3].mxu1  ;;  %v1318_v58 = vrot.slane %v1286_v46, 6  ;;  %v797_v46 = vld [vmem:[%s5164_s15 + $0x11] sm:$0x1] }
 0x1ec   : > { %v4718_v2 = vpop.eup %4717 }
 0x1ed   : > { %v558_v7 = vadd.f32 1.0, %v4718_v2  ;;  %v716_v8 = vmax.f32 %v713_v61, 0.0  ;;  %v1331_v61 = vsel %vm359_vm1, %v1330_v53, %v1292_v55  ;;  %v1288_v2 = vld [vmem:[%s4977_s17 + $0x44] sm:$0x1] }
 0x1ee   : > { %v1333_v9 = vsel %vm362_vm2, %v1332_v59, %v1331_v61  ;;  %v1322_v13 = vrot.slane %v1288_v2, 4  ;;  %v1032_v2 = vld [vmem:[%s5164_s15 + $0x22] sm:$0x1] }
 0x1ef   : > { %4719 = vrcp.f32 %v558_v7  ;;  %4419 = vmatpush3.msk.msra.mxu0 %vm481_vm10, %v716_v8  ;;  %v1334_v7 = vrot.slane %v1295_v57, 5  ;;  %v1319_v8 = vsel %vm362_vm2, %v1318_v58, %v1317_v60  ;;  %v1030_v60 = vld [vmem:[%s5164_s15 + $0x2] sm:$0x1] }
 0x1f0   : > { %4421 = vmatmul.mubr.msk.f32.vlgmr.msra.gmra.mrb[2].mxu0 %vm477_vm11, %v5082_v62  ;;  %4430 = vmatprep.subr.mxu0 %v4867_v1  ;;  %v1321_v15 = vsel %vm365_vm3, %v1320_v6, %v1319_v8 }
 0x1f1   : > { %4432 = vmatprep.mubr.msk.f32.mxu0 %vm4866_vm0, %v4867_v1  ;;  %v1335_v16 = vsel %vm365_vm3, %v1334_v7, %v1333_v9  ;;  %v1323_v23 = vsel %vm368_vm4, %v1322_v13, %v1321_v15  ;;  %v1520_v13 = vld [vmem:[%s4977_s17 + $0x25] sm:$0x1] }
 0x1f2   : > { %v946_v17 = vpop.f32.mrb[4].mxu1 }
 0x1f3   : > { %v947_v20 = vadd.f32 %v946_v17, %v5073_v50  ;;  %v4429_v21 = vpop.f32.mrb[5].mxu1 }
 0x1f4   : > { %v1338_v21 = vrot.slane %v1297_v12, 3  ;;  %v1527_v12 = vld [vmem:[%s4977_s17 + $0x95] sm:$0x1] }
 0x1f5   : > { %v950_v24 = vmax.f32 %v947_v20, 0.0  ;;  %v1324_v20 = vrot.slane %v1289_v11, 3  ;;  %v1519_v11 = vld [vmem:[%s4977_s17 + $0x15] sm:$0x1] }
 0x1f6   : > { %v1550_v15 = vrot.slane %v1519_v11, 7  ;;  %v1265_v11 = vld [vmem:[%s5164_s15 + $0x13] sm:$0x1] }
 0x1f7   : > { %4431 = vmatpush3.msk.msra.mxu0 %vm481_vm10, %v950_v24  ;;  %v1337_v24 = vsel %vm368_vm4, %v1336_v14, %v1335_v16  ;;  %v1528_v14 = vld [vmem:[%s4977_s17 + $0xa5] sm:$0x1]  ;;  %v1564_v16 = vrot.slane %v1527_v12, 7  ;;  %v1266_v12 = vld [vmem:[%s5164_s15 + $0x23] sm:$0x1] }
 0x1f8   : > { %4433 = vmatmul.mubr.msk.f32.vlgmr.msra.gmra.mrb[4].mxu0 %vm477_vm11, %v5082_v62  ;;  %4603 = vmatprep.subr.bf16.mxu0 %v4865_v0 }
 0x1f9   : > { %v4720_v30 = vpop.eup %4719  ;;  %4439 = vmatprep.mubr.msk.f32.mxu0 %vm4866_vm0, %v4867_v1 }
 0x1fa   : > { %v566_v34 = vrot.slane %v4720_v30, 1  ;;  %v567_v35 = vrot.slane %v4720_v30, 2  ;;  %v568_v36 = vrot.slane %v4720_v30, 3  ;;  %v573_v37 = vmul.f32 %v4720_v30, %v561_v28 }
 0x1fb   : > { %v1326_v28 = vrot.slane %v1290_v18, 2  ;;  %v1325_v30 = vsel %vm371_vm5, %v1324_v20, %v1323_v23  ;;  %v1526_v18 = vld [vmem:[%s4977_s17 + $0x85] sm:$0x1]  ;;  %v1529_v20 = vld [vmem:[%s4977_s17 + $0xb5] sm:$0x1] }
 0x1fc   : > { %v574_v38 = vmul.f32 %v566_v34, %v562_v29  ;;  %v575_v39 = vmul.f32 %v567_v35, %v563_v31  ;;  %v576_v40 = vmul.f32 %v568_v36, %v564_v32  ;;  %578 = vst.msk [vmem:[%s5180_s16] sm:$0x1] %vm577_vm12, %v573_v37  ;;  %v1340_v29 = vrot.slane %v1298_v19, 2  ;;  %v1521_v19 = vld [vmem:[%s4977_s17 + $0x35] sm:$0x1] }
 0x1fd   : > { %v1339_v31 = vsel %vm371_vm5, %v1338_v21, %v1337_v24  ;;  %v1342_v34 = vrot.slane %v1299_v27, 1  ;;  %v1327_v37 = vsel %vm374_vm6, %v1326_v28, %v1325_v30  ;;  %v1552_v21 = vrot.slane %v1520_v13, 6  ;;  %v1530_v30 = vld [vmem:[%s4977_s17 + $0xc5] sm:$0x1]  ;;  %v1267_v13 = vld [vmem:[%s5164_s15 + $0x33] sm:$0x1] }
 0x1fe   : > { %579 = vst.msk [vmem:[%s5180_s16 + $0x10] sm:$0x1] %vm577_vm12, %v574_v38  ;;  %580 = vst.msk [vmem:[%s5180_s16 + $0x20] sm:$0x1] %vm577_vm12, %v575_v39  ;;  %4606 = vmatpush3.bf16.xpose.msk.msra.mxu0 %vm5016_vm9, %v4604_v33  ;;  %v1328_v33 = vrot.slane %v1291_v25, 1  ;;  %v1341_v38 = vsel %vm374_vm6, %v1340_v29, %v1339_v31  ;;  %v1565_v25 = vsel %vm359_vm1, %v1564_v16, %v1526_v18  ;;  %v1554_v31 = vrot.slane %v1521_v19, 5 }
 0x1ff   : > { %581 = vst.msk [vmem:[%s5180_s16 + $0x30] sm:$0x1] %vm577_vm12, %v576_v40  ;;  %4454 = vmatprep.subr.mxu0 %v4867_v1  ;;  %v1343_v43 = vsel %vm377_vm7, %v1342_v34, %v1341_v38  ;;  %v1522_v29 = vld [vmem:[%s4977_s17 + $0x45] sm:$0x1] }
 0x200   : > { %v1329_v42 = vsel %vm377_vm7, %v1328_v33, %v1327_v37  ;;  %v1531_v37 = vld [vmem:[%s4977_s17 + $0xd5] sm:$0x1]  ;;  %v1556_v38 = vrot.slane %v1522_v29, 4  ;;  %v1760_v29 = vld [vmem:[%s4977_s17 + $0x86] sm:$0x1] }
 0x201   : > { %v4608_v52 = vpack.c.bf16 %v1343_v43, %v1329_v42  ;;  %v1524_v42 = vld [vmem:[%s4977_s17 + $0x65] sm:$0x1] }
 0x202   : > { %v1532_v43 = vld [vmem:[%s4977_s17 + $0xe5] sm:$0x1] }
 0x205   : > { %4440 = vmatmul.mubr.msk.f32.vlgmr.msra.gmra.mrb[6].mxu0 %vm393_vm8, %v5026_v51 }
 0x206   : > { %4456 = vmatprep.mubr.msk.f32.mxu0 %vm4866_vm0, %v4867_v1 }
 0x2c3   : > { %v786_v41 = vpop.f32.mrb[2].mxu0 }
 0x2c4   : > { %v787_v44 = vadd.f32 %v786_v41, %v5120_v26  ;;  %v4422_v45 = vpop.f32.mrb[3].mxu0 }
 0x2c6   : > { %v4226_v47 = vmul.f32 -1.442695, %v787_v44  ;;  %v796_v44 = vld [vmem:[%s5164_s15 + $0x1] sm:$0x1] }
 0x2c8   : > { %4721 = vpow2.f32 %v4226_v47  ;;  %v798_v47 = vld [vmem:[%s5164_s15 + $0x21] sm:$0x1] }
 0x2cb   : > { %v1020_v63 = vpop.f32.mrb[4].mxu0 }
 0x2cc   : > { %v1021_v3 = vadd.f32 %v1020_v63, %v5120_v26  ;;  %v4434_v4 = vpop.f32.mrb[5].mxu0  ;;  %v1031_v63 = vld [vmem:[%s5164_s15 + $0x12] sm:$0x1] }
 0x2ce   : > { %v4232_v10 = vmul.f32 -1.442695, %v1021_v3  ;;  %v1033_v3 = vld [vmem:[%s5164_s15 + $0x32] sm:$0x1] }
 0x2d0   : > { %4723 = vpow2.f32 %v4232_v10 }
 0x2d2   : > { %v4722_v17 = vpop.eup %4721 }
 0x2d3   : > { %v793_v22 = vadd.f32 1.0, %v4722_v17  ;;  %v1518_v17 = vld [vmem:[%s4977_s17 + $0x5] sm:$0x1] }
 0x2d4   : > { %v1551_v24 = vsel %vm359_vm1, %v1550_v15, %v1518_v17 }
 0x2d5   : > { %4725 = vrcp.f32 %v793_v22  ;;  %v1566_v22 = vrot.slane %v1528_v14, 6  ;;  %v1553_v34 = vsel %vm362_vm2, %v1552_v21, %v1551_v24  ;;  %v1753_v21 = vld [vmem:[%s4977_s17 + $0x16] sm:$0x1]  ;;  %v1762_v24 = vld [vmem:[%s4977_s17 + $0xa6] sm:$0x1] }
 0x2d8   : > { %v1180_v32 = vpop.f32.mrb[6].mxu0 }
 0x2d9   : > { %v1181_v35 = vadd.f32 %v1180_v32, %v5073_v50  ;;  %v4441_v36 = vpop.f32.mrb[7].mxu0  ;;  %v1568_v32 = vrot.slane %v1529_v20, 5 }
 0x2da   : > { %v4724_v39 = vpop.eup %4723  ;;  %v1523_v36 = vld [vmem:[%s4977_s17 + $0x55] sm:$0x1] }
 0x2db   : > { %v1027_v40 = vadd.f32 1.0, %v4724_v39  ;;  %v1184_v41 = vmax.f32 %v1181_v35, 0.0  ;;  %v1567_v35 = vsel %vm362_vm2, %v1566_v22, %v1565_v25  ;;  %v1570_v39 = vrot.slane %v1530_v30, 4  ;;  %v1761_v22 = vld [vmem:[%s4977_s17 + $0x96] sm:$0x1] }
 0x2dc   : > { %v1784_v25 = vrot.slane %v1753_v21, 7  ;;  %v1755_v30 = vld [vmem:[%s4977_s17 + $0x36] sm:$0x1]  ;;  %v1499_v21 = vld [vmem:[%s5164_s15 + $0x14] sm:$0x1] }
 0x2dd   : > { %4727 = vrcp.f32 %v1027_v40  ;;  %4443 = vmatpush3.msk.msra.mxu1 %vm481_vm10, %v1184_v41  ;;  %v1555_v40 = vsel %vm365_vm3, %v1554_v31, %v1553_v34  ;;  %v1569_v41 = vsel %vm365_vm3, %v1568_v32, %v1567_v35  ;;  %v1763_v31 = vld [vmem:[%s4977_s17 + $0xb6] sm:$0x1] }
 0x2de   : > { %4445 = vmatmul.mubr.msk.f32.vlgmr.msra.gmra.mrb[6].mxu1 %vm477_vm11, %v5082_v62  ;;  %4607 = vmatprep.subr.bf16.mxu1 %v4865_v0 }
 0x2df   : > { %v4726_v45 = vpop.eup %4725  ;;  %4451 = vmatprep.mubr.msk.f32.mxu1 %vm4866_vm0, %v4867_v1 }
 0x2e0   : > { %v801_v53 = vrot.slane %v4726_v45, 1  ;;  %v802_v54 = vrot.slane %v4726_v45, 2  ;;  %v803_v55 = vrot.slane %v4726_v45, 3  ;;  %v808_v56 = vmul.f32 %v4726_v45, %v796_v44 }
 0x2e1   : > { %v1558_v44 = vrot.slane %v1523_v36, 3  ;;  %v1572_v45 = vrot.slane %v1531_v37, 3 }
 0x2e2   : > { %v809_v57 = vmul.f32 %v801_v53, %v797_v46  ;;  %v810_v58 = vmul.f32 %v802_v54, %v798_v47  ;;  %v811_v59 = vmul.f32 %v803_v55, %v799_v48  ;;  %812 = vst.msk [vmem:[%s5180_s16 + $0x1] sm:$0x1] %vm577_vm12, %v808_v56  ;;  %v1557_v46 = vsel %vm368_vm4, %v1556_v38, %v1555_v40  ;;  %v1525_v48 = vld [vmem:[%s4977_s17 + $0x75] sm:$0x1]  ;;  %v1764_v40 = vld [vmem:[%s4977_s17 + $0xc6] sm:$0x1] }
 0x2e3   : > { %v1571_v47 = vsel %vm368_vm4, %v1570_v39, %v1569_v41  ;;  %v1560_v53 = vrot.slane %v1524_v42, 2  ;;  %v1574_v54 = vrot.slane %v1532_v43, 2  ;;  %v1559_v55 = vsel %vm371_vm5, %v1558_v44, %v1557_v46  ;;  %v1756_v39 = vld [vmem:[%s4977_s17 + $0x46] sm:$0x1]  ;;  %v1757_v46 = vld [vmem:[%s4977_s17 + $0x56] sm:$0x1] }
 0x2e4   : > { %813 = vst.msk [vmem:[%s5180_s16 + $0x11] sm:$0x1] %vm577_vm12, %v809_v57  ;;  %814 = vst.msk [vmem:[%s5180_s16 + $0x21] sm:$0x1] %vm577_vm12, %v810_v58  ;;  %4610 = vmatpush3.bf16.xpose.msk.msra.mxu1 %vm5016_vm9, %v4608_v52  ;;  %v1533_v52 = vld [vmem:[%s4977_s17 + $0xf5] sm:$0x1]  ;;  %v1573_v56 = vsel %vm371_vm5, %v1572_v45, %v1571_v47 }
 0x2e5   : > { %815 = vst.msk [vmem:[%s5180_s16 + $0x31] sm:$0x1] %vm577_vm12, %v811_v59  ;;  %4466 = vmatprep.subr.mxu1 %v4867_v1  ;;  %v1788_v41 = vrot.slane %v1755_v30, 5  ;;  %v1802_v42 = vrot.slane %v1763_v31, 5  ;;  %v1765_v47 = vld [vmem:[%s4977_s17 + $0xd6] sm:$0x1] }
 0x2e7   : > { %v4728_v61 = vpop.eup %4727 }
 0x2e8   : > { %v1035_v4 = vrot.slane %v4728_v61, 1  ;;  %v1036_v5 = vrot.slane %v4728_v61, 2  ;;  %v1037_v6 = vrot.slane %v4728_v61, 3  ;;  %v1042_v7 = vmul.f32 %v4728_v61, %v1030_v60 }
 0x2e9   : > { %v1562_v60 = vrot.slane %v1525_v48, 1  ;;  %v1576_v61 = vrot.slane %v1533_v52, 1  ;;  %v1790_v48 = vrot.slane %v1756_v39, 4  ;;  %v1804_v52 = vrot.slane %v1764_v40, 4  ;;  %v1994_v39 = vld [vmem:[%s4977_s17 + $0x87] sm:$0x1] }
 0x2ea   : > { %v1043_v8 = vmul.f32 %v1035_v4, %v1031_v63  ;;  %v1044_v9 = vmul.f32 %v1036_v5, %v1032_v2  ;;  %v1045_v10 = vmul.f32 %v1037_v6, %v1033_v3  ;;  %1046 = vst.msk [vmem:[%s5180_s16 + $0x2] sm:$0x1] %vm577_vm12, %v1042_v7  ;;  %v1561_v2 = vsel %vm374_vm6, %v1560_v53, %v1559_v55  ;;  %v1758_v55 = vld [vmem:[%s4977_s17 + $0x66] sm:$0x1]  ;;  %v1997_v40 = vld [vmem:[%s4977_s17 + $0xb7] sm:$0x1] }
 0x2eb   : > { %4452 = vmatmul.mubr.msk.f32.vlgmr.msra.gmra.mrb[8].mxu1 %vm393_vm8, %v5026_v51  ;;  %v1575_v3 = vsel %vm374_vm6, %v1574_v54, %v1573_v56  ;;  %v1563_v6 = vsel %vm377_vm7, %v1562_v60, %v1561_v2  ;;  %v1766_v56 = vld [vmem:[%s4977_s17 + $0xe6] sm:$0x1]  ;;  %v1794_v2 = vrot.slane %v1758_v55, 2 }
 0x2ec   : > { %1047 = vst.msk [vmem:[%s5180_s16 + $0x12] sm:$0x1] %vm577_vm12, %v1043_v8  ;;  %1048 = vst.msk [vmem:[%s5180_s16 + $0x22] sm:$0x1] %vm577_vm12, %v1044_v9  ;;  %4468 = vmatprep.mubr.msk.f32.mxu1 %vm4866_vm0, %v4867_v1  ;;  %v1577_v7 = vsel %vm377_vm7, %v1576_v61, %v1575_v3  ;;  %v1264_v9 = vld [vmem:[%s5164_s15 + $0x3] sm:$0x1] }
 0x2ed   : > { %1049 = vst.msk [vmem:[%s5180_s16 + $0x32] sm:$0x1] %vm577_vm12, %v1045_v10  ;;  %v4612_v8 = vpack.c.bf16 %v1577_v7, %v1563_v6  ;;  %v1759_v61 = vld [vmem:[%s4977_s17 + $0x76] sm:$0x1]  ;;  %v1808_v3 = vrot.slane %v1766_v56, 2 }
 0x3b1   : > { %v1254_v23 = vpop.f32.mrb[6].mxu1 }
 0x3b2   : > { %v1255_v27 = vadd.f32 %v1254_v23, %v5120_v26  ;;  %v4446_v28 = vpop.f32.mrb[7].mxu1  ;;  %v1754_v23 = vld [vmem:[%s4977_s17 + $0x26] sm:$0x1] }
 0x3b3   : > { %v1752_v28 = vld [vmem:[%s4977_s17 + $0x6] sm:$0x1]  ;;  %v1786_v32 = vrot.slane %v1754_v23, 6  ;;  %v1501_v23 = vld [vmem:[%s5164_s15 + $0x34] sm:$0x1] }
 0x3b4   : > { %v4238_v33 = vmul.f32 -1.442695, %v1255_v27  ;;  %v1798_v27 = vrot.slane %v1761_v22, 7  ;;  %v1785_v35 = vsel %vm359_vm1, %v1784_v25, %v1752_v28  ;;  %v1500_v22 = vld [vmem:[%s5164_s15 + $0x24] sm:$0x1] }
 0x3b5   : > { %v1787_v44 = vsel %vm362_vm2, %v1786_v32, %v1785_v35  ;;  %v1987_v32 = vld [vmem:[%s4977_s17 + $0x17] sm:$0x1]  ;;  %v1996_v35 = vld [vmem:[%s4977_s17 + $0xa7] sm:$0x1] }
 0x3b6   : > { %4729 = vpow2.f32 %v4238_v33  ;;  %v1800_v33 = vrot.slane %v1762_v24, 6  ;;  %v1799_v36 = vsel %vm359_vm1, %v1798_v27, %v1760_v29  ;;  %v1789_v53 = vsel %vm365_vm3, %v1788_v41, %v1787_v44 }
 0x3b8   : > { %v1801_v45 = vsel %vm362_vm2, %v1800_v33, %v1799_v36  ;;  %v1995_v33 = vld [vmem:[%s4977_s17 + $0x97] sm:$0x1]  ;;  %v2018_v36 = vrot.slane %v1987_v32, 7  ;;  %v1734_v32 = vld [vmem:[%s5164_s15 + $0x25] sm:$0x1] }
 0x3b9   : > { %v1803_v54 = vsel %vm365_vm3, %v1802_v42, %v1801_v45  ;;  %v2034_v42 = vrot.slane %v1996_v35, 6 }
 0x3ba   : > { %v1805_v60 = vsel %vm368_vm4, %v1804_v52, %v1803_v54  ;;  %v1998_v52 = vld [vmem:[%s4977_s17 + $0xc7] sm:$0x1]  ;;  %v2036_v54 = vrot.slane %v1997_v40, 5  ;;  %v2221_v40 = vld [vmem:[%s4977_s17 + $0x18] sm:$0x1] }
 0x3be   : > { %v1414_v57 = vpop.f32.mrb[8].mxu1 }
 0x3bf   : > { %v1415_v58 = vadd.f32 %v1414_v57, %v5073_v50  ;;  %v4453_v59 = vpop.f32.mrb[9].mxu1  ;;  %v1792_v57 = vrot.slane %v1757_v46, 3 }
 0x3c0   : > { %v4730_v63 = vpop.eup %4729  ;;  %v1791_v59 = vsel %vm368_vm4, %v1790_v48, %v1789_v53  ;;  %v1990_v48 = vld [vmem:[%s4977_s17 + $0x47] sm:$0x1] }
 0x3c1   : > { %v1261_v4 = vadd.f32 1.0, %v4730_v63  ;;  %v1418_v5 = vmax.f32 %v1415_v58, 0.0  ;;  %v1806_v58 = vrot.slane %v1765_v47, 3  ;;  %v1767_v63 = vld [vmem:[%s4977_s17 + $0xf6] sm:$0x1] }
 0x3c3   : > { %4731 = vrcp.f32 %v1261_v4  ;;  %4455 = vmatpush3.msk.msra.mxu0 %vm481_vm10, %v1418_v5  ;;  %v1793_v4 = vsel %vm371_vm5, %v1792_v57, %v1791_v59  ;;  %v1807_v5 = vsel %vm371_vm5, %v1806_v58, %v1805_v60  ;;  %v1991_v58 = vld [vmem:[%s4977_s17 + $0x57] sm:$0x1]  ;;  %v2024_v60 = vrot.slane %v1990_v48, 4  ;;  %v2223_v48 = vld [vmem:[%s4977_s17 + $0x38] sm:$0x1] }
 0x3c4   : > { %4457 = vmatmul.mubr.msk.f32.vlgmr.msra.gmra.mrb[8].mxu0 %vm477_vm11, %v5082_v62  ;;  %4611 = vmatprep.subr.bf16.mxu0 %v4865_v0  ;;  %v1999_v59 = vld [vmem:[%s4977_s17 + $0xd7] sm:$0x1] }
 0x3c5   : > { %4463 = vmatprep.mubr.msk.f32.mxu0 %vm4866_vm0, %v4867_v1 }
 0x3ca   : > { %4614 = vmatpush3.bf16.xpose.msk.msra.mxu0 %vm5016_vm9, %v4612_v8 }
 0x3cb   : > { %4478 = vmatprep.subr.mxu0 %v4867_v1 }
 0x3cd   : > { %v4732_v10 = vpop.eup %4731 }
 0x3ce   : > { %v1269_v14 = vrot.slane %v4732_v10, 1  ;;  %v1270_v15 = vrot.slane %v4732_v10, 2  ;;  %v1271_v16 = vrot.slane %v4732_v10, 3  ;;  %v1276_v17 = vmul.f32 %v4732_v10, %v1264_v9 }
 0x3cf   : > { %v1796_v9 = vrot.slane %v1759_v61, 1  ;;  %v1810_v10 = vrot.slane %v1767_v63, 1  ;;  %v2038_v61 = vrot.slane %v1998_v52, 4  ;;  %v2231_v52 = vld [vmem:[%s4977_s17 + $0xb8] sm:$0x1] }
 0x3d0   : > { %v1277_v18 = vmul.f32 %v1269_v14, %v1265_v11  ;;  %v1278_v19 = vmul.f32 %v1270_v15, %v1266_v12  ;;  %v1279_v20 = vmul.f32 %v1271_v16, %v1267_v13  ;;  %1280 = vst.msk [vmem:[%s5180_s16 + $0x3] sm:$0x1] %vm577_vm12, %v1276_v17  ;;  %v1795_v12 = vsel %vm374_vm6, %v1794_v2, %v1793_v4  ;;  %v2000_v4 = vld [vmem:[%s4977_s17 + $0xe7] sm:$0x1] }
 0x3d1   : > { %4464 = vmatmul.mubr.msk.f32.vlgmr.msra.gmra.mrb[10].mxu0 %vm393_vm8, %v5026_v51  ;;  %v1809_v13 = vsel %vm374_vm6, %v1808_v3, %v1807_v5  ;;  %v1797_v16 = vsel %vm377_vm7, %v1796_v9, %v1795_v12  ;;  %v1992_v3 = vld [vmem:[%s4977_s17 + $0x67] sm:$0x1]  ;;  %v2026_v5 = vrot.slane %v1991_v58, 3  ;;  %v1993_v9 = vld [vmem:[%s4977_s17 + $0x77] sm:$0x1]  ;;  %v2042_v12 = vrot.slane %v2000_v4, 2 }
 0x3d2   : > { %1281 = vst.msk [vmem:[%s5180_s16 + $0x13] sm:$0x1] %vm577_vm12, %v1277_v18  ;;  %1282 = vst.msk [vmem:[%s5180_s16 + $0x23] sm:$0x1] %vm577_vm12, %v1278_v19  ;;  %4480 = vmatprep.mubr.msk.f32.mxu0 %vm4866_vm0, %v4867_v1  ;;  %v1811_v17 = vsel %vm377_vm7, %v1810_v10, %v1809_v13  ;;  %v1498_v19 = vld [vmem:[%s5164_s15 + $0x4] sm:$0x1] }
 0x3d3   : > { %1283 = vst.msk [vmem:[%s5180_s16 + $0x33] sm:$0x1] %vm577_vm12, %v1279_v20  ;;  %v4616_v18 = vpack.c.bf16 %v1811_v17, %v1797_v16  ;;  %v2001_v10 = vld [vmem:[%s4977_s17 + $0xf7] sm:$0x1] }
 0x497   : > { %v1488_v34 = vpop.f32.mrb[8].mxu0 }
 0x498   : > { %v1489_v37 = vadd.f32 %v1488_v34, %v5120_v26  ;;  %v4458_v38 = vpop.f32.mrb[9].mxu0  ;;  %v1988_v34 = vld [vmem:[%s4977_s17 + $0x27] sm:$0x1] }
 0x499   : > { %v1986_v38 = vld [vmem:[%s4977_s17 + $0x7] sm:$0x1]  ;;  %v2020_v41 = vrot.slane %v1988_v34, 6 }
 0x49a   : > { %v4244_v43 = vmul.f32 -1.442695, %v1489_v37  ;;  %v2032_v37 = vrot.slane %v1995_v33, 7  ;;  %v2019_v44 = vsel %vm359_vm1, %v2018_v36, %v1986_v38 }
 0x49b   : > { %v2021_v56 = vsel %vm362_vm2, %v2020_v41, %v2019_v44  ;;  %v2229_v41 = vld [vmem:[%s4977_s17 + $0x98] sm:$0x1]  ;;  %v2252_v44 = vrot.slane %v2221_v40, 7  ;;  %v1967_v40 = vld [vmem:[%s5164_s15 + $0x16] sm:$0x1] }
 0x49c   : > { %4733 = vpow2.f32 %v4244_v43  ;;  %v2033_v45 = vsel %vm359_vm1, %v2032_v37, %v1994_v39 }
 0x49d   : > { %v2035_v57 = vsel %vm362_vm2, %v2034_v42, %v2033_v45  ;;  %v2222_v42 = vld [vmem:[%s4977_s17 + $0x28] sm:$0x1]  ;;  %v2266_v45 = vrot.slane %v2229_v41, 7  ;;  %v1968_v41 = vld [vmem:[%s5164_s15 + $0x26] sm:$0x1] }
 0x49e   : > { %v2037_v2 = vsel %vm365_vm3, %v2036_v54, %v2035_v57 }
 0x4a4   : > { %v1648_v6 = vpop.f32.mrb[10].mxu0 }
 0x4a5   : > { %v1649_v7 = vadd.f32 %v1648_v6, %v5073_v50  ;;  %v4465_v8 = vpop.f32.mrb[11].mxu0  ;;  %v2040_v6 = vrot.slane %v1999_v59, 3 }
 0x4a6   : > { %v4734_v11 = vpop.eup %4733  ;;  %v2039_v8 = vsel %vm368_vm4, %v2038_v61, %v2037_v2  ;;  %v2232_v61 = vld [vmem:[%s4977_s17 + $0xc8] sm:$0x1]  ;;  %v2270_v2 = vrot.slane %v2231_v52, 5 }
 0x4a7   : > { %v1495_v14 = vadd.f32 1.0, %v4734_v11  ;;  %v1652_v15 = vmax.f32 %v1649_v7, 0.0  ;;  %v2028_v11 = vrot.slane %v1992_v3, 2 }
 0x4a9   : > { %4735 = vrcp.f32 %v1495_v14  ;;  %4467 = vmatpush3.msk.msra.mxu1 %vm481_vm10, %v1652_v15  ;;  %v2041_v14 = vsel %vm371_vm5, %v2040_v6, %v2039_v8  ;;  %v2225_v6 = vld [vmem:[%s4977_s17 + $0x58] sm:$0x1] }
 0x4aa   : > { %4469 = vmatmul.mubr.msk.f32.vlgmr.msra.gmra.mrb[10].mxu1 %vm477_vm11, %v5082_v62  ;;  %4615 = vmatprep.subr.bf16.mxu1 %v4865_v0 }
 0x4ab   : > { %4475 = vmatprep.mubr.msk.f32.mxu1 %vm4866_vm0, %v4867_v1 }
 0x4b0   : > { %4618 = vmatpush3.bf16.xpose.msk.msra.mxu1 %vm5016_vm9, %v4616_v18  ;;  %v2030_v18 = vrot.slane %v1993_v9, 1  ;;  %v2272_v9 = vrot.slane %v2232_v61, 4  ;;  %v2457_v61 = vld [vmem:[%s4977_s17 + $0x39] sm:$0x1] }
 0x4b1   : > { %4490 = vmatprep.subr.mxu1 %v4867_v1 }
 0x4b3   : > { %v4736_v20 = vpop.eup %4735 }
 0x4b4   : > { %v1503_v24 = vrot.slane %v4736_v20, 1  ;;  %v1504_v25 = vrot.slane %v4736_v20, 2  ;;  %v1505_v27 = vrot.slane %v4736_v20, 3  ;;  %v1510_v28 = vmul.f32 %v4736_v20, %v1498_v19 }
 0x4b5   : > { %v2044_v19 = vrot.slane %v2001_v10, 1 }
 0x4b6   : > { %v1511_v29 = vmul.f32 %v1503_v24, %v1499_v21  ;;  %v1512_v30 = vmul.f32 %v1504_v25, %v1500_v22  ;;  %v1513_v31 = vmul.f32 %v1505_v27, %v1501_v23  ;;  %1514 = vst.msk [vmem:[%s5180_s16 + $0x4] sm:$0x1] %vm577_vm12, %v1510_v28  ;;  %v2043_v22 = vsel %vm374_vm6, %v2042_v12, %v2041_v14  ;;  %v2226_v12 = vld [vmem:[%s4977_s17 + $0x68] sm:$0x1] }
 0x4b7   : > { %4476 = vmatmul.mubr.msk.f32.vlgmr.msra.gmra.mrb[12].mxu1 %vm393_vm8, %v5026_v51  ;;  %v1989_v51 = vld [vmem:[%s4977_s17 + $0x37] sm:$0x1]  ;;  %v2045_v27 = vsel %vm377_vm7, %v2044_v19, %v2043_v22  ;;  %v2260_v14 = vrot.slane %v2225_v6, 3  ;;  %v2235_v19 = vld [vmem:[%s4977_s17 + $0xf8] sm:$0x1] }
 0x4b8   : > { %1515 = vst.msk [vmem:[%s5180_s16 + $0x14] sm:$0x1] %vm577_vm12, %v1511_v29  ;;  %1516 = vst.msk [vmem:[%s5180_s16 + $0x24] sm:$0x1] %vm577_vm12, %v1512_v30  ;;  %4492 = vmatprep.mubr.msk.f32.mxu1 %vm4866_vm0, %v4867_v1  ;;  %v2022_v53 = vrot.slane %v1989_v51, 5 }
 0x4b9   : > { %1517 = vst.msk [vmem:[%s5180_s16 + $0x34] sm:$0x1] %vm577_vm12, %v1513_v31  ;;  %v1732_v29 = vld [vmem:[%s5164_s15 + $0x5] sm:$0x1]  ;;  %v1733_v31 = vld [vmem:[%s5164_s15 + $0x15] sm:$0x1] }
 0x4ba   : > { %v2023_v63 = vsel %vm365_vm3, %v2022_v53, %v2021_v56  ;;  %v5431_v51 = vld [vmem:[%s5996_s2] sm:$0x3]  ;;  %v2254_v53 = vrot.slane %v2222_v42, 6  ;;  %v1969_v42 = vld [vmem:[%s5164_s15 + $0x36] sm:$0x1] }
 0x4bb   : > { %v2025_v7 = vsel %vm368_vm4, %v2024_v60, %v2023_v63  ;;  %v2224_v60 = vld [vmem:[%s4977_s17 + $0x48] sm:$0x1]  ;;  %v2256_v63 = vrot.slane %v2223_v48, 5 }
 0x4bc   : > { %v2027_v13 = vsel %vm371_vm5, %v2026_v5, %v2025_v7  ;;  %v2233_v7 = vld [vmem:[%s4977_s17 + $0xd8] sm:$0x1]  ;;  %v2258_v8 = vrot.slane %v2224_v60, 4  ;;  %v2462_v60 = vld [vmem:[%s4977_s17 + $0x89] sm:$0x1] }
 0x4bd   : > { %v2029_v21 = vsel %vm374_vm6, %v2028_v11, %v2027_v13  ;;  %v2234_v13 = vld [vmem:[%s4977_s17 + $0xe8] sm:$0x1] }
 0x4be   : > { %v2031_v25 = vsel %vm377_vm7, %v2030_v18, %v2029_v21  ;;  %v2227_v18 = vld [vmem:[%s4977_s17 + $0x78] sm:$0x1]  ;;  %v2276_v21 = vrot.slane %v2234_v13, 2 }
 0x4bf   : > { %v4620_v28 = vpack.c.bf16 %v2045_v27, %v2031_v25 }
 0x57d   : > { %v1722_v43 = vpop.f32.mrb[10].mxu1 }
 0x57e   : > { %v1723_v46 = vadd.f32 %v1722_v43, %v5120_v26  ;;  %v4470_v47 = vpop.f32.mrb[11].mxu1  ;;  %v2230_v43 = vld [vmem:[%s4977_s17 + $0xa8] sm:$0x1] }
 0x57f   : > { %v2228_v47 = vld [vmem:[%s4977_s17 + $0x88] sm:$0x1]  ;;  %v2268_v54 = vrot.slane %v2230_v43, 6 }
 0x580   : > { %v4250_v55 = vmul.f32 -1.442695, %v1723_v46  ;;  %v2220_v46 = vld [vmem:[%s4977_s17 + $0x8] sm:$0x1]  ;;  %v2267_v57 = vsel %vm359_vm1, %v2266_v45, %v2228_v47 }
 0x581   : > { %v2253_v56 = vsel %vm359_vm1, %v2252_v44, %v2220_v46  ;;  %v2269_v5 = vsel %vm362_vm2, %v2268_v54, %v2267_v57  ;;  %v2463_v54 = vld [vmem:[%s4977_s17 + $0x99] sm:$0x1] }
 0x582   : > { %4737 = vpow2.f32 %v4250_v55  ;;  %v2255_v4 = vsel %vm362_vm2, %v2254_v53, %v2253_v56  ;;  %v2271_v11 = vsel %vm365_vm3, %v2270_v2, %v2269_v5  ;;  %v2455_v53 = vld [vmem:[%s4977_s17 + $0x19] sm:$0x1]  ;;  %v2464_v56 = vld [vmem:[%s4977_s17 + $0xa9] sm:$0x1] }
 0x583   : > { %v2257_v10 = vsel %vm365_vm3, %v2256_v63, %v2255_v4  ;;  %v2486_v57 = vrot.slane %v2455_v53, 7  ;;  %v2465_v63 = vld [vmem:[%s4977_s17 + $0xb9] sm:$0x1]  ;;  %v2201_v53 = vld [vmem:[%s5164_s15 + $0x17] sm:$0x1] }
 0x58a   : > { %v1882_v15 = vpop.f32.mrb[12].mxu1 }
 0x58b   : > { %v1883_v16 = vadd.f32 %v1882_v15, %v5073_v50  ;;  %v4477_v17 = vpop.f32.mrb[13].mxu1  ;;  %v2274_v15 = vrot.slane %v2233_v7, 3 }
 0x58c   : > { %v4738_v20 = vpop.eup %4737  ;;  %v2273_v17 = vsel %vm368_vm4, %v2272_v9, %v2271_v11  ;;  %v2458_v9 = vld [vmem:[%s4977_s17 + $0x49] sm:$0x1]  ;;  %v2490_v11 = vrot.slane %v2457_v61, 5 }
 0x58d   : > { %v1729_v23 = vadd.f32 1.0, %v4738_v20  ;;  %v1886_v24 = vmax.f32 %v1883_v16, 0.0  ;;  %v2259_v16 = vsel %vm368_vm4, %v2258_v8, %v2257_v10  ;;  %v2262_v20 = vrot.slane %v2226_v12, 2  ;;  %v2466_v10 = vld [vmem:[%s4977_s17 + $0xc9] sm:$0x1] }
 0x58e   : > { %v2261_v22 = vsel %vm371_vm5, %v2260_v14, %v2259_v16  ;;  %v2504_v12 = vrot.slane %v2465_v63, 5  ;;  %v2459_v16 = vld [vmem:[%s4977_s17 + $0x59] sm:$0x1] }
 0x58f   : > { %4739 = vrcp.f32 %v1729_v23  ;;  %4479 = vmatpush3.msk.msra.mxu0 %vm481_vm10, %v1886_v24  ;;  %v2275_v23 = vsel %vm371_vm5, %v2274_v15, %v2273_v17  ;;  %v2467_v17 = vld [vmem:[%s4977_s17 + $0xd9] sm:$0x1] }
 0x590   : > { %4481 = vmatmul.mubr.msk.f32.vlgmr.msra.gmra.mrb[12].mxu0 %vm477_vm11, %v5082_v62  ;;  %4619 = vmatprep.subr.bf16.mxu0 %v4865_v0  ;;  %v1735_v62 = vld [vmem:[%s5164_s15 + $0x35] sm:$0x1] }
 0x591   : > { %4487 = vmatprep.mubr.msk.f32.mxu0 %vm4866_vm0, %v4867_v1 }
 0x596   : > { %4622 = vmatpush3.bf16.xpose.msk.msra.mxu0 %vm5016_vm9, %v4620_v28  ;;  %v2264_v28 = vrot.slane %v2227_v18, 1  ;;  %v2492_v18 = vrot.slane %v2458_v9, 4  ;;  %v2696_v9 = vld [vmem:[%s4977_s17 + $0x8a] sm:$0x1] }
 0x597   : > { %4502 = vmatprep.subr.mxu0 %v4867_v1 }
 0x599   : > { %v4740_v30 = vpop.eup %4739 }
 0x59a   : > { %v1737_v33 = vrot.slane %v4740_v30, 1  ;;  %v1738_v34 = vrot.slane %v4740_v30, 2  ;;  %v1739_v35 = vrot.slane %v4740_v30, 3  ;;  %v1744_v36 = vmul.f32 %v4740_v30, %v1732_v29 }
 0x59b   : > { %v2278_v29 = vrot.slane %v2235_v19, 1  ;;  %v2506_v19 = vrot.slane %v2466_v10, 4  ;;  %v2691_v10 = vld [vmem:[%s4977_s17 + $0x3a] sm:$0x1] }
 0x59c   : > { %v1745_v37 = vmul.f32 %v1737_v33, %v1733_v31  ;;  %v1746_v38 = vmul.f32 %v1738_v34, %v1734_v32  ;;  %v1747_v39 = vmul.f32 %v1739_v35, %v1735_v62  ;;  %1748 = vst.msk [vmem:[%s5180_s16 + $0x5] sm:$0x1] %vm577_vm12, %v1744_v36  ;;  %v2263_v31 = vsel %vm374_vm6, %v2262_v20, %v2261_v22  ;;  %v5479_v36 = vld [vmem:[%s5998_s4] sm:$0xf]  ;;  %v2460_v22 = vld [vmem:[%s4977_s17 + $0x69] sm:$0x1] }
 0x59d   : > { %4488 = vmatmul.mubr.msk.f32.vlgmr.msra.gmra.mrb[14].mxu0 %vm393_vm8, %v5431_v51  ;;  %v2277_v32 = vsel %vm374_vm6, %v2276_v21, %v2275_v23  ;;  %v2265_v34 = vsel %vm377_vm7, %v2264_v28, %v2263_v31  ;;  %v2468_v23 = vld [vmem:[%s4977_s17 + $0xe9] sm:$0x1]  ;;  %v2496_v31 = vrot.slane %v2460_v22, 2 }
 0x59e   : > { %1749 = vst.msk [vmem:[%s5180_s16 + $0x15] sm:$0x1] %vm577_vm12, %v1745_v37  ;;  %1750 = vst.msk [vmem:[%s5180_s16 + $0x25] sm:$0x1] %vm577_vm12, %v1746_v38  ;;  %4504 = vmatprep.mubr.msk.f32.mxu0 %vm4866_vm0, %v4867_v1  ;;  %v2279_v35 = vsel %vm377_vm7, %v2278_v29, %v2277_v32  ;;  %v1966_v38 = vld [vmem:[%s5164_s15 + $0x6] sm:$0x1] }
 0x59f   : > { %1751 = vst.msk [vmem:[%s5180_s16 + $0x35] sm:$0x1] %vm577_vm12, %v1747_v39  ;;  %v4624_v37 = vpack.c.bf16 %v2279_v35, %v2265_v34  ;;  %v2461_v29 = vld [vmem:[%s4977_s17 + $0x79] sm:$0x1]  ;;  %v2510_v32 = vrot.slane %v2468_v23, 2 }
 0x663   : > { %v1956_v55 = vpop.f32.mrb[12].mxu0 }
 0x664   : > { %v1957_v58 = vadd.f32 %v1956_v55, %v5120_v26  ;;  %v4482_v59 = vpop.f32.mrb[13].mxu0  ;;  %v2456_v55 = vld [vmem:[%s4977_s17 + $0x29] sm:$0x1] }
 0x665   : > { %v2454_v59 = vld [vmem:[%s4977_s17 + $0x9] sm:$0x1]  ;;  %v2488_v2 = vrot.slane %v2456_v55, 6  ;;  %v2203_v55 = vld [vmem:[%s5164_s15 + $0x37] sm:$0x1] }
 0x666   : > { %v4256_v3 = vmul.f32 -1.442695, %v1957_v58  ;;  %v2500_v58 = vrot.slane %v2463_v54, 7  ;;  %v2487_v5 = vsel %vm359_vm1, %v2486_v57, %v2454_v59  ;;  %v2202_v54 = vld [vmem:[%s5164_s15 + $0x27] sm:$0x1] }
 0x667   : > { %v2489_v14 = vsel %vm362_vm2, %v2488_v2, %v2487_v5  ;;  %v2689_v2 = vld [vmem:[%s4977_s17 + $0x1a] sm:$0x1]  ;;  %v2698_v5 = vld [vmem:[%s4977_s17 + $0xaa] sm:$0x1] }
 0x668   : > { %4741 = vpow2.f32 %v4256_v3  ;;  %v2502_v3 = vrot.slane %v2464_v56, 6  ;;  %v2501_v6 = vsel %vm359_vm1, %v2500_v58, %v2462_v60  ;;  %v2491_v20 = vsel %vm365_vm3, %v2490_v11, %v2489_v14  ;;  %v2699_v11 = vld [vmem:[%s4977_s17 + $0xba] sm:$0x1] }
 0x669   : > { %v2738_v22 = vrot.slane %v2699_v11, 5 }
 0x66a   : > { %v2503_v15 = vsel %vm362_vm2, %v2502_v3, %v2501_v6  ;;  %v2697_v3 = vld [vmem:[%s4977_s17 + $0x9a] sm:$0x1]  ;;  %v2720_v6 = vrot.slane %v2689_v2, 7  ;;  %v2435_v2 = vld [vmem:[%s5164_s15 + $0x18] sm:$0x1] }
 0x66b   : > { %v2505_v21 = vsel %vm365_vm3, %v2504_v12, %v2503_v15 }
 0x66c   : > { %v2507_v28 = vsel %vm368_vm4, %v2506_v19, %v2505_v21  ;;  %v2692_v19 = vld [vmem:[%s4977_s17 + $0x4a] sm:$0x1]  ;;  %v2724_v21 = vrot.slane %v2691_v10, 5 }
 0x670   : > { %v2116_v24 = vpop.f32.mrb[14].mxu0 }
 0x671   : > { %v2117_v25 = vadd.f32 %v2116_v24, %v5073_v50  ;;  %v4489_v27 = vpop.f32.mrb[15].mxu0  ;;  %v2494_v24 = vrot.slane %v2459_v16, 3 }
 0x672   : > { %v4742_v30 = vpop.eup %4741  ;;  %v2493_v27 = vsel %vm368_vm4, %v2492_v18, %v2491_v20  ;;  %v2700_v20 = vld [vmem:[%s4977_s17 + $0xca] sm:$0x1] }
 0x673   : > { %v1963_v62 = vadd.f32 1.0, %v4742_v30  ;;  %v2120_v33 = vmax.f32 %v2117_v25, 0.0  ;;  %v2508_v25 = vrot.slane %v2467_v17, 3  ;;  %v2469_v30 = vld [vmem:[%s4977_s17 + $0xf9] sm:$0x1] }
 0x675   : > { %4743 = vrcp.f32 %v1963_v62  ;;  %4491 = vmatpush3.msk.msra.mxu1 %vm481_vm10, %v2120_v33  ;;  %v2495_v62 = vsel %vm371_vm5, %v2494_v24, %v2493_v27  ;;  %v2509_v33 = vsel %vm371_vm5, %v2508_v25, %v2507_v28  ;;  %v2693_v27 = vld [vmem:[%s4977_s17 + $0x5a] sm:$0x1] }
 0x676   : > { %4493 = vmatmul.mubr.msk.f32.vlgmr.msra.gmra.mrb[14].mxu1 %vm477_vm11, %v5479_v36  ;;  %4623 = vmatprep.subr.bf16.mxu1 %v4865_v0  ;;  %v2701_v28 = vld [vmem:[%s4977_s17 + $0xda] sm:$0x1] }
 0x677   : > { %4499 = vmatprep.mubr.msk.f32.mxu1 %vm4866_vm0, %v4867_v1 }
 0x67c   : > { %4626 = vmatpush3.bf16.xpose.msk.msra.mxu1 %vm5016_vm9, %v4624_v37 }
 0x67d   : > { %4514 = vmatprep.subr.mxu1 %v4867_v1 }
 0x67f   : > { %v4744_v39 = vpop.eup %4743 }
 0x680   : > { %v1971_v43 = vrot.slane %v4744_v39, 1  ;;  %v1972_v44 = vrot.slane %v4744_v39, 2  ;;  %v1973_v45 = vrot.slane %v4744_v39, 3  ;;  %v1978_v46 = vmul.f32 %v4744_v39, %v1966_v38 }
 0x681   : > { %v2498_v38 = vrot.slane %v2461_v29, 1  ;;  %v2512_v39 = vrot.slane %v2469_v30, 1  ;;  %v2726_v29 = vrot.slane %v2692_v19, 4  ;;  %v2740_v30 = vrot.slane %v2700_v20, 4  ;;  %v2930_v19 = vld [vmem:[%s4977_s17 + $0x8b] sm:$0x1] }
 0x682   : > { %v1979_v47 = vmul.f32 %v1971_v43, %v1967_v40  ;;  %v1980_v48 = vmul.f32 %v1972_v44, %v1968_v41  ;;  %v1981_v52 = vmul.f32 %v1973_v45, %v1969_v42  ;;  %1982 = vst.msk [vmem:[%s5180_s16 + $0x6] sm:$0x1] %vm577_vm12, %v1978_v46  ;;  %v2497_v41 = vsel %vm374_vm6, %v2496_v31, %v2495_v62  ;;  %v2694_v62 = vld [vmem:[%s4977_s17 + $0x6a] sm:$0x1]  ;;  %v2925_v20 = vld [vmem:[%s4977_s17 + $0x3b] sm:$0x1] }
 0x683   : > { %4500 = vmatmul.mubr.msk.f32.vlgmr.msra.gmra.mrb[16].mxu1 %vm393_vm8, %v5431_v51  ;;  %v2511_v42 = vsel %vm374_vm6, %v2510_v32, %v2509_v33  ;;  %v2499_v45 = vsel %vm377_vm7, %v2498_v38, %v2497_v41  ;;  %v2702_v33 = vld [vmem:[%s4977_s17 + $0xea] sm:$0x1]  ;;  %v2730_v41 = vrot.slane %v2694_v62, 2 }
 0x684   : > { %1983 = vst.msk [vmem:[%s5180_s16 + $0x16] sm:$0x1] %vm577_vm12, %v1979_v47  ;;  %1984 = vst.msk [vmem:[%s5180_s16 + $0x26] sm:$0x1] %vm577_vm12, %v1980_v48  ;;  %4516 = vmatprep.mubr.msk.f32.mxu1 %vm4866_vm0, %v4867_v1  ;;  %v2513_v46 = vsel %vm377_vm7, %v2512_v39, %v2511_v42  ;;  %v2200_v48 = vld [vmem:[%s5164_s15 + $0x7] sm:$0x1] }
 0x685   : > { %1985 = vst.msk [vmem:[%s5180_s16 + $0x36] sm:$0x1] %vm577_vm12, %v1981_v52  ;;  %v4628_v47 = vpack.c.bf16 %v2513_v46, %v2499_v45  ;;  %v2695_v39 = vld [vmem:[%s4977_s17 + $0x7a] sm:$0x1]  ;;  %v2744_v42 = vrot.slane %v2702_v33, 2 }
 0x749   : > { %v2190_v4 = vpop.f32.mrb[14].mxu1 }
 0x74a   : > { %v2191_v7 = vadd.f32 %v2190_v4, %v5120_v26  ;;  %v4494_v8 = vpop.f32.mrb[15].mxu1  ;;  %v2690_v4 = vld [vmem:[%s4977_s17 + $0x2a] sm:$0x1] }
 0x74b   : > { %v2688_v8 = vld [vmem:[%s4977_s17 + $0xa] sm:$0x1]  ;;  %v2722_v12 = vrot.slane %v2690_v4, 6  ;;  %v2437_v4 = vld [vmem:[%s5164_s15 + $0x38] sm:$0x1] }
 0x74c   : > { %v4262_v13 = vmul.f32 -1.442695, %v2191_v7  ;;  %v2734_v7 = vrot.slane %v2697_v3, 7  ;;  %v2721_v15 = vsel %vm359_vm1, %v2720_v6, %v2688_v8  ;;  %v2436_v3 = vld [vmem:[%s5164_s15 + $0x28] sm:$0x1] }
 0x74d   : > { %v2723_v24 = vsel %vm362_vm2, %v2722_v12, %v2721_v15  ;;  %v2923_v12 = vld [vmem:[%s4977_s17 + $0x1b] sm:$0x1]  ;;  %v2932_v15 = vld [vmem:[%s4977_s17 + $0xab] sm:$0x1] }
 0x74e   : > { %4745 = vpow2.f32 %v4262_v13  ;;  %v2736_v13 = vrot.slane %v2698_v5, 6  ;;  %v2735_v16 = vsel %vm359_vm1, %v2734_v7, %v2696_v9  ;;  %v2725_v31 = vsel %vm365_vm3, %v2724_v21, %v2723_v24  ;;  %v2933_v21 = vld [vmem:[%s4977_s17 + $0xbb] sm:$0x1] }
 0x74f   : > { %v2972_v62 = vrot.slane %v2933_v21, 5 }
 0x750   : > { %v2737_v25 = vsel %vm362_vm2, %v2736_v13, %v2735_v16  ;;  %v2931_v13 = vld [vmem:[%s4977_s17 + $0x9b] sm:$0x1]  ;;  %v2954_v16 = vrot.slane %v2923_v12, 7  ;;  %v2669_v12 = vld [vmem:[%s5164_s15 + $0x19] sm:$0x1] }
 0x751   : > { %v2739_v32 = vsel %vm365_vm3, %v2738_v22, %v2737_v25 }
 0x752   : > { %v2741_v38 = vsel %vm368_vm4, %v2740_v30, %v2739_v32  ;;  %v2926_v30 = vld [vmem:[%s4977_s17 + $0x4b] sm:$0x1]  ;;  %v2958_v32 = vrot.slane %v2925_v20, 5 }
 0x756   : > { %v2350_v34 = vpop.f32.mrb[16].mxu1 }
 0x757   : > { %v2351_v35 = vadd.f32 %v2350_v34, %v5073_v50  ;;  %v4501_v37 = vpop.f32.mrb[17].mxu1  ;;  %v2728_v34 = vrot.slane %v2693_v27, 3 }
 0x758   : > { %v4746_v40 = vpop.eup %4745  ;;  %v2727_v37 = vsel %vm368_vm4, %v2726_v29, %v2725_v31  ;;  %v2934_v31 = vld [vmem:[%s4977_s17 + $0xcb] sm:$0x1] }
 0x759   : > { %v2197_v43 = vadd.f32 1.0, %v4746_v40  ;;  %v2354_v44 = vmax.f32 %v2351_v35, 0.0  ;;  %v2742_v35 = vrot.slane %v2701_v28, 3  ;;  %v2703_v40 = vld [vmem:[%s4977_s17 + $0xfa] sm:$0x1] }
 0x75b   : > { %4747 = vrcp.f32 %v2197_v43  ;;  %4503 = vmatpush3.msk.msra.mxu0 %vm481_vm10, %v2354_v44  ;;  %v2729_v43 = vsel %vm371_vm5, %v2728_v34, %v2727_v37  ;;  %v2743_v44 = vsel %vm371_vm5, %v2742_v35, %v2741_v38  ;;  %v2927_v37 = vld [vmem:[%s4977_s17 + $0x5b] sm:$0x1] }
 0x75c   : > { %4505 = vmatmul.mubr.msk.f32.vlgmr.msra.gmra.mrb[16].mxu0 %vm477_vm11, %v5479_v36  ;;  %4627 = vmatprep.subr.bf16.mxu0 %v4865_v0  ;;  %v2935_v38 = vld [vmem:[%s4977_s17 + $0xdb] sm:$0x1] }
 0x75d   : > { %4511 = vmatprep.mubr.msk.f32.mxu0 %vm4866_vm0, %v4867_v1 }
 0x762   : > { %4630 = vmatpush3.bf16.xpose.msk.msra.mxu0 %vm5016_vm9, %v4628_v47 }
 0x763   : > { %4526 = vmatprep.subr.mxu0 %v4867_v1 }
 0x765   : > { %v4748_v52 = vpop.eup %4747 }
 0x766   : > { %v2205_v56 = vrot.slane %v4748_v52, 1  ;;  %v2206_v57 = vrot.slane %v4748_v52, 2  ;;  %v2207_v58 = vrot.slane %v4748_v52, 3  ;;  %v2212_v59 = vmul.f32 %v4748_v52, %v2200_v48 }
 0x767   : > { %v2732_v48 = vrot.slane %v2695_v39, 1  ;;  %v2746_v52 = vrot.slane %v2703_v40, 1  ;;  %v2960_v39 = vrot.slane %v2926_v30, 4  ;;  %v2974_v40 = vrot.slane %v2934_v31, 4  ;;  %v3164_v30 = vld [vmem:[%s4977_s17 + $0x8c] sm:$0x1] }
 0x768   : > { %v2213_v60 = vmul.f32 %v2205_v56, %v2201_v53  ;;  %v2214_v61 = vmul.f32 %v2206_v57, %v2202_v54  ;;  %v2215_v63 = vmul.f32 %v2207_v58, %v2203_v55  ;;  %2216 = vst.msk [vmem:[%s5180_s16 + $0x7] sm:$0x1] %vm577_vm12, %v2212_v59  ;;  %v2731_v54 = vsel %vm374_vm6, %v2730_v41, %v2729_v43  ;;  %v2928_v43 = vld [vmem:[%s4977_s17 + $0x6b] sm:$0x1]  ;;  %v3159_v31 = vld [vmem:[%s4977_s17 + $0x3c] sm:$0x1] }
 0x769   : > { %4512 = vmatmul.mubr.msk.f32.vlgmr.msra.gmra.mrb[18].mxu0 %vm393_vm8, %v5431_v51  ;;  %v2745_v55 = vsel %vm374_vm6, %v2744_v42, %v2743_v44  ;;  %v2733_v58 = vsel %vm377_vm7, %v2732_v48, %v2731_v54  ;;  %v2936_v44 = vld [vmem:[%s4977_s17 + $0xeb] sm:$0x1]  ;;  %v2964_v54 = vrot.slane %v2928_v43, 2 }
 0x76a   : > { %2217 = vst.msk [vmem:[%s5180_s16 + $0x17] sm:$0x1] %vm577_vm12, %v2213_v60  ;;  %2218 = vst.msk [vmem:[%s5180_s16 + $0x27] sm:$0x1] %vm577_vm12, %v2214_v61  ;;  %4528 = vmatprep.mubr.msk.f32.mxu0 %vm4866_vm0, %v4867_v1  ;;  %v2747_v59 = vsel %vm377_vm7, %v2746_v52, %v2745_v55  ;;  %v2434_v61 = vld [vmem:[%s5164_s15 + $0x8] sm:$0x1] }
 0x76b   : > { %2219 = vst.msk [vmem:[%s5180_s16 + $0x37] sm:$0x1] %vm577_vm12, %v2215_v63  ;;  %v4632_v60 = vpack.c.bf16 %v2747_v59, %v2733_v58  ;;  %v2929_v52 = vld [vmem:[%s4977_s17 + $0x7b] sm:$0x1]  ;;  %v2978_v55 = vrot.slane %v2936_v44, 2 }
 0x82f   : > { %v2424_v14 = vpop.f32.mrb[16].mxu0 }
 0x830   : > { %v2425_v17 = vadd.f32 %v2424_v14, %v5120_v26  ;;  %v4506_v18 = vpop.f32.mrb[17].mxu0  ;;  %v2924_v14 = vld [vmem:[%s4977_s17 + $0x2b] sm:$0x1] }
 0x831   : > { %v2922_v18 = vld [vmem:[%s4977_s17 + $0xb] sm:$0x1]  ;;  %v2956_v22 = vrot.slane %v2924_v14, 6  ;;  %v2671_v14 = vld [vmem:[%s5164_s15 + $0x39] sm:$0x1] }
 0x832   : > { %v4268_v23 = vmul.f32 -1.442695, %v2425_v17  ;;  %v2968_v17 = vrot.slane %v2931_v13, 7  ;;  %v2955_v25 = vsel %vm359_vm1, %v2954_v16, %v2922_v18  ;;  %v2670_v13 = vld [vmem:[%s5164_s15 + $0x29] sm:$0x1] }
 0x833   : > { %v2957_v34 = vsel %vm362_vm2, %v2956_v22, %v2955_v25  ;;  %v3157_v22 = vld [vmem:[%s4977_s17 + $0x1c] sm:$0x1]  ;;  %v3166_v25 = vld [vmem:[%s4977_s17 + $0xac] sm:$0x1] }
 0x834   : > { %4749 = vpow2.f32 %v4268_v23  ;;  %v2970_v23 = vrot.slane %v2932_v15, 6  ;;  %v2969_v27 = vsel %vm359_vm1, %v2968_v17, %v2930_v19  ;;  %v2959_v41 = vsel %vm365_vm3, %v2958_v32, %v2957_v34  ;;  %v3167_v32 = vld [vmem:[%s4977_s17 + $0xbc] sm:$0x1] }
 0x835   : > { %v3206_v43 = vrot.slane %v3167_v32, 5 }
 0x836   : > { %v2971_v35 = vsel %vm362_vm2, %v2970_v23, %v2969_v27  ;;  %v3165_v23 = vld [vmem:[%s4977_s17 + $0x9c] sm:$0x1]  ;;  %v3188_v27 = vrot.slane %v3157_v22, 7  ;;  %v2903_v22 = vld [vmem:[%s5164_s15 + $0x1a] sm:$0x1] }
 0x837   : > { %v2973_v42 = vsel %vm365_vm3, %v2972_v62, %v2971_v35 }
 0x838   : > { %v2975_v48 = vsel %vm368_vm4, %v2974_v40, %v2973_v42  ;;  %v3160_v40 = vld [vmem:[%s4977_s17 + $0x4c] sm:$0x1]  ;;  %v3192_v42 = vrot.slane %v3159_v31, 5 }
 0x83c   : > { %v2584_v45 = vpop.f32.mrb[18].mxu0 }
 0x83d   : > { %v2585_v46 = vadd.f32 %v2584_v45, %v5073_v50  ;;  %v4513_v47 = vpop.f32.mrb[19].mxu0  ;;  %v2962_v45 = vrot.slane %v2927_v37, 3 }
 0x83e   : > { %v4750_v53 = vpop.eup %4749  ;;  %v2961_v47 = vsel %vm368_vm4, %v2960_v39, %v2959_v41  ;;  %v3168_v41 = vld [vmem:[%s4977_s17 + $0xcc] sm:$0x1] }
 0x83f   : > { %v2431_v56 = vadd.f32 1.0, %v4750_v53  ;;  %v2588_v57 = vmax.f32 %v2585_v46, 0.0  ;;  %v2976_v46 = vrot.slane %v2935_v38, 3  ;;  %v2937_v53 = vld [vmem:[%s4977_s17 + $0xfb] sm:$0x1] }
 0x841   : > { %4751 = vrcp.f32 %v2431_v56  ;;  %4515 = vmatpush3.msk.msra.mxu1 %vm481_vm10, %v2588_v57  ;;  %v2963_v56 = vsel %vm371_vm5, %v2962_v45, %v2961_v47  ;;  %v2977_v57 = vsel %vm371_vm5, %v2976_v46, %v2975_v48  ;;  %v3161_v47 = vld [vmem:[%s4977_s17 + $0x5c] sm:$0x1] }
 0x842   : > { %4517 = vmatmul.mubr.msk.f32.vlgmr.msra.gmra.mrb[18].mxu1 %vm477_vm11, %v5479_v36  ;;  %4631 = vmatprep.subr.bf16.mxu1 %v4865_v0  ;;  %v3169_v48 = vld [vmem:[%s4977_s17 + $0xdc] sm:$0x1] }
 0x843   : > { %4523 = vmatprep.mubr.msk.f32.mxu1 %vm4866_vm0, %v4867_v1 }
 0x848   : > { %4634 = vmatpush3.bf16.xpose.msk.msra.mxu1 %vm5016_vm9, %v4632_v60 }
 0x849   : > { %4538 = vmatprep.subr.mxu1 %v4867_v1 }
 0x84b   : > { %v4752_v63 = vpop.eup %4751 }
 0x84c   : > { %v2439_v5 = vrot.slane %v4752_v63, 1  ;;  %v2440_v6 = vrot.slane %v4752_v63, 2  ;;  %v2441_v7 = vrot.slane %v4752_v63, 3  ;;  %v2446_v8 = vmul.f32 %v4752_v63, %v2434_v61 }
 0x84d   : > { %v2966_v61 = vrot.slane %v2929_v52, 1  ;;  %v2980_v63 = vrot.slane %v2937_v53, 1  ;;  %v3194_v52 = vrot.slane %v3160_v40, 4  ;;  %v3208_v53 = vrot.slane %v3168_v41, 4  ;;  %v3398_v40 = vld [vmem:[%s4977_s17 + $0x8d] sm:$0x1] }
 0x84e   : > { %v2447_v9 = vmul.f32 %v2439_v5, %v2435_v2  ;;  %v2448_v10 = vmul.f32 %v2440_v6, %v2436_v3  ;;  %v2449_v11 = vmul.f32 %v2441_v7, %v2437_v4  ;;  %2450 = vst.msk [vmem:[%s5180_s16 + $0x8] sm:$0x1] %vm577_vm12, %v2446_v8  ;;  %v2965_v3 = vsel %vm374_vm6, %v2964_v54, %v2963_v56  ;;  %v3162_v56 = vld [vmem:[%s4977_s17 + $0x6c] sm:$0x1]  ;;  %v3393_v41 = vld [vmem:[%s4977_s17 + $0x3d] sm:$0x1] }
 0x84f   : > { %4524 = vmatmul.mubr.msk.f32.vlgmr.msra.gmra.mrb[20].mxu1 %vm393_vm8, %v5431_v51  ;;  %v2979_v4 = vsel %vm374_vm6, %v2978_v55, %v2977_v57  ;;  %v2967_v7 = vsel %vm377_vm7, %v2966_v61, %v2965_v3  ;;  %v3170_v57 = vld [vmem:[%s4977_s17 + $0xec] sm:$0x1]  ;;  %v3198_v3 = vrot.slane %v3162_v56, 2 }
 0x850   : > { %2451 = vst.msk [vmem:[%s5180_s16 + $0x18] sm:$0x1] %vm577_vm12, %v2447_v9  ;;  %2452 = vst.msk [vmem:[%s5180_s16 + $0x28] sm:$0x1] %vm577_vm12, %v2448_v10  ;;  %4540 = vmatprep.mubr.msk.f32.mxu1 %vm4866_vm0, %v4867_v1  ;;  %v2981_v8 = vsel %vm377_vm7, %v2980_v63, %v2979_v4  ;;  %v2668_v10 = vld [vmem:[%s5164_s15 + $0x9] sm:$0x1] }
 0x851   : > { %2453 = vst.msk [vmem:[%s5180_s16 + $0x38] sm:$0x1] %vm577_vm12, %v2449_v11  ;;  %v4636_v9 = vpack.c.bf16 %v2981_v8, %v2967_v7  ;;  %v3163_v63 = vld [vmem:[%s4977_s17 + $0x7c] sm:$0x1]  ;;  %v3212_v4 = vrot.slane %v3170_v57, 2 }
 0x915   : > { %v2658_v24 = vpop.f32.mrb[18].mxu1 }
 0x916   : > { %v2659_v28 = vadd.f32 %v2658_v24, %v5120_v26  ;;  %v4518_v29 = vpop.f32.mrb[19].mxu1  ;;  %v3158_v24 = vld [vmem:[%s4977_s17 + $0x2c] sm:$0x1] }
 0x917   : > { %v3156_v29 = vld [vmem:[%s4977_s17 + $0xc] sm:$0x1]  ;;  %v3190_v62 = vrot.slane %v3158_v24, 6  ;;  %v2905_v24 = vld [vmem:[%s5164_s15 + $0x3a] sm:$0x1] }
 0x918   : > { %v4274_v33 = vmul.f32 -1.442695, %v2659_v28  ;;  %v3202_v28 = vrot.slane %v3165_v23, 7  ;;  %v3189_v35 = vsel %vm359_vm1, %v3188_v27, %v3156_v29  ;;  %v2904_v23 = vld [vmem:[%s5164_s15 + $0x2a] sm:$0x1] }
 0x919   : > { %v3191_v45 = vsel %vm362_vm2, %v3190_v62, %v3189_v35  ;;  %v3391_v62 = vld [vmem:[%s4977_s17 + $0x1d] sm:$0x1]  ;;  %v3400_v35 = vld [vmem:[%s4977_s17 + $0xad] sm:$0x1] }
 0x91a   : > { %4753 = vpow2.f32 %v4274_v33  ;;  %v3204_v33 = vrot.slane %v3166_v25, 6  ;;  %v3203_v37 = vsel %vm359_vm1, %v3202_v28, %v3164_v30  ;;  %v3193_v54 = vsel %vm365_vm3, %v3192_v42, %v3191_v45  ;;  %v3401_v42 = vld [vmem:[%s4977_s17 + $0xbd] sm:$0x1] }
 0x91b   : > { %v3440_v56 = vrot.slane %v3401_v42, 5 }
 0x91c   : > { %v3205_v46 = vsel %vm362_vm2, %v3204_v33, %v3203_v37  ;;  %v3399_v33 = vld [vmem:[%s4977_s17 + $0x9d] sm:$0x1]  ;;  %v3422_v37 = vrot.slane %v3391_v62, 7  ;;  %v3137_v62 = vld [vmem:[%s5164_s15 + $0x1b] sm:$0x1] }
 0x91d   : > { %v3207_v55 = vsel %vm365_vm3, %v3206_v43, %v3205_v46 }
 0x91e   : > { %v3209_v61 = vsel %vm368_vm4, %v3208_v53, %v3207_v55  ;;  %v3394_v53 = vld [vmem:[%s4977_s17 + $0x4d] sm:$0x1]  ;;  %v3426_v55 = vrot.slane %v3393_v41, 5 }
 0x922   : > { %v2818_v58 = vpop.f32.mrb[20].mxu1 }
 0x923   : > { %v2819_v59 = vadd.f32 %v2818_v58, %v5073_v50  ;;  %v4525_v60 = vpop.f32.mrb[21].mxu1  ;;  %v3196_v58 = vrot.slane %v3161_v47, 3 }
 0x924   : > { %v4754_v2 = vpop.eup %4753  ;;  %v3195_v60 = vsel %vm368_vm4, %v3194_v52, %v3193_v54  ;;  %v3402_v54 = vld [vmem:[%s4977_s17 + $0xcd] sm:$0x1] }
 0x925   : > { %v2665_v5 = vadd.f32 1.0, %v4754_v2  ;;  %v2822_v6 = vmax.f32 %v2819_v59, 0.0  ;;  %v3210_v59 = vrot.slane %v3169_v48, 3  ;;  %v3171_v2 = vld [vmem:[%s4977_s17 + $0xfc] sm:$0x1] }
 0x927   : > { %4755 = vrcp.f32 %v2665_v5  ;;  %4527 = vmatpush3.msk.msra.mxu0 %vm481_vm10, %v2822_v6  ;;  %v3197_v5 = vsel %vm371_vm5, %v3196_v58, %v3195_v60  ;;  %v3211_v6 = vsel %vm371_vm5, %v3210_v59, %v3209_v61  ;;  %v3395_v60 = vld [vmem:[%s4977_s17 + $0x5d] sm:$0x1] }
 0x928   : > { %4529 = vmatmul.mubr.msk.f32.vlgmr.msra.gmra.mrb[20].mxu0 %vm477_vm11, %v5479_v36  ;;  %4635 = vmatprep.subr.bf16.mxu0 %v4865_v0  ;;  %v3403_v61 = vld [vmem:[%s4977_s17 + $0xdd] sm:$0x1] }
 0x929   : > { %4535 = vmatprep.mubr.msk.f32.mxu0 %vm4866_vm0, %v4867_v1 }
 0x92e   : > { %4638 = vmatpush3.bf16.xpose.msk.msra.mxu0 %vm5016_vm9, %v4636_v9 }
 0x92f   : > { %4550 = vmatprep.subr.mxu0 %v4867_v1 }
 0x931   : > { %v4756_v11 = vpop.eup %4755 }
 0x932   : > { %v2673_v15 = vrot.slane %v4756_v11, 1  ;;  %v2674_v16 = vrot.slane %v4756_v11, 2  ;;  %v2675_v17 = vrot.slane %v4756_v11, 3  ;;  %v2680_v18 = vmul.f32 %v4756_v11, %v2668_v10 }
 0x933   : > { %v3200_v10 = vrot.slane %v3163_v63, 1  ;;  %v3214_v11 = vrot.slane %v3171_v2, 1  ;;  %v3428_v63 = vrot.slane %v3394_v53, 4  ;;  %v3442_v2 = vrot.slane %v3402_v54, 4  ;;  %v3632_v53 = vld [vmem:[%s4977_s17 + $0x8e] sm:$0x1] }
 0x934   : > { %v2681_v19 = vmul.f32 %v2673_v15, %v2669_v12  ;;  %v2682_v20 = vmul.f32 %v2674_v16, %v2670_v13  ;;  %v2683_v21 = vmul.f32 %v2675_v17, %v2671_v14  ;;  %2684 = vst.msk [vmem:[%s5180_s16 + $0x9] sm:$0x1] %vm577_vm12, %v2680_v18  ;;  %v3199_v13 = vsel %vm374_vm6, %v3198_v3, %v3197_v5  ;;  %v3396_v5 = vld [vmem:[%s4977_s17 + $0x6d] sm:$0x1]  ;;  %v3635_v54 = vld [vmem:[%s4977_s17 + $0xbe] sm:$0x1] }
 0x935   : > { %4536 = vmatmul.mubr.msk.f32.vlgmr.msra.gmra.mrb[22].mxu0 %vm393_vm8, %v5431_v51  ;;  %v3213_v14 = vsel %vm374_vm6, %v3212_v4, %v3211_v6  ;;  %v3201_v17 = vsel %vm377_vm7, %v3200_v10, %v3199_v13  ;;  %v3404_v6 = vld [vmem:[%s4977_s17 + $0xed] sm:$0x1]  ;;  %v3432_v13 = vrot.slane %v3396_v5, 2 }
 0x936   : > { %2685 = vst.msk [vmem:[%s5180_s16 + $0x19] sm:$0x1] %vm577_vm12, %v2681_v19  ;;  %2686 = vst.msk [vmem:[%s5180_s16 + $0x29] sm:$0x1] %vm577_vm12, %v2682_v20  ;;  %4552 = vmatprep.mubr.msk.f32.mxu0 %vm4866_vm0, %v4867_v1  ;;  %v3215_v18 = vsel %vm377_vm7, %v3214_v11, %v3213_v14  ;;  %v2902_v20 = vld [vmem:[%s5164_s15 + $0xa] sm:$0x1] }
 0x937   : > { %2687 = vst.msk [vmem:[%s5180_s16 + $0x39] sm:$0x1] %vm577_vm12, %v2683_v21  ;;  %v4640_v19 = vpack.c.bf16 %v3215_v18, %v3201_v17  ;;  %v3397_v11 = vld [vmem:[%s4977_s17 + $0x7d] sm:$0x1]  ;;  %v3446_v14 = vrot.slane %v3404_v6, 2 }
 0x9fb   : > { %v2892_v34 = vpop.f32.mrb[20].mxu0 }
 0x9fc   : > { %v2893_v38 = vadd.f32 %v2892_v34, %v5120_v26  ;;  %v4530_v39 = vpop.f32.mrb[21].mxu0  ;;  %v3392_v34 = vld [vmem:[%s4977_s17 + $0x2d] sm:$0x1] }
 0x9fd   : > { %v3390_v39 = vld [vmem:[%s4977_s17 + $0xd] sm:$0x1]  ;;  %v3424_v43 = vrot.slane %v3392_v34, 6  ;;  %v3139_v34 = vld [vmem:[%s5164_s15 + $0x3b] sm:$0x1] }
 0x9fe   : > { %v4280_v44 = vmul.f32 -1.442695, %v2893_v38  ;;  %v3436_v38 = vrot.slane %v3399_v33, 7  ;;  %v3423_v46 = vsel %vm359_vm1, %v3422_v37, %v3390_v39  ;;  %v3138_v33 = vld [vmem:[%s5164_s15 + $0x2b] sm:$0x1] }
 0x9ff   : > { %v3425_v58 = vsel %vm362_vm2, %v3424_v43, %v3423_v46  ;;  %v3625_v43 = vld [vmem:[%s4977_s17 + $0x1e] sm:$0x1]  ;;  %v3634_v46 = vld [vmem:[%s4977_s17 + $0xae] sm:$0x1] }
 0xa00   : > { %4757 = vpow2.f32 %v4280_v44  ;;  %v3438_v44 = vrot.slane %v3400_v35, 6  ;;  %v3437_v47 = vsel %vm359_vm1, %v3436_v38, %v3398_v40  ;;  %v3427_v3 = vsel %vm365_vm3, %v3426_v55, %v3425_v58 }
 0xa02   : > { %v3439_v59 = vsel %vm362_vm2, %v3438_v44, %v3437_v47  ;;  %v3633_v44 = vld [vmem:[%s4977_s17 + $0x9e] sm:$0x1]  ;;  %v3656_v47 = vrot.slane %v3625_v43, 7  ;;  %v3372_v43 = vld [vmem:[%s5164_s15 + $0x2c] sm:$0x1] }
 0xa03   : > { %v3441_v4 = vsel %vm365_vm3, %v3440_v56, %v3439_v59  ;;  %v3672_v56 = vrot.slane %v3634_v46, 6 }
 0xa04   : > { %v3443_v10 = vsel %vm368_vm4, %v3442_v2, %v3441_v4  ;;  %v3636_v2 = vld [vmem:[%s4977_s17 + $0xce] sm:$0x1]  ;;  %v3674_v4 = vrot.slane %v3635_v54, 5  ;;  %v3859_v54 = vld [vmem:[%s4977_s17 + $0x1f] sm:$0x1] }
 0xa08   : > { %v3052_v7 = vpop.f32.mrb[22].mxu0 }
 0xa09   : > { %v3053_v8 = vadd.f32 %v3052_v7, %v5073_v50  ;;  %v4537_v9 = vpop.f32.mrb[23].mxu0  ;;  %v3430_v7 = vrot.slane %v3395_v60, 3 }
 0xa0a   : > { %v4758_v12 = vpop.eup %4757  ;;  %v3429_v9 = vsel %vm368_vm4, %v3428_v63, %v3427_v3  ;;  %v3628_v63 = vld [vmem:[%s4977_s17 + $0x4e] sm:$0x1] }
 0xa0b   : > { %v2899_v15 = vadd.f32 1.0, %v4758_v12  ;;  %v3056_v16 = vmax.f32 %v3053_v8, 0.0  ;;  %v3444_v8 = vrot.slane %v3403_v61, 3  ;;  %v3405_v12 = vld [vmem:[%s4977_s17 + $0xfd] sm:$0x1] }
 0xa0d   : > { %4759 = vrcp.f32 %v2899_v15  ;;  %4539 = vmatpush3.msk.msra.mxu1 %vm481_vm10, %v3056_v16  ;;  %v3431_v15 = vsel %vm371_vm5, %v3430_v7, %v3429_v9  ;;  %v3445_v16 = vsel %vm371_vm5, %v3444_v8, %v3443_v10  ;;  %v3629_v8 = vld [vmem:[%s4977_s17 + $0x5e] sm:$0x1]  ;;  %v3662_v10 = vrot.slane %v3628_v63, 4  ;;  %v3861_v63 = vld [vmem:[%s4977_s17 + $0x3f] sm:$0x1] }
 0xa0e   : > { %4541 = vmatmul.mubr.msk.f32.vlgmr.msra.gmra.mrb[22].mxu1 %vm477_vm11, %v5479_v36  ;;  %4639 = vmatprep.subr.bf16.mxu1 %v4865_v0  ;;  %v3637_v9 = vld [vmem:[%s4977_s17 + $0xde] sm:$0x1] }
 0xa0f   : > { %4547 = vmatprep.mubr.msk.f32.mxu1 %vm4866_vm0, %v4867_v1 }
 0xa14   : > { %4642 = vmatpush3.bf16.xpose.msk.msra.mxu1 %vm5016_vm9, %v4640_v19 }
 0xa15   : > { %4562 = vmatprep.subr.mxu1 %v4867_v1 }
 0xa17   : > { %v4760_v21 = vpop.eup %4759 }
 0xa18   : > { %v2907_v25 = vrot.slane %v4760_v21, 1  ;;  %v2908_v27 = vrot.slane %v4760_v21, 2  ;;  %v2909_v28 = vrot.slane %v4760_v21, 3  ;;  %v2914_v29 = vmul.f32 %v4760_v21, %v2902_v20 }
 0xa19   : > { %v3434_v20 = vrot.slane %v3397_v11, 1  ;;  %v3448_v21 = vrot.slane %v3405_v12, 1  ;;  %v3676_v11 = vrot.slane %v3636_v2, 4  ;;  %v3869_v2 = vld [vmem:[%s4977_s17 + $0xbf] sm:$0x1] }
 0xa1a   : > { %v2915_v30 = vmul.f32 %v2907_v25, %v2903_v22  ;;  %v2916_v31 = vmul.f32 %v2908_v27, %v2904_v23  ;;  %v2917_v32 = vmul.f32 %v2909_v28, %v2905_v24  ;;  %2918 = vst.msk [vmem:[%s5180_s16 + $0xa] sm:$0x1] %vm577_vm12, %v2914_v29  ;;  %v3433_v23 = vsel %vm374_vm6, %v3432_v13, %v3431_v15  ;;  %v3638_v15 = vld [vmem:[%s4977_s17 + $0xee] sm:$0x1] }
 0xa1b   : > { %4548 = vmatmul.mubr.msk.f32.vlgmr.msra.gmra.mrb[24].mxu1 %vm393_vm8, %v5431_v51  ;;  %v3447_v24 = vsel %vm374_vm6, %v3446_v14, %v3445_v16  ;;  %v3435_v28 = vsel %vm377_vm7, %v3434_v20, %v3433_v23  ;;  %v3630_v14 = vld [vmem:[%s4977_s17 + $0x6e] sm:$0x1]  ;;  %v3664_v16 = vrot.slane %v3629_v8, 3  ;;  %v3631_v20 = vld [vmem:[%s4977_s17 + $0x7e] sm:$0x1]  ;;  %v3680_v23 = vrot.slane %v3638_v15, 2 }
 0xa1c   : > { %2919 = vst.msk [vmem:[%s5180_s16 + $0x1a] sm:$0x1] %vm577_vm12, %v2915_v30  ;;  %2920 = vst.msk [vmem:[%s5180_s16 + $0x2a] sm:$0x1] %vm577_vm12, %v2916_v31  ;;  %4564 = vmatprep.mubr.msk.f32.mxu1 %vm4866_vm0, %v4867_v1  ;;  %v3449_v29 = vsel %vm377_vm7, %v3448_v21, %v3447_v24  ;;  %v3136_v31 = vld [vmem:[%s5164_s15 + $0xb] sm:$0x1] }
 0xa1d   : > { %2921 = vst.msk [vmem:[%s5180_s16 + $0x3a] sm:$0x1] %vm577_vm12, %v2917_v32  ;;  %v4644_v30 = vpack.c.bf16 %v3449_v29, %v3435_v28  ;;  %v3639_v21 = vld [vmem:[%s4977_s17 + $0xfe] sm:$0x1] }
 0xae1   : > { %v3126_v45 = vpop.f32.mrb[22].mxu1 }
 0xae2   : > { %v3127_v48 = vadd.f32 %v3126_v45, %v5120_v26  ;;  %v4542_v52 = vpop.f32.mrb[23].mxu1  ;;  %v3626_v45 = vld [vmem:[%s4977_s17 + $0x2e] sm:$0x1] }
 0xae3   : > { %v3624_v52 = vld [vmem:[%s4977_s17 + $0xe] sm:$0x1]  ;;  %v3658_v55 = vrot.slane %v3626_v45, 6 }
 0xae4   : > { %v4286_v57 = vmul.f32 -1.442695, %v3127_v48  ;;  %v3670_v48 = vrot.slane %v3633_v44, 7  ;;  %v3657_v58 = vsel %vm359_vm1, %v3656_v47, %v3624_v52 }
 0xae5   : > { %v3659_v6 = vsel %vm362_vm2, %v3658_v55, %v3657_v58  ;;  %v3867_v55 = vld [vmem:[%s4977_s17 + $0x9f] sm:$0x1]  ;;  %v3890_v58 = vrot.slane %v3859_v54, 7  ;;  %v3605_v54 = vld [vmem:[%s5164_s15 + $0x1d] sm:$0x1] }
 0xae6   : > { %4761 = vpow2.f32 %v4286_v57  ;;  %v3671_v59 = vsel %vm359_vm1, %v3670_v48, %v3632_v53 }
 0xae7   : > { %v3673_v7 = vsel %vm362_vm2, %v3672_v56, %v3671_v59  ;;  %v3860_v56 = vld [vmem:[%s4977_s17 + $0x2f] sm:$0x1]  ;;  %v3904_v59 = vrot.slane %v3867_v55, 7  ;;  %v3606_v55 = vld [vmem:[%s5164_s15 + $0x2d] sm:$0x1] }
 0xae8   : > { %v3675_v13 = vsel %vm365_vm3, %v3674_v4, %v3673_v7 }
 0xaee   : > { %v3286_v17 = vpop.f32.mrb[24].mxu1 }
 0xaef   : > { %v3287_v18 = vadd.f32 %v3286_v17, %v5073_v50  ;;  %v4549_v19 = vpop.f32.mrb[25].mxu1  ;;  %v3678_v17 = vrot.slane %v3637_v9, 3 }
 0xaf0   : > { %v4762_v22 = vpop.eup %4761  ;;  %v3677_v19 = vsel %vm368_vm4, %v3676_v11, %v3675_v13  ;;  %v3870_v11 = vld [vmem:[%s4977_s17 + $0xcf] sm:$0x1]  ;;  %v3908_v13 = vrot.slane %v3869_v2, 5 }
 0xaf1   : > { %v3133_v25 = vadd.f32 1.0, %v4762_v22  ;;  %v3290_v27 = vmax.f32 %v3287_v18, 0.0  ;;  %v3666_v22 = vrot.slane %v3630_v14, 2 }
 0xaf3   : > { %4763 = vrcp.f32 %v3133_v25  ;;  %4551 = vmatpush3.msk.msra.mxu0 %vm481_vm10, %v3290_v27  ;;  %v3679_v25 = vsel %vm371_vm5, %v3678_v17, %v3677_v19  ;;  %v3863_v17 = vld [vmem:[%s4977_s17 + $0x5f] sm:$0x1] }
 0xaf4   : > { %4553 = vmatmul.mubr.msk.f32.vlgmr.msra.gmra.mrb[24].mxu0 %vm477_vm11, %v5479_v36  ;;  %4643 = vmatprep.subr.bf16.mxu0 %v4865_v0 }
 0xaf5   : > { %4559 = vmatprep.mubr.msk.f32.mxu0 %vm4866_vm0, %v4867_v1 }
 0xafa   : > { %4646 = vmatpush3.bf16.xpose.msk.msra.mxu0 %vm5016_vm9, %v4644_v30  ;;  %v3668_v30 = vrot.slane %v3631_v20, 1  ;;  %v3910_v20 = vrot.slane %v3870_v11, 4  ;;  %v3839_v11 = vld [vmem:[%s5164_s15 + $0x1e] sm:$0x1] }
 0xafb   : > { %4574 = vmatprep.subr.mxu0 %v4867_v1 }
 0xafd   : > { %v4764_v32 = vpop.eup %4763 }
 0xafe   : > { %v3141_v35 = vrot.slane %v4764_v32, 1  ;;  %v3142_v37 = vrot.slane %v4764_v32, 2  ;;  %v3143_v38 = vrot.slane %v4764_v32, 3  ;;  %v3148_v39 = vmul.f32 %v4764_v32, %v3136_v31 }
 0xaff   : > { %v3682_v31 = vrot.slane %v3639_v21, 1 }
 0xb00   : > { %v3149_v40 = vmul.f32 %v3141_v35, %v3137_v62  ;;  %v3150_v41 = vmul.f32 %v3142_v37, %v3138_v33  ;;  %v3151_v42 = vmul.f32 %v3143_v38, %v3139_v34  ;;  %3152 = vst.msk [vmem:[%s5180_s16 + $0xb] sm:$0x1] %vm577_vm12, %v3148_v39  ;;  %v3681_v33 = vsel %vm374_vm6, %v3680_v23, %v3679_v25  ;;  %v3864_v23 = vld [vmem:[%s4977_s17 + $0x6f] sm:$0x1] }
 0xb01   : > { %4560 = vmatmul.mubr.msk.f32.vlgmr.msra.gmra.mrb[26].mxu0 %vm393_vm8, %v5431_v51  ;;  %v3627_v51 = vld [vmem:[%s4977_s17 + $0x3e] sm:$0x1]  ;;  %v3683_v38 = vsel %vm377_vm7, %v3682_v31, %v3681_v33  ;;  %v3898_v25 = vrot.slane %v3863_v17, 3  ;;  %v3873_v31 = vld [vmem:[%s4977_s17 + $0xff] sm:$0x1] }
 0xb02   : > { %3153 = vst.msk [vmem:[%s5180_s16 + $0x1b] sm:$0x1] %vm577_vm12, %v3149_v40  ;;  %3154 = vst.msk [vmem:[%s5180_s16 + $0x2b] sm:$0x1] %vm577_vm12, %v3150_v41  ;;  %4576 = vmatprep.mubr.msk.f32.mxu0 %vm4866_vm0, %v4867_v1  ;;  %v3660_v3 = vrot.slane %v3627_v51, 5 }
 0xb03   : > { %3155 = vst.msk [vmem:[%s5180_s16 + $0x3b] sm:$0x1] %vm577_vm12, %v3151_v42  ;;  %v3370_v40 = vld [vmem:[%s5164_s15 + $0xc] sm:$0x1]  ;;  %v3371_v42 = vld [vmem:[%s5164_s15 + $0x1c] sm:$0x1] }
 0xb04   : > { %v3661_v12 = vsel %vm365_vm3, %v3660_v3, %v3659_v6  ;;  %v5840_v51 = vld [vmem:[%s5996_s2] sm:$0x3]  ;;  %v3892_v3 = vrot.slane %v3860_v56, 6  ;;  %v3607_v56 = vld [vmem:[%s5164_s15 + $0x3d] sm:$0x1] }
 0xb05   : > { %v3663_v18 = vsel %vm368_vm4, %v3662_v10, %v3661_v12  ;;  %v3862_v10 = vld [vmem:[%s4977_s17 + $0x4f] sm:$0x1]  ;;  %v3894_v12 = vrot.slane %v3861_v63, 5 }
 0xb06   : > { %v3665_v24 = vsel %vm371_vm5, %v3664_v16, %v3663_v18  ;;  %v3871_v18 = vld [vmem:[%s4977_s17 + $0xdf] sm:$0x1]  ;;  %v3896_v19 = vrot.slane %v3862_v10, 4 }
 0xb07   : > { %v3667_v62 = vsel %vm374_vm6, %v3666_v22, %v3665_v24  ;;  %v3872_v24 = vld [vmem:[%s4977_s17 + $0xef] sm:$0x1] }
 0xb08   : > { %v3669_v37 = vsel %vm377_vm7, %v3668_v30, %v3667_v62  ;;  %v3865_v30 = vld [vmem:[%s4977_s17 + $0x7f] sm:$0x1]  ;;  %v3914_v62 = vrot.slane %v3872_v24, 2 }
 0xb09   : > { %v4648_v39 = vpack.c.bf16 %v3683_v38, %v3669_v37 }
 0xbc7   : > { %v3360_v57 = vpop.f32.mrb[24].mxu0 }
 0xbc8   : > { %v3361_v60 = vadd.f32 %v3360_v57, %v5120_v26  ;;  %v4554_v61 = vpop.f32.mrb[25].mxu0  ;;  %v3868_v57 = vld [vmem:[%s4977_s17 + $0xaf] sm:$0x1] }
 0xbc9   : > { %v3866_v61 = vld [vmem:[%s4977_s17 + $0x8f] sm:$0x1]  ;;  %v3906_v4 = vrot.slane %v3868_v57, 6 }
 0xbca   : > { %v4292_v5 = vmul.f32 -1.442695, %v3361_v60  ;;  %v3858_v60 = vld [vmem:[%s4977_s17 + $0xf] sm:$0x1]  ;;  %v3905_v7 = vsel %vm359_vm1, %v3904_v59, %v3866_v61 }
 0xbcb   : > { %v3891_v6 = vsel %vm359_vm1, %v3890_v58, %v3858_v60  ;;  %v3907_v16 = vsel %vm362_vm2, %v3906_v4, %v3905_v7 }
 0xbcc   : > { %4765 = vpow2.f32 %v4292_v5  ;;  %v3893_v15 = vsel %vm362_vm2, %v3892_v3, %v3891_v6  ;;  %v3909_v22 = vsel %vm365_vm3, %v3908_v13, %v3907_v16  ;;  %v3841_v13 = vld [vmem:[%s5164_s15 + $0x3e] sm:$0x1] }
 0xbcd   : > { %v3895_v21 = vsel %vm365_vm3, %v3894_v12, %v3893_v15  ;;  %v3840_v12 = vld [vmem:[%s5164_s15 + $0x2e] sm:$0x1] }
 0xbd4   : > { %v3520_v27 = vpop.f32.mrb[26].mxu0 }
 0xbd5   : > { %v3521_v28 = vadd.f32 %v3520_v27, %v5073_v50  ;;  %v4561_v29 = vpop.f32.mrb[27].mxu0  ;;  %v3912_v27 = vrot.slane %v3871_v18, 3 }
 0xbd6   : > { %v4766_v32 = vpop.eup %4765  ;;  %v3911_v29 = vsel %vm368_vm4, %v3910_v20, %v3909_v22 }
 0xbd7   : > { %v3367_v34 = vadd.f32 1.0, %v4766_v32  ;;  %v3524_v35 = vmax.f32 %v3521_v28, 0.0  ;;  %v3897_v28 = vsel %vm368_vm4, %v3896_v19, %v3895_v21  ;;  %v3900_v32 = vrot.slane %v3864_v23, 2 }
 0xbd8   : > { %v3899_v33 = vsel %vm371_vm5, %v3898_v25, %v3897_v28 }
 0xbd9   : > { %4767 = vrcp.f32 %v3367_v34  ;;  %4563 = vmatpush3.msk.msra.mxu1 %vm481_vm10, %v3524_v35  ;;  %v3913_v34 = vsel %vm371_vm5, %v3912_v27, %v3911_v29  ;;  %v4072_v27 = vld [vmem:[%s5164_s15 + $0xf] sm:$0x1]  ;;  %v4073_v29 = vld [vmem:[%s5164_s15 + $0x1f] sm:$0x1] }
 0xbda   : > { %4565 = vmatmul.mubr.msk.f32.vlgmr.msra.gmra.mrb[26].mxu1 %vm477_vm11, %v5479_v36  ;;  %4647 = vmatprep.subr.bf16.mxu1 %v4865_v0  ;;  %v3373_v36 = vld [vmem:[%s5164_s15 + $0x3c] sm:$0x1] }
 0xbdb   : > { %4571 = vmatprep.mubr.msk.f32.mxu1 %vm4866_vm0, %v4867_v1 }
 0xbe0   : > { %4650 = vmatpush3.bf16.xpose.msk.msra.mxu1 %vm5016_vm9, %v4648_v39  ;;  %v3902_v39 = vrot.slane %v3865_v30, 1  ;;  %v4074_v30 = vld [vmem:[%s5164_s15 + $0x2f] sm:$0x1] }
 0xbe1   : > { %4586 = vmatprep.subr.mxu1 %v4867_v1 }
 0xbe3   : > { %v4768_v41 = vpop.eup %4767 }
 0xbe4   : > { %v3375_v44 = vrot.slane %v4768_v41, 1  ;;  %v3376_v45 = vrot.slane %v4768_v41, 2  ;;  %v3377_v46 = vrot.slane %v4768_v41, 3  ;;  %v3382_v47 = vmul.f32 %v4768_v41, %v3370_v40 }
 0xbe5   : > { %v3916_v40 = vrot.slane %v3873_v31, 1  ;;  %v4075_v31 = vld [vmem:[%s5164_s15 + $0x3f] sm:$0x1] }
 0xbe6   : > { %v3383_v48 = vmul.f32 %v3375_v44, %v3371_v42  ;;  %v3384_v52 = vmul.f32 %v3376_v45, %v3372_v43  ;;  %v3385_v53 = vmul.f32 %v3377_v46, %v3373_v36  ;;  %3386 = vst.msk [vmem:[%s5180_s16 + $0xc] sm:$0x1] %vm577_vm12, %v3382_v47  ;;  %v3901_v42 = vsel %vm374_vm6, %v3900_v32, %v3899_v33  ;;  %v4784_v47 = vld [vmem:[%s5998_s4] sm:$0xf] }
 0xbe7   : > { %4572 = vmatmul.mubr.msk.f32.vlgmr.msra.gmra.mrb[28].mxu1 %vm393_vm8, %v5840_v51  ;;  %v3915_v43 = vsel %vm374_vm6, %v3914_v62, %v3913_v34  ;;  %v3903_v45 = vsel %vm377_vm7, %v3902_v39, %v3901_v42 }
 0xbe8   : > { %3387 = vst.msk [vmem:[%s5180_s16 + $0x1c] sm:$0x1] %vm577_vm12, %v3383_v48  ;;  %3388 = vst.msk [vmem:[%s5180_s16 + $0x2c] sm:$0x1] %vm577_vm12, %v3384_v52  ;;  %4588 = vmatprep.mubr.msk.f32.mxu1 %vm4866_vm0, %v4867_v1  ;;  %v3917_v46 = vsel %vm377_vm7, %v3916_v40, %v3915_v43  ;;  %v3604_v52 = vld [vmem:[%s5164_s15 + $0xd] sm:$0x1] }
 0xbe9   : > { %3389 = vst.msk [vmem:[%s5180_s16 + $0x3c] sm:$0x1] %vm577_vm12, %v3385_v53  ;;  %v4652_v48 = vpack.c.bf16 %v3917_v46, %v3903_v45 }
 0xcad   : > { %v3594_v5 = vpop.f32.mrb[26].mxu1 }
 0xcae   : > { %v3595_v8 = vadd.f32 %v3594_v5, %v5120_v26  ;;  %v4566_v9 = vpop.f32.mrb[27].mxu1 }
 0xcaf   : > { %v3838_v9 = vld [vmem:[%s5164_s15 + $0xe] sm:$0x1]  ;;  %s4785_s15 = scalar_lea.vmem %s5936_s14, 1024 }
 0xcb0   : > { %v4298_v14 = vmul.f32 -1.442695, %v3595_v8  ;;  %p4786_p12 = scmp.ne.s32.totalorder %s5936_s14, %s4785_s15  ;;  %p4793_p2 = scmp.lt.s32.totalorder %s4791_s28, %s4785_s15 }
 0xcb2   : > { %4769 = vpow2.f32 %v4298_v14  ;;  %p4787_p13 = pnand %p4786_p12, %p4947_p4  ;;  %p4794_p3 = por %p4793_p2, %p4792_p1 }
 0xcb4   : > { %p4788_p0 = pneg %p4787_p13 }
 0xcb6   : > { %p4795_p5 = pnand %p4794_p3, %p4788_p0 }
 0xcba   : > { %v3754_v35 = vpop.f32.mrb[28].mxu1 }
 0xcbb   : > { %v3755_v37 = vadd.f32 %v3754_v35, %v5073_v50  ;;  %v4573_v38 = vpop.f32.mrb[29].mxu1 }
 0xcbc   : > { %v4770_v41 = vpop.eup %4769 }
 0xcbd   : > { %v3601_v36 = vadd.f32 1.0, %v4770_v41  ;;  %v3758_v44 = vmax.f32 %v3755_v37, 0.0 }
 0xcbf   : > { %4771 = vrcp.f32 %v3601_v36  ;;  %4575 = vmatpush3.msk.msra.mxu0 %vm481_vm10, %v3758_v44 }
 0xcc0   : > { %4577 = vmatmul.mubr.msk.f32.vlgmr.msra.gmra.mrb[28].mxu0 %vm477_vm11, %v4784_v47  ;;  %4651 = vmatprep.subr.bf16.mxu0 %v4865_v0 }
 0xcc1   : > { %4583 = vmatprep.mubr.msk.f32.mxu0 %vm4866_vm0, %v4867_v1 }
 0xcc6   : > { %4654 = vmatpush3.bf16.xpose.msk.msra.mxu0 %vm5016_vm9, %v4652_v48 }
 0xcc9   : > { %v4772_v53 = vpop.eup %4771 }
 0xcca   : > { %v3609_v57 = vrot.slane %v4772_v53, 1  ;;  %v3610_v58 = vrot.slane %v4772_v53, 2  ;;  %v3611_v59 = vrot.slane %v4772_v53, 3  ;;  %v3616_v0 = vmul.f32 %v4772_v53, %v3604_v52 }
 0xccc   : > { %v3617_v60 = vmul.f32 %v3609_v57, %v3605_v54  ;;  %v3618_v61 = vmul.f32 %v3610_v58, %v3606_v55  ;;  %v3619_v63 = vmul.f32 %v3611_v59, %v3607_v56  ;;  %3620 = vst.msk [vmem:[%s5180_s16 + $0xd] sm:$0x1] %vm577_vm12, %v3616_v0 }
 0xccd   : > { %4584 = vmatmul.mubr.msk.f32.vlgmr.msra.gmra.mrb[30].mxu0 %vm393_vm8, %v5840_v51 }
 0xcce   : > { %3621 = vst.msk [vmem:[%s5180_s16 + $0x1d] sm:$0x1] %vm577_vm12, %v3617_v60  ;;  %3622 = vst.msk [vmem:[%s5180_s16 + $0x2d] sm:$0x1] %vm577_vm12, %v3618_v61 }
 0xccf   : > { %3623 = vst.msk [vmem:[%s5180_s16 + $0x3d] sm:$0x1] %vm577_vm12, %v3619_v63 }
 0xd93   : > { %v3828_v1 = vpop.f32.mrb[28].mxu0 }
 0xd94   : > { %v3829_v49 = vadd.f32 %v3828_v1, %v5120_v26  ;;  %v4578_v2 = vpop.f32.mrb[29].mxu0 }
 0xd96   : > { %v4304_v3 = vmul.f32 -1.442695, %v3829_v49 }
 0xd98   : > { %4773 = vpow2.f32 %v4304_v3 }
 0xda0   : > { %v3988_v4 = vpop.f32.mrb[30].mxu0 }
 0xda1   : > { %v3989_v5 = vadd.f32 %v3988_v4, %v5073_v50  ;;  %v4585_v51 = vpop.f32.mrb[31].mxu0 }
 0xda2   : > { %v4774_v6 = vpop.eup %4773 }
 0xda3   : > { %v3835_v7 = vadd.f32 1.0, %v4774_v6  ;;  %v3992_v8 = vmax.f32 %v3989_v5, 0.0 }
 0xda5   : > { %4775 = vrcp.f32 %v3835_v7  ;;  %4587 = vmatpush3.msk.msra.mxu1 %vm481_vm10, %v3992_v8 }
 0xda6   : > { %4589 = vmatmul.mubr.msk.f32.vlgmr.msra.gmra.mrb[30].mxu1 %vm477_vm11, %v4784_v47 }
 0xdaf   : > { %v4776_v10 = vpop.eup %4775 }
 0xdb0   : > { %v3843_v14 = vrot.slane %v4776_v10, 1  ;;  %v3844_v50 = vrot.slane %v4776_v10, 2  ;;  %v3845_v15 = vrot.slane %v4776_v10, 3  ;;  %v3850_v16 = vmul.f32 %v4776_v10, %v3838_v9 }
 0xdb2   : > { %v3851_v17 = vmul.f32 %v3843_v14, %v3839_v11  ;;  %v3852_v18 = vmul.f32 %v3844_v50, %v3840_v12  ;;  %v3853_v19 = vmul.f32 %v3845_v15, %v3841_v13  ;;  %3854 = vst.msk [vmem:[%s5180_s16 + $0xe] sm:$0x1] %vm577_vm12, %v3850_v16 }
 0xdb4   : > { %3855 = vst.msk [vmem:[%s5180_s16 + $0x1e] sm:$0x1] %vm577_vm12, %v3851_v17  ;;  %3856 = vst.msk [vmem:[%s5180_s16 + $0x2e] sm:$0x1] %vm577_vm12, %v3852_v18 }
 0xdb5   : > { %3857 = vst.msk [vmem:[%s5180_s16 + $0x3e] sm:$0x1] %vm577_vm12, %v3853_v19 }
 0xe79   : > { %v4062_v20 = vpop.f32.mrb[30].mxu1 }
 0xe7a   : > { %v4063_v21 = vadd.f32 %v4062_v20, %v5120_v26  ;;  %v4590_v22 = vpop.f32.mrb[31].mxu1 }
 0xe7c   : > { %v4310_v23 = vmul.f32 -1.442695, %v4063_v21 }
 0xe7e   : > { %4777 = vpow2.f32 %v4310_v23 }
 0xe88   : > { %v4778_v24 = vpop.eup %4777 }
 0xe89   : > { %v4069_v25 = vadd.f32 1.0, %v4778_v24 }
 0xe8b   : > { %4779 = vrcp.f32 %v4069_v25 }
 0xe95   : > { %v4780_v28 = vpop.eup %4779 }
 0xe96   : > { %v4077_v32 = vrot.slane %v4780_v28, 1  ;;  %v4078_v26 = vrot.slane %v4780_v28, 2  ;;  %v4079_v62 = vrot.slane %v4780_v28, 3  ;;  %v4084_v33 = vmul.f32 %v4780_v28, %v4072_v27 }
 0xe98   : > { %v4085_v34 = vmul.f32 %v4077_v32, %v4073_v29  ;;  %v4086_v35 = vmul.f32 %v4078_v26, %v4074_v30  ;;  %v4087_v37 = vmul.f32 %v4079_v62, %v4075_v31  ;;  %4088 = vst.msk [vmem:[%s5180_s16 + $0xf] sm:$0x1] %vm577_vm12, %v4084_v33 }
 0xe9a   : > { %4089 = vst.msk [vmem:[%s5180_s16 + $0x1f] sm:$0x1] %vm577_vm12, %v4085_v34  ;;  %4090 = vst.msk [vmem:[%s5180_s16 + $0x2f] sm:$0x1] %vm577_vm12, %v4086_v35 }
 0xe9b   : > { %4091 = vst.msk [vmem:[%s5180_s16 + $0x3f] sm:$0x1] %vm577_vm12, %v4087_v37 }
 0xe9c   : > { %4798 = shalt.err (!%p4795_p5)
}
 0xe9d   : > { %s4799_s12 = scalar_lea.hbm %s5934_s19, 1024  ;;  %s4803_s17 = scalar_lea.hbm %s6000_s6, 2048 }
 0xe9e   : > { %p4800_p6 = scmp.ne.s32.totalorder %s5934_s19, %s4799_s12  ;;  %p4804_p10 = scmp.lt.u32.totalorder %s5934_s19, %s6000_s6 }
 0xe9f   : > { %p4805_p11 = scmp.lt.u32.totalorder %s4803_s17, %s4799_s12  ;;  %p4807_p13 = scmp.lt.u32.totalorder %s4799_s12, %s5934_s19 }
 0xea0   : > { %p4801_p7 = pnand %p4800_p6, %p4947_p4 }
 0xea1   : > { %p4806_p12 = por %p4805_p11, %p4804_p10 }
 0xea2   : > { %p4802_p9 = pneg %p4801_p7 }
 0xea3   : > { %p4808_p0 = por %p4807_p13, %p4806_p12 }
 0xea5   : > { %p4809_p1 = pnand %p4808_p0, %p4802_p9 }
 0xea7   : > { %4812 = shalt.err (!%p4809_p1)
}
 0xea8   : > { %s4870_s11 = smov 128   ;;  %s4871_s18 = smov 8  }
 0xea9   : > { %4655 = dma.vmem_to_hbm [thread:$0]  (%p4947_p4), %s5936_s14, 1024, %s5934_s19, %s5948_s24, %s4870_s11, %s4870_s11, %s4871_s18  }
 0xeaa PF: > { %p4661_p2 = scmp.ge.s32.totalorder %s4863_s26, 2  ;;  %s4123_s15 = sand.u32 1, %s4843_s21  }
 0xeab   : > { %s4124_s20 = scalar_lea.sflag [#allocation3], %s4123_s15 }
 0xeac   : > { %p4658_p3 = pnand %p4661_p2, %p4954_p8 }
 0xeae   : > { %4838 = dma.done.wait (!%p4658_p3), %s4124_s20, 1024  }
 0xeaf   : > { %4840 = vsyncadd (!%p4658_p3), %s4124_s20, 4294966272  ;;  %s19_s26 = sadd.s32 1, %s4863_s26   ;;  %s6005_s21 = smov %s4847_s22 }
 0xeb0   : > { %p16_p5 = scmp.ge.s32.totalorder %s19_s26, 4   ;;  %s6006_s22 = smov %s4851_s23 }
 0xeb1   : > { %s6007_s23 = smov %s4960_s10  ;;  %s6008_s24 = smov %s4859_s25 }
 0xeb2   : > { %s6009_s25 = smov %s6011_s29  ;;  %18 = sbr.rel (!%p16_p5) target bundleno = 4 (0x4), region = 82 }
 0xeb9   :  { %4129 = vsyncpa [#allocation3], 1 }
 0xeba   :  { %4131 = vsyncpa [#allocation3 + $0x1], 1 }

</bundles_post_ra>
